<compile_context>
chip_gen: v5e
topology: v5e:2x2
jax: 0.10.0
libtpu: 0.0.40
codegen_flags: <defaults>
</compile_context>

<pallas_src>
import math
import functools

import jax
import jax.numpy as jnp
from jax.experimental import pallas as pl
from jax.experimental.pallas import tpu as pltpu


# --------------------------------------------------------------------------
# compiler params helpers
# --------------------------------------------------------------------------
def _vmem_limit_bytes():
    try:
        info = pltpu.get_tpu_info()
        cap = getattr(info, "vmem_capacity_bytes", None)
        if cap:
            return int(min(int(cap), 128 * 1024 * 1024) * 3 // 4)
    except Exception:
        pass
    return 64 * 1024 * 1024


_VMEM_LIMIT = _vmem_limit_bytes()


def _cparams(*sem):
    return pltpu.CompilerParams(dimension_semantics=tuple(sem),
                                vmem_limit_bytes=_VMEM_LIMIT)


# --------------------------------------------------------------------------
# small in-kernel helpers (all f32 elementwise)
# --------------------------------------------------------------------------
def _layernorm(x, eps=1e-6):
    mean = jnp.mean(x, axis=-1, keepdims=True)
    var = jnp.mean((x - mean) ** 2, axis=-1, keepdims=True)
    return (x - mean) * jax.lax.rsqrt(var + eps)


def _gelu_exact(x):
    # nn.GELU() default (erf-based, non-approximate)
    return 0.5 * x * (1.0 + jax.lax.erf(x * (1.0 / math.sqrt(2.0))))


def _silu(x):
    return x * (1.0 / (1.0 + jnp.exp(-x)))


# --------------------------------------------------------------------------
# dense projection of bert features (batch-grid pipelined)
# --------------------------------------------------------------------------
def _dense_kernel(x_ref, w_ref, b_ref, o_ref):
    o_ref[...] = (jnp.dot(x_ref[...].astype(jnp.bfloat16), w_ref[...],
                          preferred_element_type=jnp.float32) + b_ref[...])


def dense_proj(bert, w_bf16, b):
    B, L, H = bert.shape
    N = w_bf16.shape[1]
    return pl.pallas_call(
        _dense_kernel,
        grid=(B,),
        in_specs=[pl.BlockSpec((None, L, H), lambda i: (i, 0, 0)),
                  pl.BlockSpec((H, N), lambda i: (0, 0)),
                  pl.BlockSpec((1, N), lambda i: (0, 0))],
        out_specs=pl.BlockSpec((None, L, N), lambda i: (i, 0, 0)),
        out_shape=jax.ShapeDtypeStruct((B, L, N), jnp.float32),
        compiler_params=_cparams("parallel"),
    )(bert, w_bf16, b)


# --------------------------------------------------------------------------
# RoPE "conditions" kernel (per batch):
#   cond[c, m, n] = sum_d q[c, m, d] * kT[c, d, n]   (plain batched MXU matmul)
#   out = masked_fill(x_cf + cond, mask == 0 -> 0)   channels-first, lane-dense
# --------------------------------------------------------------------------
def _cond_kernel(q_ref, kt_ref, x_ref, m_ref, o_ref):
    cond = jnp.einsum("cmd,cdn->cmn", q_ref[...], kt_ref[...],
                      preferred_element_type=jnp.float32)         # (C, L, L)
    y = x_ref[...] + cond
    o_ref[...] = jnp.where((m_ref[...] == 0.0)[None, :, :], 0.0, y)


def rope_conditions_add_mask(qw_cf, kw_ct, x_cf, mask):
    # qw_cf: [B, C, L, H] bf16; kw_ct: [B, C, H, L] bf16 (pre-transposed);
    # x_cf: [B, C, L, L] f32; mask: [B, L, L] f32
    B, C, L, H = qw_cf.shape
    return pl.pallas_call(
        _cond_kernel,
        grid=(B,),
        in_specs=[pl.BlockSpec((None, C, L, H), lambda b: (b, 0, 0, 0)),
                  pl.BlockSpec((None, C, H, L), lambda b: (b, 0, 0, 0)),
                  pl.BlockSpec((None, C, L, L), lambda b: (b, 0, 0, 0)),
                  pl.BlockSpec((None, L, L), lambda b: (b, 0, 0))],
        out_specs=pl.BlockSpec((None, C, L, L), lambda b: (b, 0, 0, 0)),
        out_shape=jax.ShapeDtypeStruct((B, C, L, L), jnp.float32),
        compiler_params=_cparams("parallel"),
    )(qw_cf, kw_ct, x_cf, mask)


# --------------------------------------------------------------------------
# patch-embed kernel: patches @ W + b + pos_embed (pos broadcast via index_map)
# --------------------------------------------------------------------------
def _patch_embed_kernel(p_ref, w_ref, b_ref, pos_ref, o_ref):
    o_ref[...] = (jnp.dot(p_ref[...].astype(jnp.bfloat16), w_ref[...],
                          preferred_element_type=jnp.float32)
                  + b_ref[...] + pos_ref[...])


def patch_embed(patches, w_bf16, b, pos):
    B, N, K = patches.shape
    H = w_bf16.shape[1]
    return pl.pallas_call(
        _patch_embed_kernel,
        grid=(B,),
        in_specs=[pl.BlockSpec((None, N, K), lambda i: (i, 0, 0)),
                  pl.BlockSpec((K, H), lambda i: (0, 0)),
                  pl.BlockSpec((1, H), lambda i: (0, 0)),
                  pl.BlockSpec((N, H), lambda i: (0, 0))],   # broadcast over B
        out_specs=pl.BlockSpec((None, N, H), lambda i: (i, 0, 0)),
        out_shape=jax.ShapeDtypeStruct((B, N, H), jnp.float32),
        compiler_params=_cparams("parallel"),
    )(patches, w_bf16, b, pos)


# --------------------------------------------------------------------------
# fused time-embedding + stacked adaLN kernel, column-tiled:
#   step 0 : temb = W2 @ silu(W1 @ fouriered + b1) + b2; scratch = silu(temb)
#   every step: out[:, tile] = scratch @ Wada[:, tile] + bada[:, tile]
# one call replaces the 2 time-MLP linears and depth+1 adaLN linears
# --------------------------------------------------------------------------
def _time_adaln_kernel(f_ref, w1_ref, b1_ref, w2_ref, b2_ref, wa_ref, ba_ref,
                       o_ref, s_ref):
    @pl.when(pl.program_id(0) == 0)
    def _():
        h1 = _silu(jnp.dot(f_ref[...], w1_ref[...],
                           preferred_element_type=jnp.float32) + b1_ref[...])
        temb = (jnp.dot(h1, w2_ref[...], preferred_element_type=jnp.float32)
                + b2_ref[...])
        s_ref[...] = _silu(temb)

    o_ref[...] = (jnp.dot(s_ref[...].astype(jnp.bfloat16), wa_ref[...],
                          preferred_element_type=jnp.float32) + ba_ref[...])


def time_adaln(fouriered, w1, b1, w2, b2, wa_bf16, ba, hidden):
    B, F = fouriered.shape
    H = hidden
    Na = wa_bf16.shape[1]
    TCOL = 2 * H                                # divides Na = (6*depth+2)*H
    assert Na % TCOL == 0
    return pl.pallas_call(
        _time_adaln_kernel,
        grid=(Na // TCOL,),
        in_specs=[pl.BlockSpec((B, F), lambda j: (0, 0)),
                  pl.BlockSpec((F, H), lambda j: (0, 0)),
                  pl.BlockSpec((1, H), lambda j: (0, 0)),
                  pl.BlockSpec((H, H), lambda j: (0, 0)),
                  pl.BlockSpec((1, H), lambda j: (0, 0)),
                  pl.BlockSpec((H, TCOL), lambda j: (0, j)),
                  pl.BlockSpec((1, TCOL), lambda j: (0, j))],
        out_specs=pl.BlockSpec((B, TCOL), lambda j: (0, j)),
        out_shape=jax.ShapeDtypeStruct((B, Na), jnp.float32),
        scratch_shapes=[pltpu.VMEM((B, H), jnp.float32)],
        compiler_params=_cparams("arbitrary"),
    )(fouriered, w1, b1, w2, b2, wa_bf16, ba)


# --------------------------------------------------------------------------
# fused DiT block kernel (per-batch grid, parallel across TCs):
#   adaLN modulate + MHSA (full-width QKV / proj, batched-head einsums) + MLP
# --------------------------------------------------------------------------
def _dit_block_kernel(x_ref, mod_ref,
                      wq_ref, bq_ref, wk_ref, bk_ref, wv_ref, bv_ref,
                      wp_ref, bp_ref, w1_ref, b1_ref, w2_ref, b2_ref,
                      o_ref, *, num_heads, head_dim):
    f32, bf16 = jnp.float32, jnp.bfloat16
    x = x_ref[...]                             # (N, H) f32
    N, H = x.shape
    shift_msa = mod_ref[0:1, :]                # sublane-only slices of (6, H)
    scale_msa = mod_ref[1:2, :]
    gate_msa = mod_ref[2:3, :]
    shift_mlp = mod_ref[3:4, :]
    scale_mlp = mod_ref[4:5, :]
    gate_mlp = mod_ref[5:6, :]

    # --- attention branch ---
    xm = (_layernorm(x) * (1.0 + scale_msa) + shift_msa).astype(bf16)
    q = jnp.dot(xm, wq_ref[...], preferred_element_type=f32) + bq_ref[...]
    k = jnp.dot(xm, wk_ref[...], preferred_element_type=f32) + bk_ref[...]
    v = jnp.dot(xm, wv_ref[...], preferred_element_type=f32) + bv_ref[...]
    # one relayout to head-leading (nh, N, hd), then batched einsums
    q3 = pltpu.einshape("mhd->hmd", q.reshape(N, num_heads, head_dim)).astype(bf16)
    k3 = pltpu.einshape("mhd->hmd", k.reshape(N, num_heads, head_dim)).astype(bf16)
    v3 = pltpu.einshape("mhd->hmd", v.reshape(N, num_heads, head_dim)).astype(bf16)
    s = jnp.einsum("hqd,hkd->hqk", q3, k3,
                   preferred_element_type=f32) * (head_dim ** -0.5)   # (nh,N,N)
    s = s - jnp.max(s, axis=-1, keepdims=True)
    e = jnp.exp(s)
    # approx reciprocal rides the EUP slot (~2^-12 rel. err vs exact divide)
    p = e * pl.reciprocal(jnp.sum(e, axis=-1, keepdims=True), approx=True)
    av = jnp.einsum("hqk,hkd->hqd", p.astype(bf16), v3,
                    preferred_element_type=f32)                       # (nh,N,hd)
    av2 = pltpu.einshape("hmd->mhd", av).reshape(N, H)                # head-major
    attn = (jnp.dot(av2.astype(bf16), wp_ref[...],
                    preferred_element_type=f32) + bp_ref[...])
    x = x + gate_msa * attn

    # --- MLP branch ---
    xm2 = (_layernorm(x) * (1.0 + scale_mlp) + shift_mlp).astype(bf16)
    h1 = jnp.dot(xm2, w1_ref[...], preferred_element_type=f32) + b1_ref[...]
    h1 = _gelu_exact(h1).astype(bf16)
    h2 = jnp.dot(h1, w2_ref[...], preferred_element_type=f32) + b2_ref[...]
    o_ref[...] = x + gate_mlp * h2


_BLOCK_ARG_ORDER = ("wq", "bq", "wk", "bk", "wv", "bv", "wp", "bp",
                    "w1", "b1", "w2", "b2")


def dit_block(x, mod, blk, num_heads):
    B, N, H = x.shape
    hd = H // num_heads
    kern = functools.partial(_dit_block_kernel, num_heads=num_heads, head_dim=hd)

    def rep(a):  # full-array block, replicated (resident) across the batch grid
        nd = a.ndim
        return pl.BlockSpec(a.shape, lambda b, _nd=nd: (0,) * _nd)

    return pl.pallas_call(
        kern,
        grid=(B,),
        in_specs=[pl.BlockSpec((None, N, H), lambda b: (b, 0, 0)),
                  pl.BlockSpec((None, 6, H), lambda b: (b, 0, 0))]
                 + [rep(blk[k]) for k in _BLOCK_ARG_ORDER],
        out_specs=pl.BlockSpec((None, N, H), lambda b: (b, 0, 0)),
        out_shape=jax.ShapeDtypeStruct((B, N, H), jnp.float32),
        compiler_params=_cparams("parallel"),
    )(x, mod, *[blk[k] for k in _BLOCK_ARG_ORDER])


# --------------------------------------------------------------------------
# final layer kernel: LN -> modulate -> linear (batch grid, mod row-indexed)
# --------------------------------------------------------------------------
def _final_kernel(x_ref, mod_ref, w_ref, b_ref, o_ref):
    shift = mod_ref[0:1, :]
    scale = mod_ref[1:2, :]
    xm = (_layernorm(x_ref[...]) * (1.0 + scale) + shift).astype(jnp.bfloat16)
    o_ref[...] = (jnp.dot(xm, w_ref[...], preferred_element_type=jnp.float32)
                  + b_ref[...])


def final_layer(x, mod_f, w_bf16, b):
    B, N, H = x.shape
    P = w_bf16.shape[1]
    return pl.pallas_call(
        _final_kernel,
        grid=(B,),
        in_specs=[pl.BlockSpec((None, N, H), lambda i: (i, 0, 0)),
                  pl.BlockSpec((None, 2, H), lambda i: (i, 0, 0)),
                  pl.BlockSpec((H, P), lambda i: (0, 0)),
                  pl.BlockSpec((1, P), lambda i: (0, 0))],
        out_specs=pl.BlockSpec((None, N, P), lambda i: (i, 0, 0)),
        out_shape=jax.ShapeDtypeStruct((B, N, P), jnp.float32),
        compiler_params=_cparams("parallel"),
    )(x, mod_f, w_bf16, b)


# --------------------------------------------------------------------------
# parameter init (deterministic, synthetic, reference-shaped)
# NOTE: the reference zero-inits adaLN + final linear; we use small random
# values instead so the computation is non-trivial. Shapes match __init__.
# --------------------------------------------------------------------------
def init_params(key, *, in_channels, patch_size, hidden_size, depth,
                num_heads, mlp_ratio):
    del num_heads
    H, C, p = hidden_size, in_channels, patch_size
    Hm = int(H * mlp_ratio)
    keys = iter(jax.random.split(key, 128))

    def w(shape, scale=0.02):
        return jax.random.normal(next(keys), shape, jnp.float32) * scale

    params = dict(
        w_dense=w((H, 2 * C * H)), b_dense=w((2 * C * H,)),
        w_patch=w((C * p * p, H)), b_patch=w((H,)),   # Conv2d(p,p,stride=p) as matmul
        pos_embed=w((256, H)),
        w_sinu=w((H // 2,), 1.0),
        w_t1=w((H + 1, H)), b_t1=w((H,)),
        w_t2=w((H, H)), b_t2=w((H,)),
        w_ada_f=w((H, 2 * H)), b_ada_f=w((2 * H,)),
        w_final=w((H, p * p * C)), b_final=w((p * p * C,)),
        blocks=[],
    )
    for _ in range(depth):
        params["blocks"].append(dict(
            w_qkv=w((H, 3 * H)), b_qkv=w((3 * H,)),
            w_proj=w((H, H)), b_proj=w((H,)),
            w_mlp1=w((H, Hm)), b_mlp1=w((Hm,)),
            w_mlp2=w((Hm, H)), b_mlp2=w((H,)),
            w_ada=w((H, 6 * H)), b_ada=w((6 * H,)),
        ))
    return params


# --------------------------------------------------------------------------
# one-time weight re-layout + bf16 cast (hoisted OUT of the jitted forward)
# --------------------------------------------------------------------------
def prep_params(params, *, hidden_size, **_unused):
    H = hidden_size
    bf16 = jnp.bfloat16
    pp = dict(
        w_dense=params["w_dense"].astype(bf16),
        b_dense=params["b_dense"].reshape(1, -1),
        w_patch=params["w_patch"].astype(bf16),
        b_patch=params["b_patch"].reshape(1, -1),
        pos_embed=params["pos_embed"],
        w_sinu=params["w_sinu"],
        w_t1=params["w_t1"], b_t1=params["b_t1"].reshape(1, -1),
        w_t2=params["w_t2"], b_t2=params["b_t2"].reshape(1, -1),
        w_final=params["w_final"].astype(bf16),
        b_final=params["b_final"].reshape(1, -1),
    )
    # one stacked adaLN weight: [block 0 | ... | block depth-1 | final]
    pp["w_ada_all"] = jnp.concatenate(
        [blk["w_ada"] for blk in params["blocks"]] + [params["w_ada_f"]],
        axis=1).astype(bf16)
    pp["b_ada_all"] = jnp.concatenate(
        [blk["b_ada"] for blk in params["blocks"]] + [params["b_ada_f"]],
        axis=0).reshape(1, -1)
    blocks = []
    for blk in params["blocks"]:
        blocks.append(dict(
            wq=blk["w_qkv"][:, 0:H].astype(bf16),
            wk=blk["w_qkv"][:, H:2 * H].astype(bf16),
            wv=blk["w_qkv"][:, 2 * H:3 * H].astype(bf16),
            bq=blk["b_qkv"][0:H].reshape(1, H),
            bk=blk["b_qkv"][H:2 * H].reshape(1, H),
            bv=blk["b_qkv"][2 * H:3 * H].reshape(1, H),
            wp=blk["w_proj"].astype(bf16),
            bp=blk["b_proj"].reshape(1, H),
            w1=blk["w_mlp1"].astype(bf16), b1=blk["b_mlp1"].reshape(1, -1),
            w2=blk["w_mlp2"].astype(bf16), b2=blk["b_mlp2"].reshape(1, -1),
        ))
    pp["blocks"] = blocks
    return pp


# --------------------------------------------------------------------------
# full forward
# --------------------------------------------------------------------------
def dit_forward(pp, x, t, bert_features, grid_masks, *, cfg):
    B, L, _, C = x.shape
    H = cfg["hidden_size"]
    p = cfg["patch_size"]
    depth = cfg["depth"]
    num_heads = cfg["num_heads"]

    # ---- dense projection of bert features -> rotary q/k per channel ----
    out = dense_proj(bert_features, pp["w_dense"], pp["b_dense"])    # (B, L, 2CH)
    out = out.reshape(B, L, C, 2 * H)            # == split(2H) + stack(dim=-2)
    qw, kw = out[..., :H], out[..., H:]

    # sinusoidal positions + RoPE twiddles (glue; cheap in XLA)
    pos = jnp.arange(L, dtype=jnp.float32)[:, None]
    idx = jnp.arange(H // 2, dtype=jnp.float32)
    ang = pos * jnp.power(10000.0, -2.0 * idx / H)
    pos_emb = jnp.stack([jnp.sin(ang), jnp.cos(ang)], axis=-1).reshape(L, H)
    cos_pos = jnp.repeat(pos_emb[:, 1::2], 2, axis=-1)[None, :, None, :]
    sin_pos = jnp.repeat(pos_emb[:, 0::2], 2, axis=-1)[None, :, None, :]

    def rope(wv):
        w2 = jnp.stack([-wv[..., 1::2], wv[..., 0::2]], axis=-1).reshape(wv.shape)
        return wv * cos_pos + w2 * sin_pos

    # channels-first q; K pre-transposed to (B,C,H,L) so the conditions kernel
    # contraction is a plain MXU matmul; bf16 halves their DMA.
    qw_cf = jnp.transpose(rope(qw), (0, 2, 1, 3)).astype(jnp.bfloat16)   # (B,C,L,H)
    kw_ct = jnp.transpose(rope(kw), (0, 2, 3, 1)).astype(jnp.bfloat16)   # (B,C,H,L)

    x_cf = jnp.transpose(x, (0, 3, 1, 2))                                # (B,C,L,L)
    x_masked = rope_conditions_add_mask(qw_cf, kw_ct, x_cf, grid_masks)  # (B,C,L,L)

    # ---- patch embed (strided conv == NCHW patch extract + matmul) + pos ----
    hgrid = wgrid = L // p
    N = hgrid * wgrid
    patches = x_masked.reshape(B, C, hgrid, p, wgrid, p)
    patches = jnp.transpose(patches, (0, 2, 4, 1, 3, 5)).reshape(B, N, C * p * p)
    # TODO(synk): fold this NCHW patch extraction into patch_embed's index_map
    # to avoid the full-activation HBM transpose at large L.
    x_seq = patch_embed(patches, pp["w_patch"], pp["b_patch"],
                        pp["pos_embed"][:N])                             # (B,N,H)

    # ---- fused time embedding + ALL adaLN modulations (one tiled kernel) ----
    tt = t.astype(jnp.float32)[:, None]
    freqs = tt * pp["w_sinu"][None, :] * (2.0 * math.pi)
    fouriered = jnp.concatenate([tt, jnp.sin(freqs), jnp.cos(freqs)], axis=-1)
    mods = time_adaln(fouriered, pp["w_t1"], pp["b_t1"], pp["w_t2"], pp["b_t2"],
                      pp["w_ada_all"], pp["b_ada_all"], H)   # (B, (6*depth+2)*H)

    # ---- transformer blocks ----
    D6 = 6 * H
    for d, blk in enumerate(pp["blocks"]):
        mod_d = mods[:, d * D6:(d + 1) * D6].reshape(B, 6, H)
        x_seq = dit_block(x_seq, mod_d, blk, num_heads)

    # ---- final layer ----
    mod_f = mods[:, depth * D6:].reshape(B, 2, H)
    out = final_layer(x_seq, mod_f, pp["w_final"], pp["b_final"])   # (B, N, p*p*C)

    # ---- unpatchify + final permute (glue) ----
    out = out.reshape(B, hgrid, wgrid, p, p, C)
    out = jnp.transpose(out, (0, 5, 1, 3, 2, 4))                    # nhwpqc -> nchpwq
    out = out.reshape(B, C, hgrid * p, wgrid * p)
    return jnp.transpose(out, (0, 2, 3, 1))                         # (B, L, L, C)


# --------------------------------------------------------------------------
if __name__ == "__main__":
    cfg = dict(in_channels=4, patch_size=4, hidden_size=64, depth=2,
               num_heads=4, mlp_ratio=4.0)
    B, L, C = 2, 16, cfg["in_channels"]

    key = jax.random.PRNGKey(0)
    kp, kx, kt, kb, km = jax.random.split(key, 5)
    params = init_params(kp, **cfg)
    pp = prep_params(params, **cfg)   # one-time weight re-layout + bf16 (hoisted)

    x = jax.random.normal(kx, (B, L, L, C), jnp.float32)
    t = jax.random.uniform(kt, (B,), jnp.float32) * 1000.0
    bert_features = jax.random.normal(kb, (B, L, cfg["hidden_size"]), jnp.float32)
    grid_masks = (jax.random.uniform(km, (B, L, L)) > 0.2).astype(jnp.float32)

    fwd = jax.jit(functools.partial(dit_forward, cfg=cfg))
    out = fwd(pp, x, t, bert_features, grid_masks)
    jax.block_until_ready(out)
    assert out.shape == (B, L, L, C)
    assert jnp.all(jnp.isfinite(out))
    print("KERNEL_OK")
</pallas_src>

<mosaic_0001>
module attributes {stable_mosaic.version = 11 : i64} {
  func.func @_dense_kernel(%arg0: i32, %arg1: memref<1x16x64xf32, #tpu.memory_space<vmem>>, %arg2: memref<64x512xbf16, #tpu.memory_space<vmem>>, %arg3: memref<1x512xf32, #tpu.memory_space<vmem>>, %arg4: memref<1x16x512xf32, #tpu.memory_space<vmem>>) attributes {dimension_semantics = [#tpu.dimension_semantics<parallel>], iteration_bounds = array<i64: 2>, scalar_prefetch = 0 : i64, scratch_operands = 0 : i64, tpu.core_type = #tpu.core_type<tc>, window_params = [{transform_indices = @transform_0, window_bounds = array<i64: 1, 16, 64>}, {pipeline_mode = #tpu.pipeline_mode<synchronous>, transform_indices = @transform_1, window_bounds = array<i64: 64, 512>}, {pipeline_mode = #tpu.pipeline_mode<synchronous>, transform_indices = @transform_2, window_bounds = array<i64: 1, 512>}, {transform_indices = @transform_3, window_bounds = array<i64: 1, 16, 512>}]} {
    %c0 = arith.constant 0 : index
    %c0_0 = arith.constant 0 : index
    %c0_1 = arith.constant 0 : index
    %0 = vector.load %arg1[%c0, %c0_0, %c0_1] : memref<1x16x64xf32, #tpu.memory_space<vmem>>, vector<1x16x64xf32>
    %1 = vector.shape_cast %0 : vector<1x16x64xf32> to vector<16x64xf32>
    %2 = arith.truncf %1 : vector<16x64xf32> to vector<16x64xbf16>
    %c0_2 = arith.constant 0 : index
    %c0_3 = arith.constant 0 : index
    %3 = vector.load %arg2[%c0_2, %c0_3] : memref<64x512xbf16, #tpu.memory_space<vmem>>, vector<64x512xbf16>
    %cst = arith.constant dense<0.000000e+00> : vector<16x512xf32>
    %4 = tpu.matmul %2, %3, %cst {dimension_numbers = #tpu.dot_dimension_numbers<[1], [0], [0], [1], [0, 0, 1, 1], [], []>} : vector<16x64xbf16>, vector<64x512xbf16>, vector<16x512xf32> -> vector<16x512xf32>
    %c0_4 = arith.constant 0 : index
    %c0_5 = arith.constant 0 : index
    %5 = vector.load %arg3[%c0_4, %c0_5] : memref<1x512xf32, #tpu.memory_space<vmem>>, vector<1x512xf32>
    %6 = vector.broadcast %5 : vector<1x512xf32> to vector<16x512xf32>
    %7 = arith.addf %4, %6 : vector<16x512xf32>
    %c0_6 = arith.constant 0 : index
    %c0_7 = arith.constant 0 : index
    %c0_8 = arith.constant 0 : index
    %8 = vector.load %arg4[%c0_6, %c0_7, %c0_8] : memref<1x16x512xf32, #tpu.memory_space<vmem>>, vector<1x16x512xf32>
    %9 = vector.shape_cast %8 : vector<1x16x512xf32> to vector<16x512xf32>
    %10 = vector.shape_cast %7 : vector<16x512xf32> to vector<1x16x512xf32>
    tpu.vector_store %arg4[%c0_6, %c0_7, %c0_8], %10 {strides = array<i32>} : memref<1x16x512xf32, #tpu.memory_space<vmem>>, vector<1x16x512xf32>,
    return
  }
  func.func @transform_0(%arg0: i32) -> (i32, i32, i32) {
    %c0_i32 = arith.constant 0 : i32
    %c0_i32_0 = arith.constant 0 : i32
    %c0_i32_1 = arith.constant 0 : i32
    return %arg0, %c0_i32, %c0_i32_0 : i32, i32, i32
  }
  func.func @transform_1(%arg0: i32) -> (i32, i32) {
    %c0_i32 = arith.constant 0 : i32
    %c0_i32_0 = arith.constant 0 : i32
    %c0_i32_1 = arith.constant 0 : i32
    return %c0_i32, %c0_i32_0 : i32, i32
  }
  func.func @transform_2(%arg0: i32) -> (i32, i32) {
    %c0_i32 = arith.constant 0 : i32
    %c0_i32_0 = arith.constant 0 : i32
    %c0_i32_1 = arith.constant 0 : i32
    return %c0_i32, %c0_i32_0 : i32, i32
  }
  func.func @transform_3(%arg0: i32) -> (i32, i32, i32) {
    %c0_i32 = arith.constant 0 : i32
    %c0_i32_0 = arith.constant 0 : i32
    %c0_i32_1 = arith.constant 0 : i32
    return %arg0, %c0_i32, %c0_i32_0 : i32, i32, i32
  }
}

module attributes {stable_mosaic.version = 11 : i64} {
  func.func @_cond_kernel(%arg0: i32, %arg1: memref<1x4x16x64xbf16, #tpu.memory_space<vmem>>, %arg2: memref<1x4x64x16xbf16, #tpu.memory_space<vmem>>, %arg3: memref<1x4x16x16xf32, #tpu.memory_space<vmem>>, %arg4: memref<1x16x16xf32, #tpu.memory_space<vmem>>, %arg5: memref<1x4x16x16xf32, #tpu.memory_space<vmem>>) attributes {dimension_semantics = [#tpu.dimension_semantics<parallel>], iteration_bounds = array<i64: 2>, scalar_prefetch = 0 : i64, scratch_operands = 0 : i64, tpu.core_type = #tpu.core_type<tc>, window_params = [{transform_indices = @transform_0, window_bounds = array<i64: 1, 4, 16, 64>}, {transform_indices = @transform_1, window_bounds = array<i64: 1, 4, 64, 16>}, {transform_indices = @transform_2, window_bounds = array<i64: 1, 4, 16, 16>}, {transform_indices = @transform_3, window_bounds = array<i64: 1, 16, 16>}, {transform_indices = @transform_4, window_bounds = array<i64: 1, 4, 16, 16>}]} {
    %c0 = arith.constant 0 : index
    %c0_0 = arith.constant 0 : index
    %c0_1 = arith.constant 0 : index
    %c0_2 = arith.constant 0 : index
    %0 = vector.load %arg1[%c0, %c0_0, %c0_1, %c0_2] : memref<1x4x16x64xbf16, #tpu.memory_space<vmem>>, vector<1x4x16x64xbf16>
    %1 = vector.shape_cast %0 : vector<1x4x16x64xbf16> to vector<4x16x64xbf16>
    %c0_3 = arith.constant 0 : index
    %c0_4 = arith.constant 0 : index
    %c0_5 = arith.constant 0 : index
    %c0_6 = arith.constant 0 : index
    %2 = vector.load %arg2[%c0_3, %c0_4, %c0_5, %c0_6] : memref<1x4x64x16xbf16, #tpu.memory_space<vmem>>, vector<1x4x64x16xbf16>
    %3 = vector.shape_cast %2 : vector<1x4x64x16xbf16> to vector<4x64x16xbf16>
    "tpu.trace_start"() <{level = 10 : i32, message = "cmd,cdn->cmn"}> : () -> ()
    %cst = arith.constant dense<0.000000e+00> : vector<4x16x16xf32>
    %4 = tpu.matmul %1, %3, %cst {dimension_numbers = #tpu.dot_dimension_numbers<[2], [1], [1], [2], [0, 0, 0, 1, 1, 2], [0], [0]>} : vector<4x16x64xbf16>, vector<4x64x16xbf16>, vector<4x16x16xf32> -> vector<4x16x16xf32>
    "tpu.trace_stop"() : () -> ()
    %c0_7 = arith.constant 0 : index
    %c0_8 = arith.constant 0 : index
    %c0_9 = arith.constant 0 : index
    %c0_10 = arith.constant 0 : index
    %5 = vector.load %arg3[%c0_7, %c0_8, %c0_9, %c0_10] : memref<1x4x16x16xf32, #tpu.memory_space<vmem>>, vector<1x4x16x16xf32>
    %6 = vector.shape_cast %5 : vector<1x4x16x16xf32> to vector<4x16x16xf32>
    %7 = arith.addf %6, %4 : vector<4x16x16xf32>
    %c0_11 = arith.constant 0 : index
    %c0_12 = arith.constant 0 : index
    %c0_13 = arith.constant 0 : index
    %8 = vector.load %arg4[%c0_11, %c0_12, %c0_13] : memref<1x16x16xf32, #tpu.memory_space<vmem>>, vector<1x16x16xf32>
    %9 = vector.shape_cast %8 : vector<1x16x16xf32> to vector<16x16xf32>
    %cst_14 = arith.constant 0.000000e+00 : f32
    %10 = vector.broadcast %cst_14 : f32 to vector<16x16xf32>
    %11 = arith.cmpf oeq, %9, %10 : vector<16x16xf32>
    %12 = vector.shape_cast %11 : vector<16x16xi1> to vector<1x16x16xi1>
    %cst_15 = arith.constant 0.000000e+00 : f32
    %13 = vector.shape_cast %12 : vector<1x16x16xi1> to vector<1x16x16xi1>
    %14 = vector.broadcast %13 : vector<1x16x16xi1> to vector<4x16x16xi1>
    %15 = vector.broadcast %cst_15 : f32 to vector<4x16x16xf32>
    %16 = arith.select %14, %15, %7 : vector<4x16x16xi1>, vector<4x16x16xf32>
    %c0_16 = arith.constant 0 : index
    %c0_17 = arith.constant 0 : index
    %c0_18 = arith.constant 0 : index
    %c0_19 = arith.constant 0 : index
    %17 = vector.load %arg5[%c0_16, %c0_17, %c0_18, %c0_19] : memref<1x4x16x16xf32, #tpu.memory_space<vmem>>, vector<1x4x16x16xf32>
    %18 = vector.shape_cast %17 : vector<1x4x16x16xf32> to vector<4x16x16xf32>
    %19 = vector.shape_cast %16 : vector<4x16x16xf32> to vector<1x4x16x16xf32>
    tpu.vector_store %arg5[%c0_16, %c0_17, %c0_18, %c0_19], %19 {strides = array<i32>} : memref<1x4x16x16xf32, #tpu.memory_space<vmem>>, vector<1x4x16x16xf32>,
    return
  }
  func.func @transform_0(%arg0: i32) -> (i32, i32, i32, i32) {
    %c0_i32 = arith.constant 0 : i32
    %c0_i32_0 = arith.constant 0 : i32
    %c0_i32_1 = arith.constant 0 : i32
    %c0_i32_2 = arith.constant 0 : i32
    return %arg0, %c0_i32, %c0_i32_0, %c0_i32_1 : i32, i32, i32, i32
  }
  func.func @transform_1(%arg0: i32) -> (i32, i32, i32, i32) {
    %c0_i32 = arith.constant 0 : i32
    %c0_i32_0 = arith.constant 0 : i32
    %c0_i32_1 = arith.constant 0 : i32
    %c0_i32_2 = arith.constant 0 : i32
    return %arg0, %c0_i32, %c0_i32_0, %c0_i32_1 : i32, i32, i32, i32
  }
  func.func @transform_2(%arg0: i32) -> (i32, i32, i32, i32) {
    %c0_i32 = arith.constant 0 : i32
    %c0_i32_0 = arith.constant 0 : i32
    %c0_i32_1 = arith.constant 0 : i32
    %c0_i32_2 = arith.constant 0 : i32
    return %arg0, %c0_i32, %c0_i32_0, %c0_i32_1 : i32, i32, i32, i32
  }
  func.func @transform_3(%arg0: i32) -> (i32, i32, i32) {
    %c0_i32 = arith.constant 0 : i32
    %c0_i32_0 = arith.constant 0 : i32
    %c0_i32_1 = arith.constant 0 : i32
    return %arg0, %c0_i32, %c0_i32_0 : i32, i32, i32
  }
  func.func @transform_4(%arg0: i32) -> (i32, i32, i32, i32) {
    %c0_i32 = arith.constant 0 : i32
    %c0_i32_0 = arith.constant 0 : i32
    %c0_i32_1 = arith.constant 0 : i32
    %c0_i32_2 = arith.constant 0 : i32
    return %arg0, %c0_i32, %c0_i32_0, %c0_i32_1 : i32, i32, i32, i32
  }
}

module attributes {stable_mosaic.version = 11 : i64} {
  func.func @_patch_embed_kernel(%arg0: i32, %arg1: memref<1x16x64xf32, #tpu.memory_space<vmem>>, %arg2: memref<64x64xbf16, #tpu.memory_space<vmem>>, %arg3: memref<1x64xf32, #tpu.memory_space<vmem>>, %arg4: memref<16x64xf32, #tpu.memory_space<vmem>>, %arg5: memref<1x16x64xf32, #tpu.memory_space<vmem>>) attributes {dimension_semantics = [#tpu.dimension_semantics<parallel>], iteration_bounds = array<i64: 2>, scalar_prefetch = 0 : i64, scratch_operands = 0 : i64, tpu.core_type = #tpu.core_type<tc>, window_params = [{transform_indices = @transform_0, window_bounds = array<i64: 1, 16, 64>}, {pipeline_mode = #tpu.pipeline_mode<synchronous>, transform_indices = @transform_1, window_bounds = array<i64: 64, 64>}, {pipeline_mode = #tpu.pipeline_mode<synchronous>, transform_indices = @transform_2, window_bounds = array<i64: 1, 64>}, {pipeline_mode = #tpu.pipeline_mode<synchronous>, transform_indices = @transform_3, window_bounds = array<i64: 16, 64>}, {transform_indices = @transform_4, window_bounds = array<i64: 1, 16, 64>}]} {
    %c0 = arith.constant 0 : index
    %c0_0 = arith.constant 0 : index
    %c0_1 = arith.constant 0 : index
    %0 = vector.load %arg1[%c0, %c0_0, %c0_1] : memref<1x16x64xf32, #tpu.memory_space<vmem>>, vector<1x16x64xf32>
    %1 = vector.shape_cast %0 : vector<1x16x64xf32> to vector<16x64xf32>
    %2 = arith.truncf %1 : vector<16x64xf32> to vector<16x64xbf16>
    %c0_2 = arith.constant 0 : index
    %c0_3 = arith.constant 0 : index
    %3 = vector.load %arg2[%c0_2, %c0_3] : memref<64x64xbf16, #tpu.memory_space<vmem>>, vector<64x64xbf16>
    %cst = arith.constant dense<0.000000e+00> : vector<16x64xf32>
    %4 = tpu.matmul %2, %3, %cst {dimension_numbers = #tpu.dot_dimension_numbers<[1], [0], [0], [1], [0, 0, 1, 1], [], []>} : vector<16x64xbf16>, vector<64x64xbf16>, vector<16x64xf32> -> vector<16x64xf32>
    %c0_4 = arith.constant 0 : index
    %c0_5 = arith.constant 0 : index
    %5 = vector.load %arg3[%c0_4, %c0_5] : memref<1x64xf32, #tpu.memory_space<vmem>>, vector<1x64xf32>
    %6 = vector.broadcast %5 : vector<1x64xf32> to vector<16x64xf32>
    %7 = arith.addf %4, %6 : vector<16x64xf32>
    %c0_6 = arith.constant 0 : index
    %c0_7 = arith.constant 0 : index
    %8 = vector.load %arg4[%c0_6, %c0_7] : memref<16x64xf32, #tpu.memory_space<vmem>>, vector<16x64xf32>
    %9 = arith.addf %7, %8 : vector<16x64xf32>
    %c0_8 = arith.constant 0 : index
    %c0_9 = arith.constant 0 : index
    %c0_10 = arith.constant 0 : index
    %10 = vector.load %arg5[%c0_8, %c0_9, %c0_10] : memref<1x16x64xf32, #tpu.memory_space<vmem>>, vector<1x16x64xf32>
    %11 = vector.shape_cast %10 : vector<1x16x64xf32> to vector<16x64xf32>
    %12 = vector.shape_cast %9 : vector<16x64xf32> to vector<1x16x64xf32>
    tpu.vector_store %arg5[%c0_8, %c0_9, %c0_10], %12 {strides = array<i32>} : memref<1x16x64xf32, #tpu.memory_space<vmem>>, vector<1x16x64xf32>,
    return
  }
  func.func @transform_0(%arg0: i32) -> (i32, i32, i32) {
    %c0_i32 = arith.constant 0 : i32
    %c0_i32_0 = arith.constant 0 : i32
    %c0_i32_1 = arith.constant 0 : i32
    return %arg0, %c0_i32, %c0_i32_0 : i32, i32, i32
  }
  func.func @transform_1(%arg0: i32) -> (i32, i32) {
    %c0_i32 = arith.constant 0 : i32
    %c0_i32_0 = arith.constant 0 : i32
    %c0_i32_1 = arith.constant 0 : i32
    return %c0_i32, %c0_i32_0 : i32, i32
  }
  func.func @transform_2(%arg0: i32) -> (i32, i32) {
    %c0_i32 = arith.constant 0 : i32
    %c0_i32_0 = arith.constant 0 : i32
    %c0_i32_1 = arith.constant 0 : i32
    return %c0_i32, %c0_i32_0 : i32, i32
  }
  func.func @transform_3(%arg0: i32) -> (i32, i32) {
    %c0_i32 = arith.constant 0 : i32
    %c0_i32_0 = arith.constant 0 : i32
    %c0_i32_1 = arith.constant 0 : i32
    return %c0_i32, %c0_i32_0 : i32, i32
  }
  func.func @transform_4(%arg0: i32) -> (i32, i32, i32) {
    %c0_i32 = arith.constant 0 : i32
    %c0_i32_0 = arith.constant 0 : i32
    %c0_i32_1 = arith.constant 0 : i32
    return %arg0, %c0_i32, %c0_i32_0 : i32, i32, i32
  }
}

module attributes {stable_mosaic.version = 11 : i64} {
  func.func @_time_adaln_kernel(%arg0: i32, %arg1: memref<2x65xf32, #tpu.memory_space<vmem>>, %arg2: memref<65x64xf32, #tpu.memory_space<vmem>>, %arg3: memref<1x64xf32, #tpu.memory_space<vmem>>, %arg4: memref<64x64xf32, #tpu.memory_space<vmem>>, %arg5: memref<1x64xf32, #tpu.memory_space<vmem>>, %arg6: memref<64x128xbf16, #tpu.memory_space<vmem>>, %arg7: memref<1x128xf32, #tpu.memory_space<vmem>>, %arg8: memref<2x128xf32, #tpu.memory_space<vmem>>, %arg9: memref<2x64xf32, #tpu.memory_space<vmem>>) attributes {dimension_semantics = [#tpu.dimension_semantics<arbitrary>], iteration_bounds = array<i64: 7>, scalar_prefetch = 0 : i64, scratch_operands = 1 : i64, tpu.core_type = #tpu.core_type<tc>, window_params = [{pipeline_mode = #tpu.pipeline_mode<synchronous>, transform_indices = @transform_0, window_bounds = array<i64: 2, 65>}, {pipeline_mode = #tpu.pipeline_mode<synchronous>, transform_indices = @transform_1, window_bounds = array<i64: 65, 64>}, {pipeline_mode = #tpu.pipeline_mode<synchronous>, transform_indices = @transform_2, window_bounds = array<i64: 1, 64>}, {pipeline_mode = #tpu.pipeline_mode<synchronous>, transform_indices = @transform_3, window_bounds = array<i64: 64, 64>}, {pipeline_mode = #tpu.pipeline_mode<synchronous>, transform_indices = @transform_4, window_bounds = array<i64: 1, 64>}, {transform_indices = @transform_5, window_bounds = array<i64: 64, 128>}, {transform_indices = @transform_6, window_bounds = array<i64: 1, 128>}, {transform_indices = @transform_7, window_bounds = array<i64: 2, 128>}]} {
    %c0_i32 = arith.constant 0 : i32
    %0 = arith.cmpi eq, %arg0, %c0_i32 : i32
    %1 = arith.extui %0 : i1 to i32
    %c0_i32_0 = arith.constant 0 : i32
    %2 = arith.cmpi ne, %1, %c0_i32_0 : i32
    scf.if %2 {
      %c0_8 = arith.constant 0 : index
      %c0_9 = arith.constant 0 : index
      %11 = vector.load %arg1[%c0_8, %c0_9] : memref<2x65xf32, #tpu.memory_space<vmem>>, vector<2x65xf32>
      %c0_10 = arith.constant 0 : index
      %c0_11 = arith.constant 0 : index
      %12 = vector.load %arg2[%c0_10, %c0_11] : memref<65x64xf32, #tpu.memory_space<vmem>>, vector<65x64xf32>
      %cst_12 = arith.constant dense<0.000000e+00> : vector<2x64xf32>
      %13 = tpu.matmul %11, %12, %cst_12 {dimension_numbers = #tpu.dot_dimension_numbers<[1], [0], [0], [1], [0, 0, 1, 1], [], []>} : vector<2x65xf32>, vector<65x64xf32>, vector<2x64xf32> -> vector<2x64xf32>
      %c0_13 = arith.constant 0 : index
      %c0_14 = arith.constant 0 : index
      %14 = vector.load %arg3[%c0_13, %c0_14] : memref<1x64xf32, #tpu.memory_space<vmem>>, vector<1x64xf32>
      %15 = vector.broadcast %14 : vector<1x64xf32> to vector<2x64xf32>
      %16 = arith.addf %13, %15 : vector<2x64xf32>
      %cst_15 = arith.constant 0.000000e+00 : f32
      %17 = vector.broadcast %cst_15 : f32 to vector<2x64xf32>
      %18 = arith.subf %17, %16 : vector<2x64xf32>
      %19 = math.exp %18 : vector<2x64xf32>
      %cst_16 = arith.constant 1.000000e+00 : f32
      %20 = vector.broadcast %cst_16 : f32 to vector<2x64xf32>
      %21 = arith.addf %20, %19 : vector<2x64xf32>
      %cst_17 = arith.constant 1.000000e+00 : f32
      %22 = vector.broadcast %cst_17 : f32 to vector<2x64xf32>
      %23 = arith.divf %22, %21 : vector<2x64xf32>
      %24 = arith.mulf %16, %23 : vector<2x64xf32>
      %c0_18 = arith.constant 0 : index
      %c0_19 = arith.constant 0 : index
      %25 = vector.load %arg4[%c0_18, %c0_19] : memref<64x64xf32, #tpu.memory_space<vmem>>, vector<64x64xf32>
      %cst_20 = arith.constant dense<0.000000e+00> : vector<2x64xf32>
      %26 = tpu.matmul %24, %25, %cst_20 {dimension_numbers = #tpu.dot_dimension_numbers<[1], [0], [0], [1], [0, 0, 1, 1], [], []>} : vector<2x64xf32>, vector<64x64xf32>, vector<2x64xf32> -> vector<2x64xf32>
      %c0_21 = arith.constant 0 : index
      %c0_22 = arith.constant 0 : index
      %27 = vector.load %arg5[%c0_21, %c0_22] : memref<1x64xf32, #tpu.memory_space<vmem>>, vector<1x64xf32>
      %28 = vector.broadcast %27 : vector<1x64xf32> to vector<2x64xf32>
      %29 = arith.addf %26, %28 : vector<2x64xf32>
      %cst_23 = arith.constant 0.000000e+00 : f32
      %30 = vector.broadcast %cst_23 : f32 to vector<2x64xf32>
      %31 = arith.subf %30, %29 : vector<2x64xf32>
      %32 = math.exp %31 : vector<2x64xf32>
      %cst_24 = arith.constant 1.000000e+00 : f32
      %33 = vector.broadcast %cst_24 : f32 to vector<2x64xf32>
      %34 = arith.addf %33, %32 : vector<2x64xf32>
      %cst_25 = arith.constant 1.000000e+00 : f32
      %35 = vector.broadcast %cst_25 : f32 to vector<2x64xf32>
      %36 = arith.divf %35, %34 : vector<2x64xf32>
      %37 = arith.mulf %29, %36 : vector<2x64xf32>
      %c0_26 = arith.constant 0 : index
      %c0_27 = arith.constant 0 : index
      %38 = vector.load %arg9[%c0_26, %c0_27] : memref<2x64xf32, #tpu.memory_space<vmem>>, vector<2x64xf32>
      tpu.vector_store %arg9[%c0_26, %c0_27], %37 {strides = array<i32>} : memref<2x64xf32, #tpu.memory_space<vmem>>, vector<2x64xf32>,
    } else {
    }
    %c0 = arith.constant 0 : index
    %c0_1 = arith.constant 0 : index
    %3 = vector.load %arg9[%c0, %c0_1] : memref<2x64xf32, #tpu.memory_space<vmem>>, vector<2x64xf32>
    %4 = arith.truncf %3 : vector<2x64xf32> to vector<2x64xbf16>
    %c0_2 = arith.constant 0 : index
    %c0_3 = arith.constant 0 : index
    %5 = vector.load %arg6[%c0_2, %c0_3] : memref<64x128xbf16, #tpu.memory_space<vmem>>, vector<64x128xbf16>
    %cst = arith.constant dense<0.000000e+00> : vector<2x128xf32>
    %6 = tpu.matmul %4, %5, %cst {dimension_numbers = #tpu.dot_dimension_numbers<[1], [0], [0], [1], [0, 0, 1, 1], [], []>} : vector<2x64xbf16>, vector<64x128xbf16>, vector<2x128xf32> -> vector<2x128xf32>
    %c0_4 = arith.constant 0 : index
    %c0_5 = arith.constant 0 : index
    %7 = vector.load %arg7[%c0_4, %c0_5] : memref<1x128xf32, #tpu.memory_space<vmem>>, vector<1x128xf32>
    %8 = vector.broadcast %7 : vector<1x128xf32> to vector<2x128xf32>
    %9 = arith.addf %6, %8 : vector<2x128xf32>
    %c0_6 = arith.constant 0 : index
    %c0_7 = arith.constant 0 : index
    %10 = vector.load %arg8[%c0_6, %c0_7] : memref<2x128xf32, #tpu.memory_space<vmem>>, vector<2x128xf32>
    tpu.vector_store %arg8[%c0_6, %c0_7], %9 {strides = array<i32>} : memref<2x128xf32, #tpu.memory_space<vmem>>, vector<2x128xf32>,
    return
  }
  func.func @transform_0(%arg0: i32) -> (i32, i32) {
    %c0_i32 = arith.constant 0 : i32
    %c0_i32_0 = arith.constant 0 : i32
    %c0_i32_1 = arith.constant 0 : i32
    return %c0_i32, %c0_i32_0 : i32, i32
  }
  func.func @transform_1(%arg0: i32) -> (i32, i32) {
    %c0_i32 = arith.constant 0 : i32
    %c0_i32_0 = arith.constant 0 : i32
    %c0_i32_1 = arith.constant 0 : i32
    return %c0_i32, %c0_i32_0 : i32, i32
  }
  func.func @transform_2(%arg0: i32) -> (i32, i32) {
    %c0_i32 = arith.constant 0 : i32
    %c0_i32_0 = arith.constant 0 : i32
    %c0_i32_1 = arith.constant 0 : i32
    return %c0_i32, %c0_i32_0 : i32, i32
  }
  func.func @transform_3(%arg0: i32) -> (i32, i32) {
    %c0_i32 = arith.constant 0 : i32
    %c0_i32_0 = arith.constant 0 : i32
    %c0_i32_1 = arith.constant 0 : i32
    return %c0_i32, %c0_i32_0 : i32, i32
  }
  func.func @transform_4(%arg0: i32) -> (i32, i32) {
    %c0_i32 = arith.constant 0 : i32
    %c0_i32_0 = arith.constant 0 : i32
    %c0_i32_1 = arith.constant 0 : i32
    return %c0_i32, %c0_i32_0 : i32, i32
  }
  func.func @transform_5(%arg0: i32) -> (i32, i32) {
    %c0_i32 = arith.constant 0 : i32
    %c0_i32_0 = arith.constant 0 : i32
    return %c0_i32, %arg0 : i32, i32
  }
  func.func @transform_6(%arg0: i32) -> (i32, i32) {
    %c0_i32 = arith.constant 0 : i32
    %c0_i32_0 = arith.constant 0 : i32
    return %c0_i32, %arg0 : i32, i32
  }
  func.func @transform_7(%arg0: i32) -> (i32, i32) {
    %c0_i32 = arith.constant 0 : i32
    %c0_i32_0 = arith.constant 0 : i32
    return %c0_i32, %arg0 : i32, i32
  }
}

module attributes {stable_mosaic.version = 11 : i64} {
  func.func @_final_kernel(%arg0: i32, %arg1: memref<1x16x64xf32, #tpu.memory_space<vmem>>, %arg2: memref<1x2x64xf32, #tpu.memory_space<vmem>>, %arg3: memref<64x64xbf16, #tpu.memory_space<vmem>>, %arg4: memref<1x64xf32, #tpu.memory_space<vmem>>, %arg5: memref<1x16x64xf32, #tpu.memory_space<vmem>>) attributes {dimension_semantics = [#tpu.dimension_semantics<parallel>], iteration_bounds = array<i64: 2>, scalar_prefetch = 0 : i64, scratch_operands = 0 : i64, tpu.core_type = #tpu.core_type<tc>, window_params = [{transform_indices = @transform_0, window_bounds = array<i64: 1, 16, 64>}, {transform_indices = @transform_1, window_bounds = array<i64: 1, 2, 64>}, {pipeline_mode = #tpu.pipeline_mode<synchronous>, transform_indices = @transform_2, window_bounds = array<i64: 64, 64>}, {pipeline_mode = #tpu.pipeline_mode<synchronous>, transform_indices = @transform_3, window_bounds = array<i64: 1, 64>}, {transform_indices = @transform_4, window_bounds = array<i64: 1, 16, 64>}]} {
    %c0 = arith.constant 0 : index
    %c0_0 = arith.constant 0 : index
    %c0_1 = arith.constant 0 : index
    %0 = vector.load %arg2[%c0, %c0_0, %c0_1] : memref<1x2x64xf32, #tpu.memory_space<vmem>>, vector<1x1x64xf32>
    %1 = vector.shape_cast %0 : vector<1x1x64xf32> to vector<1x64xf32>
    %c0_2 = arith.constant 0 : index
    %c1 = arith.constant 1 : index
    %c0_3 = arith.constant 0 : index
    %2 = vector.load %arg2[%c0_2, %c1, %c0_3] : memref<1x2x64xf32, #tpu.memory_space<vmem>>, vector<1x1x64xf32>
    %3 = vector.shape_cast %2 : vector<1x1x64xf32> to vector<1x64xf32>
    %c0_4 = arith.constant 0 : index
    %c0_5 = arith.constant 0 : index
    %c0_6 = arith.constant 0 : index
    %4 = vector.load %arg1[%c0_4, %c0_5, %c0_6] : memref<1x16x64xf32, #tpu.memory_space<vmem>>, vector<1x16x64xf32>
    %5 = vector.shape_cast %4 : vector<1x16x64xf32> to vector<16x64xf32>
    %cst = arith.constant dense<0.000000e+00> : vector<16xf32>
    %6 = vector.multi_reduction <add>, %5, %cst [1] : vector<16x64xf32> to vector<16xf32>
    %7 = vector.shape_cast %6 : vector<16xf32> to vector<16x1xf32>
    %cst_7 = arith.constant 6.400000e+01 : f32
    %8 = vector.broadcast %cst_7 : f32 to vector<16x1xf32>
    %9 = arith.divf %7, %8 : vector<16x1xf32>
    %10 = vector.broadcast %9 : vector<16x1xf32> to vector<16x64xf32>
    %11 = arith.subf %5, %10 : vector<16x64xf32>
    %12 = arith.mulf %11, %11 : vector<16x64xf32>
    %cst_8 = arith.constant dense<0.000000e+00> : vector<16xf32>
    %13 = vector.multi_reduction <add>, %12, %cst_8 [1] : vector<16x64xf32> to vector<16xf32>
    %14 = vector.shape_cast %13 : vector<16xf32> to vector<16x1xf32>
    %cst_9 = arith.constant 6.400000e+01 : f32
    %15 = vector.broadcast %cst_9 : f32 to vector<16x1xf32>
    %16 = arith.divf %14, %15 : vector<16x1xf32>
    %17 = vector.broadcast %9 : vector<16x1xf32> to vector<16x64xf32>
    %18 = arith.subf %5, %17 : vector<16x64xf32>
    %cst_10 = arith.constant 9.99999997E-7 : f32
    %19 = vector.broadcast %cst_10 : f32 to vector<16x1xf32>
    %20 = arith.addf %16, %19 : vector<16x1xf32>
    %21 = math.rsqrt %20 : vector<16x1xf32>
    %22 = vector.broadcast %21 : vector<16x1xf32> to vector<16x64xf32>
    %23 = arith.mulf %18, %22 : vector<16x64xf32>
    %cst_11 = arith.constant 1.000000e+00 : f32
    %24 = vector.broadcast %cst_11 : f32 to vector<1x64xf32>
    %25 = arith.addf %24, %3 : vector<1x64xf32>
    %26 = vector.broadcast %25 : vector<1x64xf32> to vector<16x64xf32>
    %27 = arith.mulf %23, %26 : vector<16x64xf32>
    %28 = vector.broadcast %1 : vector<1x64xf32> to vector<16x64xf32>
    %29 = arith.addf %27, %28 : vector<16x64xf32>
    %30 = arith.truncf %29 : vector<16x64xf32> to vector<16x64xbf16>
    %c0_12 = arith.constant 0 : index
    %c0_13 = arith.constant 0 : index
    %31 = vector.load %arg3[%c0_12, %c0_13] : memref<64x64xbf16, #tpu.memory_space<vmem>>, vector<64x64xbf16>
    %cst_14 = arith.constant dense<0.000000e+00> : vector<16x64xf32>
    %32 = tpu.matmul %30, %31, %cst_14 {dimension_numbers = #tpu.dot_dimension_numbers<[1], [0], [0], [1], [0, 0, 1, 1], [], []>} : vector<16x64xbf16>, vector<64x64xbf16>, vector<16x64xf32> -> vector<16x64xf32>
    %c0_15 = arith.constant 0 : index
    %c0_16 = arith.constant 0 : index
    %33 = vector.load %arg4[%c0_15, %c0_16] : memref<1x64xf32, #tpu.memory_space<vmem>>, vector<1x64xf32>
    %34 = vector.broadcast %33 : vector<1x64xf32> to vector<16x64xf32>
    %35 = arith.addf %32, %34 : vector<16x64xf32>
    %c0_17 = arith.constant 0 : index
    %c0_18 = arith.constant 0 : index
    %c0_19 = arith.constant 0 : index
    %36 = vector.load %arg5[%c0_17, %c0_18, %c0_19] : memref<1x16x64xf32, #tpu.memory_space<vmem>>, vector<1x16x64xf32>
    %37 = vector.shape_cast %36 : vector<1x16x64xf32> to vector<16x64xf32>
    %38 = vector.shape_cast %35 : vector<16x64xf32> to vector<1x16x64xf32>
    tpu.vector_store %arg5[%c0_17, %c0_18, %c0_19], %38 {strides = array<i32>} : memref<1x16x64xf32, #tpu.memory_space<vmem>>, vector<1x16x64xf32>,
    return
  }
  func.func @transform_0(%arg0: i32) -> (i32, i32, i32) {
    %c0_i32 = arith.constant 0 : i32
    %c0_i32_0 = arith.constant 0 : i32
    %c0_i32_1 = arith.constant 0 : i32
    return %arg0, %c0_i32, %c0_i32_0 : i32, i32, i32
  }
  func.func @transform_1(%arg0: i32) -> (i32, i32, i32) {
    %c0_i32 = arith.constant 0 : i32
    %c0_i32_0 = arith.constant 0 : i32
    %c0_i32_1 = arith.constant 0 : i32
    return %arg0, %c0_i32, %c0_i32_0 : i32, i32, i32
  }
  func.func @transform_2(%arg0: i32) -> (i32, i32) {
    %c0_i32 = arith.constant 0 : i32
    %c0_i32_0 = arith.constant 0 : i32
    %c0_i32_1 = arith.constant 0 : i32
    return %c0_i32, %c0_i32_0 : i32, i32
  }
  func.func @transform_3(%arg0: i32) -> (i32, i32) {
    %c0_i32 = arith.constant 0 : i32
    %c0_i32_0 = arith.constant 0 : i32
    %c0_i32_1 = arith.constant 0 : i32
    return %c0_i32, %c0_i32_0 : i32, i32
  }
  func.func @transform_4(%arg0: i32) -> (i32, i32, i32) {
    %c0_i32 = arith.constant 0 : i32
    %c0_i32_0 = arith.constant 0 : i32
    %c0_i32_1 = arith.constant 0 : i32
    return %arg0, %c0_i32, %c0_i32_0 : i32, i32, i32
  }
}

module attributes {stable_mosaic.version = 11 : i64} {
  func.func @_dit_block_kernel(%arg0: i32, %arg1: memref<1x16x64xf32, #tpu.memory_space<vmem>>, %arg2: memref<1x6x64xf32, #tpu.memory_space<vmem>>, %arg3: memref<64x64xbf16, #tpu.memory_space<vmem>>, %arg4: memref<1x64xf32, #tpu.memory_space<vmem>>, %arg5: memref<64x64xbf16, #tpu.memory_space<vmem>>, %arg6: memref<1x64xf32, #tpu.memory_space<vmem>>, %arg7: memref<64x64xbf16, #tpu.memory_space<vmem>>, %arg8: memref<1x64xf32, #tpu.memory_space<vmem>>, %arg9: memref<64x64xbf16, #tpu.memory_space<vmem>>, %arg10: memref<1x64xf32, #tpu.memory_space<vmem>>, %arg11: memref<64x256xbf16, #tpu.memory_space<vmem>>, %arg12: memref<1x256xf32, #tpu.memory_space<vmem>>, %arg13: memref<256x64xbf16, #tpu.memory_space<vmem>>, %arg14: memref<1x64xf32, #tpu.memory_space<vmem>>, %arg15: memref<1x16x64xf32, #tpu.memory_space<vmem>>) attributes {dimension_semantics = [#tpu.dimension_semantics<parallel>], iteration_bounds = array<i64: 2>, scalar_prefetch = 0 : i64, scratch_operands = 0 : i64, tpu.core_type = #tpu.core_type<tc>, window_params = [{transform_indices = @transform_0, window_bounds = array<i64: 1, 16, 64>}, {transform_indices = @transform_1, window_bounds = array<i64: 1, 6, 64>}, {pipeline_mode = #tpu.pipeline_mode<synchronous>, transform_indices = @transform_2, window_bounds = array<i64: 64, 64>}, {pipeline_mode = #tpu.pipeline_mode<synchronous>, transform_indices = @transform_3, window_bounds = array<i64: 1, 64>}, {pipeline_mode = #tpu.pipeline_mode<synchronous>, transform_indices = @transform_4, window_bounds = array<i64: 64, 64>}, {pipeline_mode = #tpu.pipeline_mode<synchronous>, transform_indices = @transform_5, window_bounds = array<i64: 1, 64>}, {pipeline_mode = #tpu.pipeline_mode<synchronous>, transform_indices = @transform_6, window_bounds = array<i64: 64, 64>}, {pipeline_mode = #tpu.pipeline_mode<synchronous>, transform_indices = @transform_7, window_bounds = array<i64: 1, 64>}, {pipeline_mode = #tpu.pipeline_mode<synchronous>, transform_indices = @transform_8, window_bounds = array<i64: 64, 64>}, {pipeline_mode = #tpu.pipeline_mode<synchronous>, transform_indices = @transform_9, window_bounds = array<i64: 1, 64>}, {pipeline_mode = #tpu.pipeline_mode<synchronous>, transform_indices = @transform_10, window_bounds = array<i64: 64, 256>}, {pipeline_mode = #tpu.pipeline_mode<synchronous>, transform_indices = @transform_11, window_bounds = array<i64: 1, 256>}, {pipeline_mode = #tpu.pipeline_mode<synchronous>, transform_indices = @transform_12, window_bounds = array<i64: 256, 64>}, {pipeline_mode = #tpu.pipeline_mode<synchronous>, transform_indices = @transform_13, window_bounds = array<i64: 1, 64>}, {transform_indices = @transform_14, window_bounds = array<i64: 1, 16, 64>}]} {
    %c0 = arith.constant 0 : index
    %c0_0 = arith.constant 0 : index
    %c0_1 = arith.constant 0 : index
    %0 = vector.load %arg1[%c0, %c0_0, %c0_1] : memref<1x16x64xf32, #tpu.memory_space<vmem>>, vector<1x16x64xf32>
    %1 = vector.shape_cast %0 : vector<1x16x64xf32> to vector<16x64xf32>
    %c0_2 = arith.constant 0 : index
    %c0_3 = arith.constant 0 : index
    %c0_4 = arith.constant 0 : index
    %2 = vector.load %arg2[%c0_2, %c0_3, %c0_4] : memref<1x6x64xf32, #tpu.memory_space<vmem>>, vector<1x1x64xf32>
    %3 = vector.shape_cast %2 : vector<1x1x64xf32> to vector<1x64xf32>
    %c0_5 = arith.constant 0 : index
    %c1 = arith.constant 1 : index
    %c0_6 = arith.constant 0 : index
    %4 = vector.load %arg2[%c0_5, %c1, %c0_6] : memref<1x6x64xf32, #tpu.memory_space<vmem>>, vector<1x1x64xf32>
    %5 = vector.shape_cast %4 : vector<1x1x64xf32> to vector<1x64xf32>
    %c0_7 = arith.constant 0 : index
    %c2 = arith.constant 2 : index
    %c0_8 = arith.constant 0 : index
    %6 = vector.load %arg2[%c0_7, %c2, %c0_8] : memref<1x6x64xf32, #tpu.memory_space<vmem>>, vector<1x1x64xf32>
    %7 = vector.shape_cast %6 : vector<1x1x64xf32> to vector<1x64xf32>
    %c0_9 = arith.constant 0 : index
    %c3 = arith.constant 3 : index
    %c0_10 = arith.constant 0 : index
    %8 = vector.load %arg2[%c0_9, %c3, %c0_10] : memref<1x6x64xf32, #tpu.memory_space<vmem>>, vector<1x1x64xf32>
    %9 = vector.shape_cast %8 : vector<1x1x64xf32> to vector<1x64xf32>
    %c0_11 = arith.constant 0 : index
    %c4 = arith.constant 4 : index
    %c0_12 = arith.constant 0 : index
    %10 = vector.load %arg2[%c0_11, %c4, %c0_12] : memref<1x6x64xf32, #tpu.memory_space<vmem>>, vector<1x1x64xf32>
    %11 = vector.shape_cast %10 : vector<1x1x64xf32> to vector<1x64xf32>
    %c0_13 = arith.constant 0 : index
    %c5 = arith.constant 5 : index
    %c0_14 = arith.constant 0 : index
    %12 = vector.load %arg2[%c0_13, %c5, %c0_14] : memref<1x6x64xf32, #tpu.memory_space<vmem>>, vector<1x1x64xf32>
    %13 = vector.shape_cast %12 : vector<1x1x64xf32> to vector<1x64xf32>
    %cst = arith.constant dense<0.000000e+00> : vector<16xf32>
    %14 = vector.multi_reduction <add>, %1, %cst [1] : vector<16x64xf32> to vector<16xf32>
    %15 = vector.shape_cast %14 : vector<16xf32> to vector<16x1xf32>
    %cst_15 = arith.constant 6.400000e+01 : f32
    %16 = vector.broadcast %cst_15 : f32 to vector<16x1xf32>
    %17 = arith.divf %15, %16 : vector<16x1xf32>
    %18 = vector.broadcast %17 : vector<16x1xf32> to vector<16x64xf32>
    %19 = arith.subf %1, %18 : vector<16x64xf32>
    %20 = arith.mulf %19, %19 : vector<16x64xf32>
    %cst_16 = arith.constant dense<0.000000e+00> : vector<16xf32>
    %21 = vector.multi_reduction <add>, %20, %cst_16 [1] : vector<16x64xf32> to vector<16xf32>
    %22 = vector.shape_cast %21 : vector<16xf32> to vector<16x1xf32>
    %cst_17 = arith.constant 6.400000e+01 : f32
    %23 = vector.broadcast %cst_17 : f32 to vector<16x1xf32>
    %24 = arith.divf %22, %23 : vector<16x1xf32>
    %25 = vector.broadcast %17 : vector<16x1xf32> to vector<16x64xf32>
    %26 = arith.subf %1, %25 : vector<16x64xf32>
    %cst_18 = arith.constant 9.99999997E-7 : f32
    %27 = vector.broadcast %cst_18 : f32 to vector<16x1xf32>
    %28 = arith.addf %24, %27 : vector<16x1xf32>
    %29 = math.rsqrt %28 : vector<16x1xf32>
    %30 = vector.broadcast %29 : vector<16x1xf32> to vector<16x64xf32>
    %31 = arith.mulf %26, %30 : vector<16x64xf32>
    %cst_19 = arith.constant 1.000000e+00 : f32
    %32 = vector.broadcast %cst_19 : f32 to vector<1x64xf32>
    %33 = arith.addf %32, %5 : vector<1x64xf32>
    %34 = vector.broadcast %33 : vector<1x64xf32> to vector<16x64xf32>
    %35 = arith.mulf %31, %34 : vector<16x64xf32>
    %36 = vector.broadcast %3 : vector<1x64xf32> to vector<16x64xf32>
    %37 = arith.addf %35, %36 : vector<16x64xf32>
    %38 = arith.truncf %37 : vector<16x64xf32> to vector<16x64xbf16>
    %c0_20 = arith.constant 0 : index
    %c0_21 = arith.constant 0 : index
    %39 = vector.load %arg3[%c0_20, %c0_21] : memref<64x64xbf16, #tpu.memory_space<vmem>>, vector<64x64xbf16>
    %cst_22 = arith.constant dense<0.000000e+00> : vector<16x64xf32>
    %40 = tpu.matmul %38, %39, %cst_22 {dimension_numbers = #tpu.dot_dimension_numbers<[1], [0], [0], [1], [0, 0, 1, 1], [], []>} : vector<16x64xbf16>, vector<64x64xbf16>, vector<16x64xf32> -> vector<16x64xf32>
    %c0_23 = arith.constant 0 : index
    %c0_24 = arith.constant 0 : index
    %41 = vector.load %arg4[%c0_23, %c0_24] : memref<1x64xf32, #tpu.memory_space<vmem>>, vector<1x64xf32>
    %42 = vector.broadcast %41 : vector<1x64xf32> to vector<16x64xf32>
    %43 = arith.addf %40, %42 : vector<16x64xf32>
    %c0_25 = arith.constant 0 : index
    %c0_26 = arith.constant 0 : index
    %44 = vector.load %arg5[%c0_25, %c0_26] : memref<64x64xbf16, #tpu.memory_space<vmem>>, vector<64x64xbf16>
    %cst_27 = arith.constant dense<0.000000e+00> : vector<16x64xf32>
    %45 = tpu.matmul %38, %44, %cst_27 {dimension_numbers = #tpu.dot_dimension_numbers<[1], [0], [0], [1], [0, 0, 1, 1], [], []>} : vector<16x64xbf16>, vector<64x64xbf16>, vector<16x64xf32> -> vector<16x64xf32>
    %c0_28 = arith.constant 0 : index
    %c0_29 = arith.constant 0 : index
    %46 = vector.load %arg6[%c0_28, %c0_29] : memref<1x64xf32, #tpu.memory_space<vmem>>, vector<1x64xf32>
    %47 = vector.broadcast %46 : vector<1x64xf32> to vector<16x64xf32>
    %48 = arith.addf %45, %47 : vector<16x64xf32>
    %c0_30 = arith.constant 0 : index
    %c0_31 = arith.constant 0 : index
    %49 = vector.load %arg7[%c0_30, %c0_31] : memref<64x64xbf16, #tpu.memory_space<vmem>>, vector<64x64xbf16>
    %cst_32 = arith.constant dense<0.000000e+00> : vector<16x64xf32>
    %50 = tpu.matmul %38, %49, %cst_32 {dimension_numbers = #tpu.dot_dimension_numbers<[1], [0], [0], [1], [0, 0, 1, 1], [], []>} : vector<16x64xbf16>, vector<64x64xbf16>, vector<16x64xf32> -> vector<16x64xf32>
    %c0_33 = arith.constant 0 : index
    %c0_34 = arith.constant 0 : index
    %51 = vector.load %arg8[%c0_33, %c0_34] : memref<1x64xf32, #tpu.memory_space<vmem>>, vector<1x64xf32>
    %52 = vector.broadcast %51 : vector<1x64xf32> to vector<16x64xf32>
    %53 = arith.addf %50, %52 : vector<16x64xf32>
    %54 = vector.shape_cast %43 : vector<16x64xf32> to vector<16x4x16xf32>
    %55 = tpu.transpose %54, [1, 0, 2] : vector<16x4x16xf32> -> vector<4x16x16xf32>
    %56 = arith.truncf %55 : vector<4x16x16xf32> to vector<4x16x16xbf16>
    %57 = vector.shape_cast %48 : vector<16x64xf32> to vector<16x4x16xf32>
    %58 = tpu.transpose %57, [1, 0, 2] : vector<16x4x16xf32> -> vector<4x16x16xf32>
    %59 = arith.truncf %58 : vector<4x16x16xf32> to vector<4x16x16xbf16>
    %60 = vector.shape_cast %53 : vector<16x64xf32> to vector<16x4x16xf32>
    %61 = tpu.transpose %60, [1, 0, 2] : vector<16x4x16xf32> -> vector<4x16x16xf32>
    %62 = arith.truncf %61 : vector<4x16x16xf32> to vector<4x16x16xbf16>
    "tpu.trace_start"() <{level = 10 : i32, message = "hqd,hkd->hqk"}> : () -> ()
    %cst_35 = arith.constant dense<0.000000e+00> : vector<4x16x16xf32>
    %63 = tpu.matmul %56, %59, %cst_35 {dimension_numbers = #tpu.dot_dimension_numbers<[2], [2], [1], [1], [0, 0, 0, 1, 1, 1], [0], [0]>} : vector<4x16x16xbf16>, vector<4x16x16xbf16>, vector<4x16x16xf32> -> vector<4x16x16xf32>
    "tpu.trace_stop"() : () -> ()
    %cst_36 = arith.constant 2.500000e-01 : f32
    %64 = vector.broadcast %cst_36 : f32 to vector<4x16x16xf32>
    %65 = arith.mulf %63, %64 : vector<4x16x16xf32>
    %cst_37 = arith.constant dense<0xFF800000> : vector<4x16xf32>
    %66 = vector.multi_reduction <maximumf>, %65, %cst_37 [2] : vector<4x16x16xf32> to vector<4x16xf32>
    %67 = vector.shape_cast %66 : vector<4x16xf32> to vector<4x16x1xf32>
    %68 = vector.broadcast %67 : vector<4x16x1xf32> to vector<4x16x16xf32>
    %69 = arith.subf %65, %68 : vector<4x16x16xf32>
    %70 = math.exp %69 : vector<4x16x16xf32>
    %cst_38 = arith.constant dense<0.000000e+00> : vector<4x16xf32>
    %71 = vector.multi_reduction <add>, %70, %cst_38 [2] : vector<4x16x16xf32> to vector<4x16xf32>
    %72 = vector.shape_cast %71 : vector<4x16xf32> to vector<4x16x1xf32>
    %73 = tpu.reciprocal %72 {approx = true} : vector<4x16x1xf32> -> vector<4x16x1xf32>
    %74 = vector.broadcast %73 : vector<4x16x1xf32> to vector<4x16x16xf32>
    %75 = arith.mulf %70, %74 : vector<4x16x16xf32>
    %76 = arith.truncf %75 : vector<4x16x16xf32> to vector<4x16x16xbf16>
    "tpu.trace_start"() <{level = 10 : i32, message = "hqk,hkd->hqd"}> : () -> ()
    %cst_39 = arith.constant dense<0.000000e+00> : vector<4x16x16xf32>
    %77 = tpu.matmul %76, %62, %cst_39 {dimension_numbers = #tpu.dot_dimension_numbers<[2], [1], [1], [2], [0, 0, 0, 1, 1, 2], [0], [0]>} : vector<4x16x16xbf16>, vector<4x16x16xbf16>, vector<4x16x16xf32> -> vector<4x16x16xf32>
    "tpu.trace_stop"() : () -> ()
    %78 = tpu.transpose %77, [1, 0, 2] : vector<4x16x16xf32> -> vector<16x4x16xf32>
    %79 = vector.shape_cast %78 : vector<16x4x16xf32> to vector<16x64xf32>
    %80 = arith.truncf %79 : vector<16x64xf32> to vector<16x64xbf16>
    %c0_40 = arith.constant 0 : index
    %c0_41 = arith.constant 0 : index
    %81 = vector.load %arg9[%c0_40, %c0_41] : memref<64x64xbf16, #tpu.memory_space<vmem>>, vector<64x64xbf16>
    %cst_42 = arith.constant dense<0.000000e+00> : vector<16x64xf32>
    %82 = tpu.matmul %80, %81, %cst_42 {dimension_numbers = #tpu.dot_dimension_numbers<[1], [0], [0], [1], [0, 0, 1, 1], [], []>} : vector<16x64xbf16>, vector<64x64xbf16>, vector<16x64xf32> -> vector<16x64xf32>
    %c0_43 = arith.constant 0 : index
    %c0_44 = arith.constant 0 : index
    %83 = vector.load %arg10[%c0_43, %c0_44] : memref<1x64xf32, #tpu.memory_space<vmem>>, vector<1x64xf32>
    %84 = vector.broadcast %83 : vector<1x64xf32> to vector<16x64xf32>
    %85 = arith.addf %82, %84 : vector<16x64xf32>
    %86 = vector.broadcast %7 : vector<1x64xf32> to vector<16x64xf32>
    %87 = arith.mulf %86, %85 : vector<16x64xf32>
    %88 = arith.addf %1, %87 : vector<16x64xf32>
    %cst_45 = arith.constant dense<0.000000e+00> : vector<16xf32>
    %89 = vector.multi_reduction <add>, %88, %cst_45 [1] : vector<16x64xf32> to vector<16xf32>
    %90 = vector.shape_cast %89 : vector<16xf32> to vector<16x1xf32>
    %cst_46 = arith.constant 6.400000e+01 : f32
    %91 = vector.broadcast %cst_46 : f32 to vector<16x1xf32>
    %92 = arith.divf %90, %91 : vector<16x1xf32>
    %93 = vector.broadcast %92 : vector<16x1xf32> to vector<16x64xf32>
    %94 = arith.subf %88, %93 : vector<16x64xf32>
    %95 = arith.mulf %94, %94 : vector<16x64xf32>
    %cst_47 = arith.constant dense<0.000000e+00> : vector<16xf32>
    %96 = vector.multi_reduction <add>, %95, %cst_47 [1] : vector<16x64xf32> to vector<16xf32>
    %97 = vector.shape_cast %96 : vector<16xf32> to vector<16x1xf32>
    %cst_48 = arith.constant 6.400000e+01 : f32
    %98 = vector.broadcast %cst_48 : f32 to vector<16x1xf32>
    %99 = arith.divf %97, %98 : vector<16x1xf32>
    %100 = vector.broadcast %92 : vector<16x1xf32> to vector<16x64xf32>
    %101 = arith.subf %88, %100 : vector<16x64xf32>
    %cst_49 = arith.constant 9.99999997E-7 : f32
    %102 = vector.broadcast %cst_49 : f32 to vector<16x1xf32>
    %103 = arith.addf %99, %102 : vector<16x1xf32>
    %104 = math.rsqrt %103 : vector<16x1xf32>
    %105 = vector.broadcast %104 : vector<16x1xf32> to vector<16x64xf32>
    %106 = arith.mulf %101, %105 : vector<16x64xf32>
    %cst_50 = arith.constant 1.000000e+00 : f32
    %107 = vector.broadcast %cst_50 : f32 to vector<1x64xf32>
    %108 = arith.addf %107, %11 : vector<1x64xf32>
    %109 = vector.broadcast %108 : vector<1x64xf32> to vector<16x64xf32>
    %110 = arith.mulf %106, %109 : vector<16x64xf32>
    %111 = vector.broadcast %9 : vector<1x64xf32> to vector<16x64xf32>
    %112 = arith.addf %110, %111 : vector<16x64xf32>
    %113 = arith.truncf %112 : vector<16x64xf32> to vector<16x64xbf16>
    %c0_51 = arith.constant 0 : index
    %c0_52 = arith.constant 0 : index
    %114 = vector.load %arg11[%c0_51, %c0_52] : memref<64x256xbf16, #tpu.memory_space<vmem>>, vector<64x256xbf16>
    %cst_53 = arith.constant dense<0.000000e+00> : vector<16x256xf32>
    %115 = tpu.matmul %113, %114, %cst_53 {dimension_numbers = #tpu.dot_dimension_numbers<[1], [0], [0], [1], [0, 0, 1, 1], [], []>} : vector<16x64xbf16>, vector<64x256xbf16>, vector<16x256xf32> -> vector<16x256xf32>
    %c0_54 = arith.constant 0 : index
    %c0_55 = arith.constant 0 : index
    %116 = vector.load %arg12[%c0_54, %c0_55] : memref<1x256xf32, #tpu.memory_space<vmem>>, vector<1x256xf32>
    %117 = vector.broadcast %116 : vector<1x256xf32> to vector<16x256xf32>
    %118 = arith.addf %115, %117 : vector<16x256xf32>
    %cst_56 = arith.constant 5.000000e-01 : f32
    %119 = vector.broadcast %cst_56 : f32 to vector<16x256xf32>
    %120 = arith.mulf %119, %118 : vector<16x256xf32>
    %cst_57 = arith.constant 0.707106769 : f32
    %121 = vector.broadcast %cst_57 : f32 to vector<16x256xf32>
    %122 = arith.mulf %118, %121 : vector<16x256xf32>
    %123 = math.erf %122 : vector<16x256xf32>
    %cst_58 = arith.constant 1.000000e+00 : f32
    %124 = vector.broadcast %cst_58 : f32 to vector<16x256xf32>
    %125 = arith.addf %124, %123 : vector<16x256xf32>
    %126 = arith.mulf %120, %125 : vector<16x256xf32>
    %127 = arith.truncf %126 : vector<16x256xf32> to vector<16x256xbf16>
    %c0_59 = arith.constant 0 : index
    %c0_60 = arith.constant 0 : index
    %128 = vector.load %arg13[%c0_59, %c0_60] : memref<256x64xbf16, #tpu.memory_space<vmem>>, vector<256x64xbf16>
    %cst_61 = arith.constant dense<0.000000e+00> : vector<16x64xf32>
    %129 = tpu.matmul %127, %128, %cst_61 {dimension_numbers = #tpu.dot_dimension_numbers<[1], [0], [0], [1], [0, 0, 1, 1], [], []>} : vector<16x256xbf16>, vector<256x64xbf16>, vector<16x64xf32> -> vector<16x64xf32>
    %c0_62 = arith.constant 0 : index
    %c0_63 = arith.constant 0 : index
    %130 = vector.load %arg14[%c0_62, %c0_63] : memref<1x64xf32, #tpu.memory_space<vmem>>, vector<1x64xf32>
    %131 = vector.broadcast %130 : vector<1x64xf32> to vector<16x64xf32>
    %132 = arith.addf %129, %131 : vector<16x64xf32>
    %133 = vector.broadcast %13 : vector<1x64xf32> to vector<16x64xf32>
    %134 = arith.mulf %133, %132 : vector<16x64xf32>
    %135 = arith.addf %88, %134 : vector<16x64xf32>
    %c0_64 = arith.constant 0 : index
    %c0_65 = arith.constant 0 : index
    %c0_66 = arith.constant 0 : index
    %136 = vector.load %arg15[%c0_64, %c0_65, %c0_66] : memref<1x16x64xf32, #tpu.memory_space<vmem>>, vector<1x16x64xf32>
    %137 = vector.shape_cast %136 : vector<1x16x64xf32> to vector<16x64xf32>
    %138 = vector.shape_cast %135 : vector<16x64xf32> to vector<1x16x64xf32>
    tpu.vector_store %arg15[%c0_64, %c0_65, %c0_66], %138 {strides = array<i32>} : memref<1x16x64xf32, #tpu.memory_space<vmem>>, vector<1x16x64xf32>,
    return
  }
  func.func @transform_0(%arg0: i32) -> (i32, i32, i32) {
    %c0_i32 = arith.constant 0 : i32
    %c0_i32_0 = arith.constant 0 : i32
    %c0_i32_1 = arith.constant 0 : i32
    return %arg0, %c0_i32, %c0_i32_0 : i32, i32, i32
  }
  func.func @transform_1(%arg0: i32) -> (i32, i32, i32) {
    %c0_i32 = arith.constant 0 : i32
    %c0_i32_0 = arith.constant 0 : i32
    %c0_i32_1 = arith.constant 0 : i32
    return %arg0, %c0_i32, %c0_i32_0 : i32, i32, i32
  }
  func.func @transform_2(%arg0: i32) -> (i32, i32) {
    %c0_i32 = arith.constant 0 : i32
    %c0_i32_0 = arith.constant 0 : i32
    %c0_i32_1 = arith.constant 0 : i32
    return %c0_i32, %c0_i32_0 : i32, i32
  }
  func.func @transform_3(%arg0: i32) -> (i32, i32) {
    %c0_i32 = arith.constant 0 : i32
    %c0_i32_0 = arith.constant 0 : i32
    %c0_i32_1 = arith.constant 0 : i32
    return %c0_i32, %c0_i32_0 : i32, i32
  }
  func.func @transform_4(%arg0: i32) -> (i32, i32) {
    %c0_i32 = arith.constant 0 : i32
    %c0_i32_0 = arith.constant 0 : i32
    %c0_i32_1 = arith.constant 0 : i32
    return %c0_i32, %c0_i32_0 : i32, i32
  }
  func.func @transform_5(%arg0: i32) -> (i32, i32) {
    %c0_i32 = arith.constant 0 : i32
    %c0_i32_0 = arith.constant 0 : i32
    %c0_i32_1 = arith.constant 0 : i32
    return %c0_i32, %c0_i32_0 : i32, i32
  }
  func.func @transform_6(%arg0: i32) -> (i32, i32) {
    %c0_i32 = arith.constant 0 : i32
    %c0_i32_0 = arith.constant 0 : i32
    %c0_i32_1 = arith.constant 0 : i32
    return %c0_i32, %c0_i32_0 : i32, i32
  }
  func.func @transform_7(%arg0: i32) -> (i32, i32) {
    %c0_i32 = arith.constant 0 : i32
    %c0_i32_0 = arith.constant 0 : i32
    %c0_i32_1 = arith.constant 0 : i32
    return %c0_i32, %c0_i32_0 : i32, i32
  }
  func.func @transform_8(%arg0: i32) -> (i32, i32) {
    %c0_i32 = arith.constant 0 : i32
    %c0_i32_0 = arith.constant 0 : i32
    %c0_i32_1 = arith.constant 0 : i32
    return %c0_i32, %c0_i32_0 : i32, i32
  }
  func.func @transform_9(%arg0: i32) -> (i32, i32) {
    %c0_i32 = arith.constant 0 : i32
    %c0_i32_0 = arith.constant 0 : i32
    %c0_i32_1 = arith.constant 0 : i32
    return %c0_i32, %c0_i32_0 : i32, i32
  }
  func.func @transform_10(%arg0: i32) -> (i32, i32) {
    %c0_i32 = arith.constant 0 : i32
    %c0_i32_0 = arith.constant 0 : i32
    %c0_i32_1 = arith.constant 0 : i32
    return %c0_i32, %c0_i32_0 : i32, i32
  }
  func.func @transform_11(%arg0: i32) -> (i32, i32) {
    %c0_i32 = arith.constant 0 : i32
    %c0_i32_0 = arith.constant 0 : i32
    %c0_i32_1 = arith.constant 0 : i32
    return %c0_i32, %c0_i32_0 : i32, i32
  }
  func.func @transform_12(%arg0: i32) -> (i32, i32) {
    %c0_i32 = arith.constant 0 : i32
    %c0_i32_0 = arith.constant 0 : i32
    %c0_i32_1 = arith.constant 0 : i32
    return %c0_i32, %c0_i32_0 : i32, i32
  }
  func.func @transform_13(%arg0: i32) -> (i32, i32) {
    %c0_i32 = arith.constant 0 : i32
    %c0_i32_0 = arith.constant 0 : i32
    %c0_i32_1 = arith.constant 0 : i32
    return %c0_i32, %c0_i32_0 : i32, i32
  }
  func.func @transform_14(%arg0: i32) -> (i32, i32, i32) {
    %c0_i32 = arith.constant 0 : i32
    %c0_i32_0 = arith.constant 0 : i32
    %c0_i32_1 = arith.constant 0 : i32
    return %arg0, %c0_i32, %c0_i32_0 : i32, i32, i32
  }
}

</mosaic_0001>

<bundles_post_ra>
// kernel: dit_forward.7
= control target key start
LH: loop header
LB: loop body
LE: loop exit
PB: predicated region body
PF: predicated region fallthrough
CT: control target
= control target key end

     0   :  { %8 = vsyncpa [#allocation3], 0  ;;  %s618_s12 = smov 0   ;;  %s647_s0 = inlined_call_operand.vmem [shape: f32[2,16,64], index: 0, kind: input, shape index: {}]   ;;  %s648_s1 = inlined_call_operand.hbm [shape: bf16[64,512], index: 1, kind: input, shape index: {}]   ;;  %s649_s2 = inlined_call_operand.vmem [shape: f32[1,512], index: 2, kind: input, shape index: {}]   ;;  %s650_s3 = inlined_call_operand.vmem [shape: f32[2,16,512], index: 3, kind: output, shape index: {}]  }
   0x1 LB: > { %s124_s15 = sshll.u32 %s648_s1, 4  ;;  %s433_s16 = sadd.s32 4294967295, %s593_s12   ;;  %s593_s12 = sphi %s618_s12, %s14_s12   ;;  %s125_s15 = int_to_ptr.hbm [resolvable:$true] %s124_s15 }
   0x2   : > { %p435_p0 = scmp.ge.s32.totalorder %s593_s12, 1  ;;  %p113_p1 = scmp.lt.s32.totalorder %s593_s12, 3 }
   0x3   : > { %p540_p2 = scmp.eq.s32.totalorder %s433_s16, 0  ;;  %s595_s17 = smov [#allocation2]  }
   0x4   : > { %p114_p3 = pnand %p435_p0, %p113_p1  ;;  %s126_s18 = sshll.u32 %s595_s17, 4  ;;  %s127_s18 = int_to_ptr.vmem [resolvable:$true] %s126_s18 }
   0x5   : > { %s596_s19 = smov 256   ;;  %s597_s20 = smov 16  }
   0x6   : > { %p536_p4 = pneg %p114_p3  ;;  %153 = sbr.rel (%p114_p3) target bundleno = 176 (0xb0), region = 32 }
   0x8   : > { %p537_p5 = pnand %p540_p2, %p536_p4 }
   0xa   : > { %539 = dma.hbm_to_vmem [thread:$0]  (!%p537_p5), %s125_s15, 2048, %s127_s18, [#allocation3], %s596_s19, %s596_s19, %s597_s20  }
   0xb   : > { %588 = dma.done.wait (%p540_p2), [#allocation3], 2048  }
   0xc   : > { %590 = vsyncadd (%p540_p2), [#allocation3], 4294965248  ;;  %p178_p6 = scmp.lt.s32.totalorder %s433_s16, 1  ;;  %v494_v0 = vld [vmem:[#allocation2 + $0x60] sm:$0xf]  ;;  %vm298_vm0 = vcmask 523264  }
   0xd   : > { %v530_v1 = vld [vmem:[#allocation2 + $0x6c] sm:$0xf0]  ;;  %v528_v2 = vld [vmem:[#allocation2 + $0x64] sm:$0xf]  ;;  %v496_v4 = vld [vmem:[#allocation2 + $0x70] sm:$0xf0] }
   0xe   : > { %s652_s16 = smov (!%p178_p6, %s433_s16), 1  ;;  %v495_v3 = vor.u32 %v530_v1, %v494_v0  ;;  %v502_v5 = vld [vmem:[#allocation2 + $0x68] sm:$0xf]  ;;  %v531_v6 = vld [vmem:[#allocation2 + $0x74] sm:$0xf0]  ;;  %v499_v7 = vor.u32 %v528_v2, %v496_v4 }
   0xf   : > { %s514_s21 = sshll.u32 %s652_s16, 4  ;;  %v503_v8 = vor.u32 %v531_v6, %v502_v5  ;;  %v529_v9 = vld [vmem:[#allocation2 + $0x6c] sm:$0xf]  ;;  %v504_v10 = vld [vmem:[#allocation2 + $0x78] sm:$0xf0]  ;;  %s515_s27 = sshll.u32 %s652_s16, 6 }
  0x10   : > { %v478_v11 = vld [vmem:[#allocation2 + $0x40] sm:$0xf]  ;;  %306 = vmatpush.bf16.msra.mxu0 %v495_v3  ;;  %v507_v12 = vor.u32 %v529_v9, %v504_v10  ;;  %v526_v13 = vld [vmem:[#allocation2 + $0x4c] sm:$0xf0]  ;;  %v524_v14 = vld [vmem:[#allocation2 + $0x44] sm:$0xf]  ;;  %320 = vmatpush.bf16.msra.mxu1 %v499_v7  ;;  %s182_s24 = scalar_lea.vmem %s647_s0, %s514_s21  ;;  %s187_s30 = scalar_lea.vmem %s650_s3, %s515_s27 }
  0x11   : > { %v480_v15 = vld [vmem:[#allocation2 + $0x50] sm:$0xf0]  ;;  %334 = vmatpush.bf16.msra.mxu2 %v503_v8  ;;  %v479_v16 = vor.u32 %v526_v13, %v478_v11  ;;  %v486_v18 = vld [vmem:[#allocation2 + $0x48] sm:$0xf]  ;;  %v527_v19 = vld [vmem:[#allocation2 + $0x54] sm:$0xf0] }
  0x12   : > { %v483_v17 = vor.u32 %v524_v14, %v480_v15  ;;  %v525_v20 = vld [vmem:[#allocation2 + $0x4c] sm:$0xf]  ;;  %348 = vmatpush.bf16.msra.mxu3 %v507_v12  ;;  %v487_v21 = vor.u32 %v527_v19, %v486_v18  ;;  %v488_v22 = vld [vmem:[#allocation2 + $0x58] sm:$0xf0]  ;;  %v462_v23 = vld [vmem:[#allocation2 + $0x20] sm:$0xf] }
  0x13   : > { %v522_v24 = vld [vmem:[#allocation2 + $0x2c] sm:$0xf0]  ;;  %v491_v25 = vor.u32 %v525_v20, %v488_v22  ;;  %v520_v26 = vld [vmem:[#allocation2 + $0x24] sm:$0xf]  ;;  %v464_v27 = vld [vmem:[#allocation2 + $0x30] sm:$0xf0] }
  0x14   : > { %v470_v28 = vld [vmem:[#allocation2 + $0x28] sm:$0xf]  ;;  %307 = vmatpush.bf16.msra.mxu0 %v479_v16  ;;  %v463_v29 = vor.u32 %v522_v24, %v462_v23  ;;  %v523_v30 = vld [vmem:[#allocation2 + $0x34] sm:$0xf0]  ;;  %v521_v31 = vld [vmem:[#allocation2 + $0x2c] sm:$0xf]  ;;  %321 = vmatpush.bf16.msra.mxu1 %v483_v17  ;;  %v467_v33 = vor.u32 %v520_v26, %v464_v27 }
  0x15   : > { %v472_v32 = vld [vmem:[#allocation2 + $0x38] sm:$0xf0]  ;;  %335 = vmatpush.bf16.msra.mxu2 %v487_v21  ;;  %v471_v34 = vor.u32 %v523_v30, %v470_v28  ;;  %v446_v35 = vld [vmem:[#allocation2] sm:$0xf]  ;;  %v518_v36 = vld [vmem:[#allocation2 + $0xc] sm:$0xf0] }
  0x16   : > { %v516_v37 = vld [vmem:[#allocation2 + $0x4] sm:$0xf]  ;;  %349 = vmatpush.bf16.msra.mxu3 %v491_v25  ;;  %v475_v38 = vor.u32 %v521_v31, %v472_v32  ;;  %v448_v39 = vld [vmem:[#allocation2 + $0x10] sm:$0xf0]  ;;  %v454_v40 = vld [vmem:[#allocation2 + $0x8] sm:$0xf]  ;;  %v447_v44 = vor.u32 %v518_v36, %v446_v35 }
  0x17   : > { %v519_v41 = vld [vmem:[#allocation2 + $0x14] sm:$0xf0]  ;;  %v517_v42 = vld [vmem:[#allocation2 + $0xc] sm:$0xf]  ;;  %v456_v43 = vld [vmem:[#allocation2 + $0x18] sm:$0xf0]  ;;  %v451_v47 = vor.u32 %v516_v37, %v448_v39 }
  0x18   : > { %308 = vmatpush.bf16.msra.mxu0 %v463_v29  ;;  %v189_v45 = vld [vmem:[%s182_s24] sm:$0xff]  ;;  %v190_v46 = vld [vmem:[%s182_s24 + $0x8] sm:$0xff]  ;;  %322 = vmatpush.bf16.msra.mxu1 %v467_v33  ;;  %v455_v48 = vor.u32 %v519_v41, %v454_v40  ;;  %v459_v49 = vor.u32 %v517_v42, %v456_v43 }
  0x19   : > { %336 = vmatpush.bf16.msra.mxu2 %v471_v34  ;;  %v191_v50 = vpack.c.bf16 %v190_v46, %v189_v45  ;;  %v208_v51 = vld [vmem:[%s649_s2] sm:$0xf] }
  0x1a   : > { %350 = vmatpush.bf16.msra.mxu3 %v475_v38  ;;  %v210_v52 = vperm.slane %v208_v51, 0  ;;  %v211_v53 = vperm.slane %v208_v51, 1  ;;  %v212_v58 = vperm.slane %v208_v51, 2  ;;  %v213_v59 = vperm.slane %v208_v51, 3 }
  0x1c   : > { %309 = vmatpush.bf16.msra.mxu0 %v447_v44  ;;  %323 = vmatpush.bf16.msra.mxu1 %v451_v47 }
  0x1d   : > { %337 = vmatpush.bf16.msra.mxu2 %v455_v48 }
  0x1e   : > { %351 = vmatpush.bf16.msra.mxu3 %v459_v49 }
  0x1f   : > { %508 = vmatmul.msk.bf16.vlgmr.msra.gmra.mxu0 %vm298_vm0, %v191_v50  ;;  %509 = vmatmul.msk.bf16.vlgmr.msra.gmra.mxu1 %vm298_vm0, %v191_v50 }
  0x20   : > { %510 = vmatmul.msk.bf16.vlgmr.msra.gmra.mxu2 %vm298_vm0, %v191_v50 }
  0x21   : > { %511 = vmatmul.msk.bf16.vlgmr.msra.gmra.mxu3 %vm298_vm0, %v191_v50 }
  0x9c   : > { %v311_v54 = vpop.f32.mrf.mxu0  ;;  %v325_v56 = vpop.f32.mrf.mxu1 }
  0x9d   : > { %v312_v55 = vadd.f32 %v311_v54, %v210_v52  ;;  %v326_v57 = vadd.f32 %v325_v56, %v211_v53 }
  0x9f   : > { %358 = vst [vmem:[%s187_s30] sm:$0xff] %v312_v55 }
  0xa0   : > { %359 = vst [vmem:[%s187_s30 + $0x8] sm:$0xff] %v326_v57 }
  0xa3   : > { %v339_v60 = vpop.f32.mrf.mxu2 }
  0xa4   : > { %v340_v61 = vadd.f32 %v339_v60, %v212_v58  ;;  %v353_v62 = vpop.f32.mrf.mxu3  ;;  %v313_v63 = vpop.f32.mrf.mxu0 }
  0xa5   : > { %v354_v0 = vadd.f32 %v353_v62, %v213_v59  ;;  %v314_v1 = vadd.f32 %v313_v63, %v210_v52  ;;  %v327_v2 = vpop.f32.mrf.mxu1 }
  0xa6   : > { %360 = vst [vmem:[%s187_s30 + $0x10] sm:$0xff] %v340_v61  ;;  %v328_v3 = vadd.f32 %v327_v2, %v211_v53 }
  0xa7   : > { %361 = vst [vmem:[%s187_s30 + $0x18] sm:$0xff] %v354_v0 }
  0xa8   : > { %362 = vst [vmem:[%s187_s30 + $0x20] sm:$0xff] %v314_v1 }
  0xa9   : > { %363 = vst [vmem:[%s187_s30 + $0x28] sm:$0xff] %v328_v3 }
  0xab   : > { %v341_v4 = vpop.f32.mrf.mxu2 }
  0xac   : > { %v342_v5 = vadd.f32 %v341_v4, %v212_v58  ;;  %v355_v6 = vpop.f32.mrf.mxu3 }
  0xad   : > { %v356_v7 = vadd.f32 %v355_v6, %v213_v59 }
  0xae   : > { %364 = vst [vmem:[%s187_s30 + $0x30] sm:$0xff] %v342_v5 }
  0xaf   : > { %365 = vst [vmem:[%s187_s30 + $0x38] sm:$0xff] %v356_v7 }
  0xb0 PF: > { %s14_s12 = sadd.s32 1, %s593_s12  }
  0xb1   : > { %p11_p7 = scmp.ge.s32.totalorder %s14_s12, 4  }
  0xb3   :  { %13 = sbr.rel (!%p11_p7) target bundleno = 1 (0x1), region = 67 }
  0xb8   :  { %387 = vsyncpa [#allocation3], 1 }
  0xb9   :  { %389 = vsyncpa [#allocation3 + $0x1], 1 }

// kernel: dit_forward.8
= control target key start
LH: loop header
LB: loop body
LE: loop exit
PB: predicated region body
PF: predicated region fallthrough
CT: control target
= control target key end

     0   :  { %s783_s15 = smov 0   ;;  %s851_s0 = inlined_call_operand.vmem [shape: bf16[2,4,16,64], index: 0, kind: input, shape index: {}]   ;;  %s852_s1 = inlined_call_operand.vmem [shape: bf16[2,4,64,16], index: 1, kind: input, shape index: {}]   ;;  %s853_s2 = inlined_call_operand.vmem [shape: f32[2,4,16,16], index: 2, kind: input, shape index: {}]   ;;  %s854_s3 = inlined_call_operand.vmem [shape: f32[2,16,16], index: 3, kind: input, shape index: {}]   ;;  %s855_s4 = inlined_call_operand.vmem [shape: f32[2,4,16,16], index: 4, kind: output, shape index: {}]  }
   0x1 LB: > { %s616_s16 = sadd.s32 4294967295, %s756_s15   ;;  %p620_p0 = scmp.ge.s32.totalorder %s756_s15, 1  ;;  %s756_s15 = sphi %s783_s15, %s14_s15  }
   0x2   : > { %p192_p1 = scmp.lt.s32.totalorder %s756_s15, 3 }
   0x4   : > { %p193_p2 = pnand %p620_p0, %p192_p1 }
   0x5   : > { %p233_p3 = scmp.lt.s32.totalorder (!%p193_p2), %s616_s16, 1 }
   0x6   : > { %196 = sbr.rel (%p193_p2) target bundleno = 177 (0xb1), region = 36 }
   0xb   : > { %s857_s16 = smov (!%p233_p3, %s616_s16), 1  ;;  %vm328_vm0 = vcmask 523264   ;;  %vm516_vm2 = vcmask 130048  }
   0xc   : > { %s718_s17 = sshll.u32 %s857_s16, 7  ;;  %s717_s21 = sshll.u32 %s857_s16, 5 }
   0xd   : > { %s242_s20 = scalar_lea.vmem %s852_s1, %s718_s17  ;;  %s237_s24 = scalar_lea.vmem %s851_s0, %s717_s21 }
   0xe   : > { %v729_v0 = vld [vmem:[%s242_s20 + $0x18] sm:$0xff]  ;;  %v728_v4 = vld [vmem:[%s242_s20 + $0x10] sm:$0xff]  ;;  %v727_v8 = vld [vmem:[%s242_s20 + $0x8] sm:$0xff]  ;;  %s720_s25 = sshll.u32 %s857_s16, 4  ;;  %s719_s26 = sshll.u32 %s857_s16, 6 }
   0xf   : > { %v733_v1 = vld [vmem:[%s242_s20 + $0x38] sm:$0xff]  ;;  %336 = vmatpush.bf16.msra.mxu0 %v729_v0  ;;  %v732_v5 = vld [vmem:[%s242_s20 + $0x30] sm:$0xff]  ;;  %v731_v9 = vld [vmem:[%s242_s20 + $0x28] sm:$0xff]  ;;  %s252_s29 = scalar_lea.vmem %s854_s3, %s720_s25  ;;  %s809_s6 = scalar_lea.vmem %s853_s2, %s719_s26 }
  0x10   : > { %v737_v2 = vld [vmem:[%s242_s20 + $0x58] sm:$0xff]  ;;  %382 = vmatpush.bf16.msra.mxu1 %v733_v1  ;;  %v736_v6 = vld [vmem:[%s242_s20 + $0x50] sm:$0xff]  ;;  %v735_v10 = vld [vmem:[%s242_s20 + $0x48] sm:$0xff]  ;;  %s816_s9 = scalar_lea.vmem %s855_s4, %s719_s26 }
  0x11   : > { %v741_v3 = vld [vmem:[%s242_s20 + $0x78] sm:$0xff]  ;;  %428 = vmatpush.bf16.msra.mxu2 %v737_v2  ;;  %v740_v7 = vld [vmem:[%s242_s20 + $0x70] sm:$0xff]  ;;  %v739_v11 = vld [vmem:[%s242_s20 + $0x68] sm:$0xff] }
  0x12   : > { %474 = vmatpush.bf16.msra.mxu3 %v741_v3  ;;  %v726_v12 = vld [vmem:[%s242_s20] sm:$0xff]  ;;  %v723_v17 = vld [vmem:[%s237_s24 + $0x8] sm:$0xff]  ;;  %v724_v18 = vld [vmem:[%s237_s24 + $0x10] sm:$0xff] }
  0x13   : > { %337 = vmatpush.bf16.msra.mxu0 %v728_v4  ;;  %v730_v13 = vld [vmem:[%s242_s20 + $0x20] sm:$0xff]  ;;  %v725_v19 = vld [vmem:[%s237_s24 + $0x18] sm:$0xff]  ;;  %v486_v22 = vld [vmem:[%s809_s6 + $0x10] sm:$0xff] }
  0x14   : > { %383 = vmatpush.bf16.msra.mxu1 %v732_v5  ;;  %v734_v14 = vld [vmem:[%s242_s20 + $0x40] sm:$0xff]  ;;  %v490_v30 = vld [vmem:[%s809_s6 + $0x30] sm:$0xff]  ;;  %v501_v31 = vld [vmem:[%s252_s29 + $0x8] sm:$0xff] }
  0x15   : > { %429 = vmatpush.bf16.msra.mxu2 %v736_v6  ;;  %v738_v15 = vld [vmem:[%s242_s20 + $0x60] sm:$0xff]  ;;  %v485_v32 = vld [vmem:[%s809_s6 + $0x8] sm:$0xff]  ;;  %v487_v33 = vld [vmem:[%s809_s6 + $0x18] sm:$0xff]  ;;  %vm503_vm3 = vcmp.eq.f32.partialorder %v501_v31, 0.0 }
  0x16   : > { %475 = vmatpush.bf16.msra.mxu3 %v740_v7  ;;  %v722_v16 = vld [vmem:[%s237_s24] sm:$0xff]  ;;  %v489_v46 = vld [vmem:[%s809_s6 + $0x28] sm:$0xff]  ;;  %v491_v47 = vld [vmem:[%s809_s6 + $0x38] sm:$0xff] }
  0x17   : > { %338 = vmatpush.bf16.msra.mxu0 %v727_v8  ;;  %v500_v20 = vld [vmem:[%s252_s29] sm:$0xff] }
  0x18   : > { %384 = vmatpush.bf16.msra.mxu1 %v731_v9  ;;  %v484_v21 = vld [vmem:[%s809_s6] sm:$0xff]  ;;  %vm502_vm1 = vcmp.eq.f32.partialorder %v500_v20, 0.0 }
  0x19   : > { %430 = vmatpush.bf16.msra.mxu2 %v735_v10  ;;  %v488_v29 = vld [vmem:[%s809_s6 + $0x20] sm:$0xff] }
  0x1a   : > { %476 = vmatpush.bf16.msra.mxu3 %v739_v11 }
  0x1b   : > { %339 = vmatpush.bf16.msra.mxu0 %v726_v12 }
  0x1c   : > { %385 = vmatpush.bf16.msra.mxu1 %v730_v13 }
  0x1d   : > { %431 = vmatpush.bf16.msra.mxu2 %v734_v14 }
  0x1e   : > { %477 = vmatpush.bf16.msra.mxu3 %v738_v15  ;;  %651 = vmatmul.msk.bf16.vlgmr.msra.gmra.mxu0 %vm328_vm0, %v722_v16 }
  0x1f   : > { %672 = vmatmul.msk.bf16.vlgmr.msra.gmra.mxu1 %vm328_vm0, %v723_v17 }
  0x20   : > { %693 = vmatmul.msk.bf16.vlgmr.msra.gmra.mxu2 %vm328_vm0, %v724_v18 }
  0x21   : > { %714 = vmatmul.msk.bf16.vlgmr.msra.gmra.mxu3 %vm328_vm0, %v725_v19 }
  0x9b   : > { %v341_v23 = vpop.f32.mrf.mxu0 }
  0x9c   : > { %v387_v24 = vpop.f32.mrf.mxu1  ;;  %v492_v25 = vadd.f32 %v484_v21, %v341_v23 }
  0x9d   : > { %v494_v26 = vadd.f32 %v486_v22, %v387_v24 }
  0x9e   : > { %v508_v27 = vsel %vm502_vm1, 0.0, %v492_v25 }
  0x9f   : > { %v510_v28 = vsel %vm502_vm1, 0.0, %v494_v26  ;;  %517 = vst.msk [vmem:[%s816_s9] sm:$0xff] %vm516_vm2, %v508_v27 }
  0xa0   : > { %519 = vst.msk [vmem:[%s816_s9 + $0x10] sm:$0xff] %vm516_vm2, %v510_v28 }
  0xa3   : > { %v433_v34 = vpop.f32.mrf.mxu2  ;;  %v343_v38 = vpop.f32.mrf.mxu0 }
  0xa4   : > { %v479_v35 = vpop.f32.mrf.mxu3  ;;  %v496_v36 = vadd.f32 %v488_v29, %v433_v34  ;;  %v389_v39 = vpop.f32.mrf.mxu1  ;;  %v493_v40 = vadd.f32 %v485_v32, %v343_v38 }
  0xa5   : > { %v498_v37 = vadd.f32 %v490_v30, %v479_v35  ;;  %v495_v41 = vadd.f32 %v487_v33, %v389_v39 }
  0xa6   : > { %v512_v42 = vsel %vm502_vm1, 0.0, %v496_v36  ;;  %v509_v44 = vsel %vm503_vm3, 0.0, %v493_v40 }
  0xa7   : > { %v514_v43 = vsel %vm502_vm1, 0.0, %v498_v37  ;;  %521 = vst.msk [vmem:[%s816_s9 + $0x20] sm:$0xff] %vm516_vm2, %v512_v42  ;;  %v511_v45 = vsel %vm503_vm3, 0.0, %v495_v41 }
  0xa8   : > { %523 = vst.msk [vmem:[%s816_s9 + $0x30] sm:$0xff] %vm516_vm2, %v514_v43 }
  0xa9   : > { %518 = vst.msk [vmem:[%s816_s9 + $0x8] sm:$0xff] %vm516_vm2, %v509_v44 }
  0xaa   : > { %520 = vst.msk [vmem:[%s816_s9 + $0x18] sm:$0xff] %vm516_vm2, %v511_v45 }
  0xab   : > { %v435_v48 = vpop.f32.mrf.mxu2 }
  0xac   : > { %v481_v49 = vpop.f32.mrf.mxu3  ;;  %v497_v50 = vadd.f32 %v489_v46, %v435_v48 }
  0xad   : > { %v499_v51 = vadd.f32 %v491_v47, %v481_v49 }
  0xae   : > { %v513_v52 = vsel %vm503_vm3, 0.0, %v497_v50 }
  0xaf   : > { %v515_v53 = vsel %vm503_vm3, 0.0, %v499_v51  ;;  %522 = vst.msk [vmem:[%s816_s9 + $0x28] sm:$0xff] %vm516_vm2, %v513_v52 }
  0xb0   : > { %524 = vst.msk [vmem:[%s816_s9 + $0x38] sm:$0xff] %vm516_vm2, %v515_v53 }
  0xb1 PF: > { %s14_s15 = sadd.s32 1, %s756_s15  }
  0xb2   : > { %p11_p4 = scmp.ge.s32.totalorder %s14_s15, 4  }
  0xb4   :  { %13 = sbr.rel (!%p11_p4) target bundleno = 1 (0x1), region = 75 }

// kernel: dit_forward.9
= control target key start
LH: loop header
LB: loop body
LE: loop exit
PB: predicated region body
PF: predicated region fallthrough
CT: control target
= control target key end

     0   :  { %s393_s15 = smov 0   ;;  %s431_s0 = inlined_call_operand.vmem [shape: f32[2,16,64], index: 0, kind: input, shape index: {}]   ;;  %s432_s1 = inlined_call_operand.vmem [shape: bf16[64,64], index: 1, kind: input, shape index: {}]   ;;  %s433_s2 = inlined_call_operand.vmem [shape: f32[1,64], index: 2, kind: input, shape index: {}]   ;;  %s434_s3 = inlined_call_operand.vmem [shape: f32[16,64], index: 3, kind: input, shape index: {}]   ;;  %s435_s4 = inlined_call_operand.vmem [shape: f32[2,16,64], index: 4, kind: output, shape index: {}]  }
   0x1 LB: > { %s317_s16 = sadd.s32 4294967295, %s366_s15   ;;  %p321_p0 = scmp.ge.s32.totalorder %s366_s15, 1  ;;  %s366_s15 = sphi %s393_s15, %s14_s15  }
   0x2   : > { %p162_p1 = scmp.lt.s32.totalorder %s366_s15, 3 }
   0x4   : > { %p163_p2 = pnand %p321_p0, %p162_p1 }
   0x5   : > { %p188_p3 = scmp.lt.s32.totalorder (!%p163_p2), %s317_s16, 1 }
   0x6   : > { %166 = sbr.rel (%p163_p2) target bundleno = 166 (0xa6), region = 36 }
   0xb   : > { %v350_v0 = vld [vmem:[%s432_s1 + $0x18] sm:$0xff]  ;;  %v349_v1 = vld [vmem:[%s432_s1 + $0x10] sm:$0xff]  ;;  %s437_s16 = smov (!%p188_p3, %s317_s16), 1  ;;  %v348_v2 = vld [vmem:[%s432_s1 + $0x8] sm:$0xff]  ;;  %vm238_vm0 = vcmask 523264  }
   0xc   : > { %246 = vmatpush.bf16.msra.mxu0 %v350_v0  ;;  %s345_s21 = sshll.u32 %s437_s16, 4  ;;  %v347_v3 = vld [vmem:[%s432_s1] sm:$0xff]  ;;  %v257_v13 = vld [vmem:[%s434_s3 + $0x8] sm:$0xff] }
   0xd   : > { %s192_s26 = scalar_lea.vmem %s431_s0, %s345_s21  ;;  %v359_v7 = vld [vmem:[%s433_s2] ss:$0 sm:$0xff]  ;;  %s197_s9 = scalar_lea.vmem %s435_s4, %s345_s21 }
   0xe   : > { %v199_v4 = vld [vmem:[%s192_s26] sm:$0xff]  ;;  %v200_v5 = vld [vmem:[%s192_s26 + $0x8] sm:$0xff] }
   0xf   : > { %v201_v6 = vpack.c.bf16 %v200_v5, %v199_v4  ;;  %v256_v9 = vld [vmem:[%s434_s3] sm:$0xff] }
  0x10   : > { %247 = vmatpush.bf16.msra.mxu0 %v349_v1 }
  0x14   : > { %248 = vmatpush.bf16.msra.mxu0 %v348_v2 }
  0x18   : > { %249 = vmatpush.bf16.msra.mxu0 %v347_v3 }
  0x1b   : > { %342 = vmatmul.msk.bf16.vlgmr.msra.gmra.mxu0 %vm238_vm0, %v201_v6 }
  0x98   : > { %v251_v8 = vpop.f32.mrf.mxu0 }
  0x99   : > { %v252_v10 = vadd.f32 %v359_v7, %v251_v8 }
  0x9b   : > { %v258_v11 = vadd.f32 %v256_v9, %v252_v10 }
  0x9d   : > { %260 = vst.msk [vmem:[%s197_s9] sm:$0xff] %vm238_vm0, %v258_v11 }
  0xa0   : > { %v253_v12 = vpop.f32.mrf.mxu0 }
  0xa1   : > { %v254_v14 = vadd.f32 %v359_v7, %v253_v12 }
  0xa3   : > { %v259_v15 = vadd.f32 %v257_v13, %v254_v14 }
  0xa5   : > { %261 = vst.msk [vmem:[%s197_s9 + $0x8] sm:$0xff] %vm238_vm0, %v259_v15 }
  0xa6 PF: > { %s14_s15 = sadd.s32 1, %s366_s15  }
  0xa7   : > { %p11_p4 = scmp.ge.s32.totalorder %s14_s15, 4  }
  0xa9   :  { %13 = sbr.rel (!%p11_p4) target bundleno = 1 (0x1), region = 66 }

// kernel: dit_forward.10
= control target key start
LH: loop header
LB: loop body
LE: loop exit
PB: predicated region body
PF: predicated region fallthrough
CT: control target
= control target key end

     0   :  { %s746_s24 = smov 0   ;;  %s748_s25 = smov 0   ;;  %s882_s0 = inlined_call_operand.vmem [shape: f32[2,65], index: 0, kind: input, shape index: {}]   ;;  %s883_s1 = inlined_call_operand.vmem [shape: f32[65,64], index: 1, kind: input, shape index: {}]   ;;  %s884_s2 = inlined_call_operand.vmem [shape: f32[1,64], index: 2, kind: input, shape index: {}]   ;;  %s885_s3 = inlined_call_operand.vmem [shape: f32[64,64], index: 3, kind: input, shape index: {}]   ;;  %s886_s4 = inlined_call_operand.vmem [shape: f32[1,64], index: 4, kind: input, shape index: {}]   ;;  %s887_s5 = inlined_call_operand.vmem [shape: bf16[64,896], index: 5, kind: input, shape index: {}]   ;;  %s888_s6 = inlined_call_operand.vmem [shape: f32[1,896], index: 6, kind: input, shape index: {}]   ;;  %s889_s7 = inlined_call_operand.vmem [shape: f32[2,896], index: 7, kind: output, shape index: {}]  }
   0x1   :  { %s750_s26 = smov 0  }
   0x2 LB: > { %s762_s27 = sadd.s32 4294967295, %s704_s26   ;;  %s765_s28 = sadd.s32 1, %s704_s26   ;;  %s704_s26 = sphi %s750_s26, %s892_s26   ;;  %s700_s25 = sphi %s748_s25, %s891_s25   ;;  %s696_s24 = sphi %s746_s24, %s890_s24  }
   0x3   : > { %s126_s29 = ssub.s32 %s704_s26, %s765_s28  ;;  %s129_s30 = sadd.s32 1, %s700_s25 }
   0x4   : > { %p127_p0 = scmp.eq.s32.totalorder %s126_s29, 0  ;;  %p136_p1 = scmp.ne.s32.totalorder %s700_s25, %s696_s24 }
   0x5   : > { %p137_p2 = scmp.eq.s32.totalorder %s704_s26, 0  ;;  %p614_p4 = scmp.ge.s32.totalorder %s704_s26, 7 }
   0x6   : > { %s774_s8 = scalar_select %p127_p0, %s700_s25, %s129_s30  }
   0x7   : > { %p138_p3 = por %p137_p2, %p136_p1  ;;  %229 = sbr.rel (%p614_p4) target bundleno = 24 (0x18), region = 36 }
   0xc   : > { %232 = sbr.rel (!%p138_p3) target bundleno = 24 (0x18), region = 40  ;;  %s234_s9 = sand.u32 (%p138_p3), 1, %s700_s25  }
   0xd   : > { %s616_s10 = sshll.u32 (%p138_p3), %s704_s26, 2  ;;  %s615_s11 = sshll.u32 (%p138_p3), %s234_s9, 5 }
   0xe   : > { %s238_s14 = scalar_lea.vmem (%p138_p3), %s887_s5, %s616_s10  ;;  %s236_s15 = scalar_lea.vmem (%p138_p3), [#allocation3], %s615_s11 }
   0xf   : > { %v255_v0 = vld [vmem:[%s238_s14] sm:$0xf] (%p138_p3)  ;;  %v257_v1 = vld [vmem:[%s238_s14 + $0x1c] sm:$0xf] (%p138_p3)  ;;  %v259_v2 = vld [vmem:[%s238_s14 + $0x38] sm:$0xf] (%p138_p3) }
  0x10   : > { %256 = vst [vmem:[%s236_s15] sm:$0xf] (%p138_p3), %v255_v0  ;;  %v261_v3 = vld [vmem:[%s238_s14 + $0x54] sm:$0xf] (%p138_p3)  ;;  %v263_v4 = vld [vmem:[%s238_s14 + $0x70] sm:$0xf] (%p138_p3) }
  0x11   : > { %258 = vst [vmem:[%s236_s15 + $0x4] sm:$0xf] %v257_v1  ;;  %v265_v5 = vld [vmem:[%s238_s14 + $0x8c] sm:$0xf]  ;;  %v267_v6 = vld [vmem:[%s238_s14 + $0xa8] sm:$0xf] }
  0x12   : > { %260 = vst [vmem:[%s236_s15 + $0x8] sm:$0xf] %v259_v2  ;;  %v269_v7 = vld [vmem:[%s238_s14 + $0xc4] sm:$0xf] }
  0x13   : > { %262 = vst [vmem:[%s236_s15 + $0xc] sm:$0xf] %v261_v3 }
  0x14   : > { %264 = vst [vmem:[%s236_s15 + $0x10] sm:$0xf] %v263_v4 }
  0x15   : > { %266 = vst [vmem:[%s236_s15 + $0x14] sm:$0xf] %v265_v5 }
  0x16   : > { %268 = vst [vmem:[%s236_s15 + $0x18] sm:$0xf] %v267_v6 }
  0x17   : > { %270 = vst [vmem:[%s236_s15 + $0x1c] sm:$0xf] %v269_v7 }
  0x18 PF: > { %p617_p5 = scmp.ge.s32.totalorder %s704_s26, 1  ;;  %p315_p6 = scmp.lt.s32.totalorder %s704_s26, 8 }
  0x1a   : > { %p316_p7 = pnand %p617_p5, %p315_p6 }
  0x1b   : > { %s322_s16 = sand.u32 (!%p316_p7), 1, %s696_s24   ;;  %p355_p8 = scmp.lt.s32.totalorder (!%p316_p7), %s762_s27, 6 }
  0x1c   : > { %319 = sbr.rel (%p316_p7) target bundleno = 528 (0x210), region = 85  ;;  %s618_s17 = sshll.u32 (!%p316_p7), %s322_s16, 5 }
  0x1d   : > { %s799_s30 = scalar_lea.vmem (!%p316_p7), [#allocation3], %s618_s17  ;;  %p620_p9 = scmp.ne.s32.totalorder (!%p316_p7), %s762_s27, 0 }
  0x21   : > { %s787_s18 = scalar_select %p355_p8, %s762_s27, 6 }
  0x22   : > { %366 = sbr.rel (%p620_p9) target bundleno = 378 (0x17a), region = 93 }
  0x23   : > { %s357_s21 = scalar_lea.vmem %s888_s6, %s787_s18  ;;  %s619_s22 = sshll.u32 %s787_s18, 1 }
  0x24   : > { %s797_s26 = scalar_lea.vmem %s889_s7, %s619_s22 }
  0x27   : > { %v376_v8 = vld [vmem:[%s883_s1 + $0x40] sm:$0x1]  ;;  %vm385_vm0 = vcmask 1040384   ;;  %v375_v9 = vld [vmem:[%s883_s1 + $0x38] sm:$0xff]  ;;  %v374_v10 = vld [vmem:[%s883_s1 + $0x30] sm:$0xff]  ;;  %vm381_vm1 = vcmask 531456  }
  0x28   : > { %621 = vmatpush.msk.msra.mxu0 %vm385_vm0, %v376_v8  ;;  %v373_v11 = vld [vmem:[%s883_s1 + $0x28] sm:$0xff]  ;;  %v372_v12 = vld [vmem:[%s883_s1 + $0x20] sm:$0xff]  ;;  %v371_v13 = vld [vmem:[%s883_s1 + $0x18] sm:$0xff]  ;;  %vm441_vm6 = vcmask 523264   ;;  %vm485_vm11 = vcmask 517120  }
  0x29   : > { %v370_v14 = vld [vmem:[%s883_s1 + $0x10] sm:$0xff]  ;;  %v369_v15 = vld [vmem:[%s883_s1 + $0x8] sm:$0xff]  ;;  %v368_v16 = vld [vmem:[%s883_s1] sm:$0xff] }
  0x2a   : > { %397 = vmatpush.msra.mxu0 %v375_v9  ;;  %v367_v17 = vld [vmem:[%s882_s0] sm:$0x3]  ;;  %v436_v18 = vld [vmem:[%s885_s3 + $0x38] sm:$0xff]  ;;  %v435_v19 = vld [vmem:[%s885_s3 + $0x30] sm:$0xff] }
  0x2b   : > { %453 = vmatpush.msra.mxu1 %v436_v18  ;;  %v434_v20 = vld [vmem:[%s885_s3 + $0x28] sm:$0xff]  ;;  %v433_v21 = vld [vmem:[%s885_s3 + $0x20] sm:$0xff]  ;;  %v432_v22 = vld [vmem:[%s885_s3 + $0x18] sm:$0xff] }
  0x2c   : > { %398 = vmatpush.msra.mxu0 %v374_v10  ;;  %v671_v23 = vld [vmem:[%s884_s2] ss:$0 sm:$0xff]  ;;  %v431_v24 = vld [vmem:[%s885_s3 + $0x10] sm:$0xff]  ;;  %v430_v25 = vld [vmem:[%s885_s3 + $0x8] sm:$0xff] }
  0x2d   : > { %454 = vmatpush.msra.mxu1 %v435_v19  ;;  %v429_v28 = vld [vmem:[%s885_s3] sm:$0xff] }
  0x2e   : > { %399 = vmatpush.msra.mxu0 %v373_v11  ;;  %v672_v44 = vld [vmem:[%s886_s4] ss:$0 sm:$0xff] }
  0x2f   : > { %455 = vmatpush.msra.mxu1 %v434_v20 }
  0x30   : > { %400 = vmatpush.msra.mxu0 %v372_v12 }
  0x31   : > { %456 = vmatpush.msra.mxu1 %v433_v21 }
  0x32   : > { %401 = vmatpush.msra.mxu0 %v371_v13 }
  0x33   : > { %457 = vmatpush.msra.mxu1 %v432_v22 }
  0x34   : > { %402 = vmatpush.msra.mxu0 %v370_v14 }
  0x35   : > { %458 = vmatpush.msra.mxu1 %v431_v24 }
  0x36   : > { %403 = vmatpush.msra.mxu0 %v369_v15 }
  0x37   : > { %459 = vmatpush.msra.mxu1 %v430_v25 }
  0x38   : > { %404 = vmatpush.msra.mxu0 %v368_v16 }
  0x39   : > { %622 = vmatmul.msk.f32.vlgmr.msra.gmra.mxu0 %vm381_vm1, %v367_v17  ;;  %460 = vmatpush.msra.mxu1 %v429_v28 }
  0xb6   : > { %v406_v26 = vpop.f32.mrf.mxu0 }
  0xb7   : > { %v407_v27 = vadd.f32 %v671_v23, %v406_v26 }
  0xb9   : > { %v409_v29 = vsub.f32 0.0, %v407_v27 }
  0xbb   : > { %v410_v30 = vmul.f32 1.442695, %v409_v29 }
  0xbd   : > { %673 = vpow2.f32 %v410_v30 }
  0xc3   : > { %v674_v31 = vpop.eup %673 }
  0xc4   : > { %v412_v32 = vadd.f32 1.0, %v674_v31 }
  0xc6   : > { %675 = vrcp.f32 %v412_v32  ;;  %v424_v36 = vand.u32 2147483648, %v412_v32  ;;  %v422_v38 = vand.u32 2147483647, %v412_v32  ;;  %vm418_vm3 = vweird.f32 %v412_v32 }
  0xc8   : > { %v425_v40 = vor.u32 1.1754944e-38, %v424_v36  ;;  %vm423_vm5 = vcmp.eq.f32.partialorder %v422_v38, 8.507059e+37 }
  0xcc   : > { %v676_v33 = vpop.eup %675 }
  0xcd   : > { %v414_v34 = vmul.f32 %v676_v33, %v412_v32  ;;  %vm419_vm2 = vweird.f32 %v676_v33 }
  0xce   : > { %vm420_vm4 = vmor %vm418_vm3, %vm419_vm2 }
  0xcf   : > { %v415_v35 = vsub.f32 1.0, %v414_v34 }
  0xd1   : > { %v416_v37 = vmul.f32 %v676_v33, %v415_v35 }
  0xd3   : > { %v417_v39 = vadd.f32 %v676_v33, %v416_v37 }
  0xd5   : > { %v421_v41 = vsel %vm420_vm4, %v676_v33, %v417_v39 }
  0xd6   : > { %v426_v42 = vsel %vm423_vm5, %v425_v40, %v421_v41 }
  0xd7   : > { %v428_v43 = vmul.f32 %v426_v42, %v407_v27 }
  0xd9   : > { %623 = vmatmul.msk.f32.vlgmr.msra.gmra.mxu1 %vm441_vm6, %v428_v43 }
 0x156   : > { %v462_v45 = vpop.f32.mrf.mxu1 }
 0x157   : > { %v463_v46 = vadd.f32 %v672_v44, %v462_v45 }
 0x159   : > { %v465_v47 = vsub.f32 0.0, %v463_v46 }
 0x15b   : > { %v466_v48 = vmul.f32 1.442695, %v465_v47 }
 0x15d   : > { %677 = vpow2.f32 %v466_v48 }
 0x163   : > { %v678_v49 = vpop.eup %677 }
 0x164   : > { %v468_v50 = vadd.f32 1.0, %v678_v49 }
 0x166   : > { %679 = vrcp.f32 %v468_v50  ;;  %v480_v54 = vand.u32 2147483648, %v468_v50  ;;  %v478_v56 = vand.u32 2147483647, %v468_v50  ;;  %vm474_vm8 = vweird.f32 %v468_v50 }
 0x168   : > { %v481_v58 = vor.u32 1.1754944e-38, %v480_v54  ;;  %vm479_vm10 = vcmp.eq.f32.partialorder %v478_v56, 8.507059e+37 }
 0x16c   : > { %v680_v51 = vpop.eup %679 }
 0x16d   : > { %v470_v52 = vmul.f32 %v680_v51, %v468_v50  ;;  %vm475_vm7 = vweird.f32 %v680_v51 }
 0x16e   : > { %vm476_vm9 = vmor %vm474_vm8, %vm475_vm7 }
 0x16f   : > { %v471_v53 = vsub.f32 1.0, %v470_v52 }
 0x171   : > { %v472_v55 = vmul.f32 %v680_v51, %v471_v53 }
 0x173   : > { %v473_v57 = vadd.f32 %v680_v51, %v472_v55 }
 0x175   : > { %v477_v59 = vsel %vm476_vm9, %v680_v51, %v473_v57 }
 0x176   : > { %v482_v60 = vsel %vm479_vm10, %v481_v58, %v477_v59 }
 0x177   : > { %v484_v61 = vmul.f32 %v482_v60, %v463_v46 }
 0x179   : > { %486 = vst.msk [vmem:[#allocation2] sm:$0x3] %vm485_vm11, %v484_v61 }
 0x17a PF: > { %v646_v62 = vld [vmem:[%s799_s30 + $0x18] sm:$0xff]  ;;  %v645_v63 = vld [vmem:[%s799_s30 + $0x10] sm:$0xff]  ;;  %v644_v0 = vld [vmem:[%s799_s30 + $0x8] sm:$0xff]  ;;  %vm525_vm12 = vcmask 523264  }
 0x17b   : > { %533 = vmatpush.bf16.msra.mxu0 %v646_v62  ;;  %v643_v1 = vld [vmem:[%s799_s30] sm:$0xff]  ;;  %v681_v4 = vld [vmem:[%s357_s21] ss:$0 sm:$0xff] }
 0x17f   : > { %534 = vmatpush.bf16.msra.mxu0 %v645_v63 }
 0x180   : > { %v487_v2 = vld [vmem:[#allocation2] sm:$0x3] }
 0x181   : > { %v488_v3 = vpack.c.bf16 %v487_v2, %v487_v2 }
 0x183   : > { %535 = vmatpush.bf16.msra.mxu0 %v644_v0 }
 0x187   : > { %536 = vmatpush.bf16.msra.mxu0 %v643_v1 }
 0x18a   : > { %640 = vmatmul.msk.bf16.vlgmr.msra.gmra.mxu0 %vm525_vm12, %v488_v3 }
 0x207   : > { %v538_v5 = vpop.f32.mrf.mxu0 }
 0x208   : > { %v539_v6 = vadd.f32 %v681_v4, %v538_v5 }
 0x20a   : > { %542 = vst [vmem:[%s797_s26] sm:$0x3] %v539_v6 }
 0x20f   : > { %v540_v7 = vpop.f32.mrf.mxu0 }
 0x210 PF: > { %p14_p10 = scmp.ge.s32.totalorder %s765_s28, 9   ;;  %s890_s24 = smov %s700_s25 }
 0x211   : > { %s891_s25 = smov %s774_s8  ;;  %s892_s26 = smov %s765_s28 }
 0x212   :  { %16 = sbr.rel (!%p14_p10) target bundleno = 2 (0x2), region = 131 }

// kernel: dit_forward.13
= control target key start
LH: loop header
LB: loop body
LE: loop exit
PB: predicated region body
PF: predicated region fallthrough
CT: control target
= control target key end

     0   :  { %s488_s15 = smov 0   ;;  %s542_s0 = inlined_call_operand.vmem [shape: f32[2,16,64], index: 0, kind: input, shape index: {}]   ;;  %s543_s1 = inlined_call_operand.vmem [shape: f32[2,2,64], index: 1, kind: input, shape index: {}]   ;;  %s544_s2 = inlined_call_operand.vmem [shape: bf16[64,64], index: 2, kind: input, shape index: {}]   ;;  %s545_s3 = inlined_call_operand.vmem [shape: f32[1,64], index: 3, kind: input, shape index: {}]   ;;  %s546_s4 = inlined_call_operand.vmem [shape: f32[2,16,64], index: 4, kind: output, shape index: {}]  }
   0x1 LB: > { %s402_s16 = sadd.s32 4294967295, %s460_s15   ;;  %p406_p0 = scmp.ge.s32.totalorder %s460_s15, 1  ;;  %s460_s15 = sphi %s488_s15, %s14_s15  }
   0x2   : > { %p171_p1 = scmp.lt.s32.totalorder %s460_s15, 3 }
   0x4   : > { %p172_p2 = pnand %p406_p0, %p171_p1 }
   0x5   : > { %p201_p3 = scmp.lt.s32.totalorder (!%p172_p2), %s402_s16, 1 }
   0x6   : > { %175 = sbr.rel (%p172_p2) target bundleno = 430 (0x1ae), region = 36 }
   0xb   : > { %s548_s16 = smov (!%p201_p3, %s402_s16), 1  ;;  %vm220_vm0 = vcmask 523264   ;;  %v462_v4 = vmov 64.0   ;;  %v436_v21 = vld [vmem:[%s544_s2 + $0x18] sm:$0xff]  ;;  %v435_v22 = vld [vmem:[%s544_s2 + $0x10] sm:$0xff]  ;;  %v434_v23 = vld [vmem:[%s544_s2 + $0x8] sm:$0xff] }
   0xc   : > { %s431_s17 = sshll.u32 %s548_s16, 4  ;;  %s409_s18 = sshll.u32 %s548_s16, 1  ;;  %448 = vrcp.f32 %v462_v4  ;;  %323 = vmatpush.bf16.msra.mxu0 %v436_v21  ;;  %v433_v25 = vld [vmem:[%s544_s2] sm:$0xff] }
   0xd   : > { %s205_s21 = scalar_lea.vmem %s542_s0, %s431_s17  ;;  %s508_s24 = scalar_lea.vmem %s543_s1, %s409_s18  ;;  %v447_v56 = vld [vmem:[%s545_s3] ss:$0 sm:$0xff] }
   0xe   : > { %v218_v0 = vld [vmem:[%s205_s21] sm:$0xff]  ;;  %v219_v2 = vld [vmem:[%s205_s21 + $0x8] sm:$0xff]  ;;  %s214_s11 = scalar_lea.vmem %s546_s4, %s431_s17 }
   0xf   : > { %v221_v1 = vsel %vm220_vm0, %v218_v0, 0.0  ;;  %v224_v3 = vsel %vm220_vm0, %v219_v2, 0.0  ;;  %v217_v37 = vld [vmem:[%s508_s24 + $0x1] sm:$0x1]  ;;  %v446_v51 = vld [vmem:[%s508_s24] ss:$0 sm:$0xff] }
  0x10   : > { %222 = vadd.xlane.f32.xlu0 %v221_v1  ;;  %324 = vmatpush.bf16.msra.mxu0 %v435_v22  ;;  %v272_v41 = vadd.f32 1.0, %v217_v37 }
  0x12   : > { %v449_v5 = vpop.eup %448  ;;  %v273_v45 = vperm.slane %v272_v41, 0 }
  0x13   : > { %v228_v6 = vmul.f32 64.0, %v449_v5  ;;  %vm232_vm1 = vweird.f32 %v449_v5 }
  0x14   : > { %325 = vmatpush.bf16.msra.mxu0 %v434_v23 }
  0x15   : > { %v229_v7 = vsub.f32 1.0, %v228_v6 }
  0x17   : > { %v230_v8 = vmul.f32 %v449_v5, %v229_v7 }
  0x18   : > { %225 = vadd.xlane.f32.xlu0 %v224_v3  ;;  %326 = vmatpush.bf16.msra.mxu0 %v433_v25 }
  0x19   : > { %v231_v9 = vadd.f32 %v449_v5, %v230_v8 }
  0x1b   : > { %v233_v10 = vsel %vm232_vm1, %v449_v5, %v231_v9 }
  0x83   : > { %v223_v11 = vpop.xlane.xlu0 %222 }
  0x84   : > { %v234_v12 = vmul.f32 %v233_v10, %v223_v11 }
  0x86   : > { %v236_v13 = vsub.f32 %v218_v0, %v234_v12 }
  0x88   : > { %v238_v14 = vmul.f32 %v236_v13, %v236_v13 }
  0x8a   : > { %v240_v15 = vsel %vm220_vm0, %v238_v14, 0.0 }
  0x8b   : > { %241 = vadd.xlane.f32.xlu1 %v240_v15  ;;  %v226_v16 = vpop.xlane.xlu0 %225 }
  0x8c   : > { %v235_v17 = vmul.f32 %v233_v10, %v226_v16 }
  0x8e   : > { %v237_v18 = vsub.f32 %v219_v2, %v235_v17 }
  0x90   : > { %v239_v19 = vmul.f32 %v237_v18, %v237_v18 }
  0x92   : > { %v243_v20 = vsel %vm220_vm0, %v239_v19, 0.0 }
  0x93   : > { %244 = vadd.xlane.f32.xlu1 %v243_v20 }
  0xfe   : > { %v242_v24 = vpop.xlane.xlu1 %241 }
  0xff   : > { %v246_v26 = vmul.f32 %v242_v24, %v233_v10 }
 0x101   : > { %v248_v27 = vadd.f32 1e-06, %v246_v26 }
 0x103   : > { %450 = vrsqrt.f32 %v248_v27  ;;  %vm256_vm3 = vweird.f32 %v248_v27 }
 0x106   : > { %v245_v28 = vpop.xlane.xlu1 %244 }
 0x107   : > { %v247_v29 = vmul.f32 %v245_v28, %v233_v10 }
 0x109   : > { %v451_v30 = vpop.eup %450  ;;  %v249_v31 = vadd.f32 1e-06, %v247_v29 }
 0x10a   : > { %v251_v32 = vmul.f32 %v451_v30, %v248_v27  ;;  %vm257_vm2 = vweird.f32 %v451_v30 }
 0x10b   : > { %452 = vrsqrt.f32 %v249_v31  ;;  %vm258_vm4 = vmor %vm256_vm3, %vm257_vm2  ;;  %vm266_vm6 = vweird.f32 %v249_v31 }
 0x10c   : > { %v252_v33 = vmul.f32 %v451_v30, %v251_v32 }
 0x10e   : > { %v253_v34 = vmul.f32 0.5, %v252_v33 }
 0x110   : > { %v254_v35 = vsub.f32 1.5, %v253_v34 }
 0x111   : > { %v453_v36 = vpop.eup %452 }
 0x112   : > { %v255_v38 = vmul.f32 %v451_v30, %v254_v35  ;;  %v261_v39 = vmul.f32 %v453_v36, %v249_v31  ;;  %vm267_vm5 = vweird.f32 %v453_v36 }
 0x113   : > { %vm268_vm7 = vmor %vm266_vm6, %vm267_vm5 }
 0x114   : > { %v262_v40 = vmul.f32 %v453_v36, %v261_v39  ;;  %v259_v42 = vsel %vm258_vm4, %v451_v30, %v255_v38 }
 0x115   : > { %v270_v46 = vmul.f32 %v259_v42, %v236_v13 }
 0x116   : > { %v263_v43 = vmul.f32 0.5, %v262_v40 }
 0x117   : > { %v274_v50 = vmul.f32 %v273_v45, %v270_v46 }
 0x118   : > { %v264_v44 = vsub.f32 1.5, %v263_v43 }
 0x119   : > { %v277_v53 = vadd.f32 %v446_v51, %v274_v50 }
 0x11a   : > { %v265_v47 = vmul.f32 %v453_v36, %v264_v44 }
 0x11c   : > { %v269_v48 = vsel %vm268_vm7, %v453_v36, %v265_v47 }
 0x11d   : > { %v271_v49 = vmul.f32 %v269_v48, %v237_v18 }
 0x11f   : > { %v275_v52 = vmul.f32 %v273_v45, %v271_v49 }
 0x121   : > { %v278_v54 = vadd.f32 %v446_v51, %v275_v52 }
 0x123   : > { %v279_v55 = vpack.c.bf16 %v278_v54, %v277_v53 }
 0x125   : > { %428 = vmatmul.msk.bf16.vlgmr.msra.gmra.mxu0 %vm220_vm0, %v279_v55 }
 0x1a2   : > { %v328_v57 = vpop.f32.mrf.mxu0 }
 0x1a3   : > { %v329_v58 = vadd.f32 %v447_v56, %v328_v57 }
 0x1a5   : > { %333 = vst.msk [vmem:[%s214_s11] sm:$0xff] %vm220_vm0, %v329_v58 }
 0x1aa   : > { %v330_v59 = vpop.f32.mrf.mxu0 }
 0x1ab   : > { %v331_v60 = vadd.f32 %v447_v56, %v330_v59 }
 0x1ad   : > { %334 = vst.msk [vmem:[%s214_s11 + $0x8] sm:$0xff] %vm220_vm0, %v331_v60 }
 0x1ae PF: > { %s14_s15 = sadd.s32 1, %s460_s15  }
 0x1af   : > { %p11_p4 = scmp.ge.s32.totalorder %s14_s15, 4  }
 0x1b1   :  { %13 = sbr.rel (!%p11_p4) target bundleno = 1 (0x1), region = 69 }

// kernel: dit_forward.11
= control target key start
LH: loop header
LB: loop body
LE: loop exit
PB: predicated region body
PF: predicated region fallthrough
CT: control target
= control target key end

     0   :  { %s3111_s29 = smov 0   ;;  %s4014_s0 = inlined_call_operand.vmem [shape: f32[2,16,64], index: 0, kind: input, shape index: {}]   ;;  %s4015_s1 = inlined_call_operand.vmem [shape: f32[2,6,64], index: 1, kind: input, shape index: {}]   ;;  %s4016_s2 = inlined_call_operand.vmem [shape: bf16[64,64], index: 2, kind: input, shape index: {}]   ;;  %s4017_s3 = inlined_call_operand.vmem [shape: f32[1,64], index: 3, kind: input, shape index: {}]   ;;  %s4018_s4 = inlined_call_operand.vmem [shape: bf16[64,64], index: 4, kind: input, shape index: {}]   ;;  %s4019_s5 = inlined_call_operand.vmem [shape: f32[1,64], index: 5, kind: input, shape index: {}]   ;;  %s4020_s6 = inlined_call_operand.vmem [shape: bf16[64,64], index: 6, kind: input, shape index: {}]   ;;  %s4021_s7 = inlined_call_operand.vmem [shape: f32[1,64], index: 7, kind: input, shape index: {}]   ;;  %s4022_s8 = inlined_call_operand.vmem [shape: bf16[64,64], index: 8, kind: input, shape index: {}]   ;;  %s4023_s9 = inlined_call_operand.vmem [shape: f32[1,64], index: 9, kind: input, shape index: {}]   ;;  %s4024_s10 = inlined_call_operand.vmem [shape: bf16[64,256], index: 10, kind: input, shape index: {}]   ;;  %s4025_s11 = inlined_call_operand.vmem [shape: f32[1,256], index: 11, kind: input, shape index: {}]   ;;  %s4026_s12 = inlined_call_operand.vmem [shape: bf16[256,64], index: 12, kind: input, shape index: {}]   ;;  %s4027_s13 = inlined_call_operand.vmem [shape: f32[1,64], index: 13, kind: input, shape index: {}]   ;;  %s4028_s14 = inlined_call_operand.vmem [shape: f32[2,16,64], index: 14, kind: output, shape index: {}]  }
   0x1 LB: > { %s2649_s30 = sadd.s32 4294967295, %s3025_s29   ;;  %p2653_p0 = scmp.ge.s32.totalorder %s3025_s29, 1  ;;  %s3025_s29 = sphi %s3111_s29, %s24_s29  }
   0x2   : > { %p421_p1 = scmp.lt.s32.totalorder %s3025_s29, 3 }
   0x4   : > { %p422_p2 = pnand %p2653_p0, %p421_p1 }
   0x5   : > { %p471_p3 = scmp.lt.s32.totalorder (!%p422_p2), %s2649_s30, 1  ;;  %s3029_s17 = smov (!%p422_p2), 112  }
   0x6   : > { %425 = sbr.rel (%p422_p2) target bundleno = 2085 (0x825), region = 76  ;;  %s3030_s18 = smov (!%p422_p2), 96  }
   0x7   : > { %s3033_s23 = smov (!%p422_p2), 32   ;;  %s3034_s24 = smov (!%p422_p2), 48  }
   0x8   : > { %s3035_s25 = smov (!%p422_p2), 16  }
   0xb   : > { %s4032_s30 = smov (!%p471_p3, %s2649_s30), 1  ;;  %vm494_vm0 = vcmask 523264   ;;  %v3027_v4 = vmov 64.0   ;;  %v2844_v21 = vld [vmem:[%s4016_s2 + $0x18] sm:$0xff]  ;;  %v2843_v24 = vld [vmem:[%s4016_s2 + $0x10] sm:$0xff]  ;;  %v2842_v27 = vld [vmem:[%s4016_s2 + $0x8] sm:$0xff] }
   0xc   : > { %s2839_s15 = sshll.u32 %s4032_s30, 4  ;;  %s2656_s16 = sshll.u32 %s4032_s30, 3  ;;  %2967 = vrcp.f32 %v3027_v4  ;;  %v2848_v22 = vld [vmem:[%s4018_s4 + $0x18] sm:$0xff]  ;;  %597 = vmatpush.bf16.msra.mxu0 %v2844_v21  ;;  %v2847_v25 = vld [vmem:[%s4018_s4 + $0x10] sm:$0xff]  ;;  %v2846_v28 = vld [vmem:[%s4018_s4 + $0x8] sm:$0xff]  ;;  %vm728_vm8 = vcmask 1047556  }
   0xd   : > { %s3128_s19 = scalar_lea.vmem %s4014_s0, %s2839_s15  ;;  %s3133_s22 = scalar_lea.vmem %s4015_s1, %s2656_s16  ;;  %v2852_v23 = vld [vmem:[%s4020_s6 + $0x18] sm:$0xff]  ;;  %647 = vmatpush.bf16.msra.mxu1 %v2848_v22  ;;  %v2851_v26 = vld [vmem:[%s4020_s6 + $0x10] sm:$0xff]  ;;  %v2850_v29 = vld [vmem:[%s4020_s6 + $0x8] sm:$0xff]  ;;  %vm1462_vm9 = vcmask 130048   ;;  %vm2035_vm10 = vcmask 261120   ;;  %vm2038_vm11 = vcmask 392192  }
   0xe   : > { %v486_v0 = vld [vmem:[%s3128_s19] sm:$0xff]  ;;  %v487_v2 = vld [vmem:[%s3128_s19 + $0x8] sm:$0xff]  ;;  %697 = vmatpush.bf16.msra.mxu2 %v2852_v23  ;;  %s3028_s16 = smov 80  }
   0xf   : > { %v495_v1 = vsel %vm494_vm0, %v486_v0, 0.0  ;;  %v498_v3 = vsel %vm494_vm0, %v487_v2, 0.0  ;;  %v2841_v31 = vld [vmem:[%s4016_s2] sm:$0xff] }
  0x10   : > { %496 = vadd.xlane.f32.xlu0 %v495_v1  ;;  %598 = vmatpush.bf16.msra.mxu0 %v2843_v24  ;;  %v2845_v32 = vld [vmem:[%s4018_s4] sm:$0xff] }
  0x11   : > { %648 = vmatpush.bf16.msra.mxu1 %v2847_v25  ;;  %v2849_v34 = vld [vmem:[%s4020_s6] sm:$0xff] }
  0x12   : > { %v2968_v5 = vpop.eup %2967  ;;  %698 = vmatpush.bf16.msra.mxu2 %v2851_v26  ;;  %v489_v47 = vld [vmem:[%s3133_s22 + $0x1] sm:$0x1]  ;;  %v2958_v59 = vld [vmem:[%s3133_s22] ss:$0 sm:$0xff] }
  0x13   : > { %v502_v6 = vmul.f32 64.0, %v2968_v5  ;;  %vm506_vm1 = vweird.f32 %v2968_v5  ;;  %v546_v49 = vadd.f32 1.0, %v489_v47 }
  0x14   : > { %599 = vmatpush.bf16.msra.mxu0 %v2842_v27 }
  0x15   : > { %v503_v7 = vsub.f32 1.0, %v502_v6  ;;  %649 = vmatpush.bf16.msra.mxu1 %v2846_v28  ;;  %v547_v54 = vperm.slane %v546_v49, 0 }
  0x16   : > { %699 = vmatpush.bf16.msra.mxu2 %v2850_v29 }
  0x17   : > { %v504_v8 = vmul.f32 %v2968_v5, %v503_v7 }
  0x18   : > { %499 = vadd.xlane.f32.xlu0 %v498_v3  ;;  %600 = vmatpush.bf16.msra.mxu0 %v2841_v31  ;;  %v2960_v3 = vld [vmem:[%s4019_s5] ss:$0 sm:$0xff] }
  0x19   : > { %v505_v9 = vadd.f32 %v2968_v5, %v504_v8  ;;  %650 = vmatpush.bf16.msra.mxu1 %v2845_v32 }
  0x1a   : > { %700 = vmatpush.bf16.msra.mxu2 %v2849_v34 }
  0x1b   : > { %v3139_v10 = vsel %vm506_vm1, %v2968_v5, %v505_v9 }
  0x83   : > { %v497_v11 = vpop.xlane.xlu0 %496 }
  0x84   : > { %v508_v12 = vmul.f32 %v3139_v10, %v497_v11 }
  0x86   : > { %v510_v13 = vsub.f32 %v486_v0, %v508_v12 }
  0x88   : > { %v512_v14 = vmul.f32 %v510_v13, %v510_v13 }
  0x8a   : > { %v514_v15 = vsel %vm494_vm0, %v512_v14, 0.0 }
  0x8b   : > { %515 = vadd.xlane.f32.xlu1 %v514_v15  ;;  %v500_v16 = vpop.xlane.xlu0 %499 }
  0x8c   : > { %v509_v17 = vmul.f32 %v3139_v10, %v500_v16 }
  0x8e   : > { %v511_v18 = vsub.f32 %v487_v2, %v509_v17  ;;  %v2959_v2 = vld [vmem:[%s4017_s3] ss:$0 sm:$0xff]  ;;  %v3031_v17 = vmov 1983009808  }
  0x90   : > { %v513_v19 = vmul.f32 %v511_v18, %v511_v18 }
  0x92   : > { %v517_v20 = vsel %vm494_vm0, %v513_v19, 0.0 }
  0x93   : > { %518 = vadd.xlane.f32.xlu1 %v517_v20 }
  0xfe   : > { %v516_v30 = vpop.xlane.xlu1 %515 }
  0xff   : > { %v520_v33 = vmul.f32 %v516_v30, %v3139_v10 }
 0x101   : > { %v522_v35 = vadd.f32 1e-06, %v520_v33 }
 0x103   : > { %2969 = vrsqrt.f32 %v522_v35  ;;  %vm530_vm3 = vweird.f32 %v522_v35 }
 0x106   : > { %v519_v36 = vpop.xlane.xlu1 %518 }
 0x107   : > { %v521_v37 = vmul.f32 %v519_v36, %v3139_v10  ;;  %v3032_v36 = vmov 1934713408  }
 0x109   : > { %v2970_v38 = vpop.eup %2969  ;;  %v523_v39 = vadd.f32 1e-06, %v521_v37  ;;  %v757_v37 = vunpack.c.l.s4 %v3032_v36 }
 0x10a   : > { %v525_v40 = vmul.f32 %v2970_v38, %v522_v35  ;;  %vm531_vm2 = vweird.f32 %v2970_v38 }
 0x10b   : > { %2971 = vrsqrt.f32 %v523_v39  ;;  %vm532_vm4 = vmor %vm530_vm3, %vm531_vm2  ;;  %vm540_vm6 = vweird.f32 %v523_v39 }
 0x10c   : > { %v526_v41 = vmul.f32 %v2970_v38, %v525_v40 }
 0x10e   : > { %v527_v42 = vmul.f32 0.5, %v526_v41 }
 0x110   : > { %v528_v43 = vsub.f32 1.5, %v527_v42 }
 0x111   : > { %v2972_v44 = vpop.eup %2971 }
 0x112   : > { %v529_v45 = vmul.f32 %v2970_v38, %v528_v43  ;;  %v535_v46 = vmul.f32 %v2972_v44, %v523_v39  ;;  %vm541_vm5 = vweird.f32 %v2972_v44 }
 0x113   : > { %vm542_vm7 = vmor %vm540_vm6, %vm541_vm5 }
 0x114   : > { %v536_v48 = vmul.f32 %v2972_v44, %v535_v46  ;;  %v533_v50 = vsel %vm532_vm4, %v2970_v38, %v529_v45 }
 0x115   : > { %v544_v53 = vmul.f32 %v533_v50, %v510_v13 }
 0x116   : > { %v537_v51 = vmul.f32 0.5, %v536_v48 }
 0x117   : > { %v548_v58 = vmul.f32 %v547_v54, %v544_v53  ;;  %v3230_v53 = vunpack.c.0.s8 %v757_v37 }
 0x118   : > { %v538_v52 = vsub.f32 1.5, %v537_v51 }
 0x119   : > { %v551_v61 = vadd.f32 %v2958_v59, %v548_v58 }
 0x11a   : > { %v539_v55 = vmul.f32 %v2972_v44, %v538_v52 }
 0x11c   : > { %v543_v56 = vsel %vm542_vm7, %v2972_v44, %v539_v55 }
 0x11d   : > { %v545_v57 = vmul.f32 %v543_v56, %v511_v18  ;;  %v733_v18 = vunpack.c.l.s4 %v3031_v17 }
 0x11f   : > { %v549_v60 = vmul.f32 %v547_v54, %v545_v57  ;;  %v3202_v22 = vunpack.c.0.s8 %v733_v18 }
 0x121   : > { %v552_v62 = vadd.f32 %v2958_v59, %v549_v60 }
 0x123   : > { %v553_v63 = vpack.c.bf16 %v552_v62, %v551_v61 }
 0x125   : > { %2675 = vmatmul.msk.bf16.vlgmr.msra.gmra.mxu0 %vm494_vm0, %v553_v63  ;;  %2692 = vmatmul.msk.bf16.vlgmr.msra.gmra.mxu1 %vm494_vm0, %v553_v63 }
 0x126   : > { %2709 = vmatmul.msk.bf16.vlgmr.msra.gmra.mxu2 %vm494_vm0, %v553_v63 }
 0x1a2   : > { %v602_v0 = vpop.f32.mrf.mxu0  ;;  %v652_v1 = vpop.f32.mrf.mxu1 }
 0x1a3   : > { %v603_v6 = vadd.f32 %v2959_v2, %v602_v0  ;;  %v653_v7 = vadd.f32 %v2960_v3, %v652_v1 }
 0x1a5   : > { %v978_v23 = vrot.slane %v653_v7, 4  ;;  %v730_v28 = vrot.slane %v603_v6, 4 }
 0x1aa   : > { %v604_v4 = vpop.f32.mrf.mxu0  ;;  %v654_v5 = vpop.f32.mrf.mxu1 }
 0x1ab   : > { %v605_v8 = vadd.f32 %v2959_v2, %v604_v4  ;;  %v655_v9 = vadd.f32 %v2960_v3, %v654_v5 }
 0x1ad   : > { %v2908_v11 = vpack.i.bf16 %v655_v9, %v653_v7  ;;  %v2913_v12 = vpack.i.bf16 %v605_v8, %v603_v6  ;;  %v1034_v19 = vrot.slane %v655_v9, 4  ;;  %v786_v26 = vrot.slane %v605_v8, 4 }
 0x1af   : > { %2909 = vrot.lane.b32.xlu0 %v2908_v11, %s3028_s16  ;;  %2899 = vrot.lane.b32.xlu2 %v2908_v11, %s3029_s17 }
 0x1b0   : > { %2914 = vrot.lane.b32.xlu1 %v2913_v12, %s3029_s17 }
 0x1b7   : > { %2904 = vrot.lane.b32.xlu2 %v2908_v11, %s3030_s18 }
 0x1bf   : > { %2919 = vrot.lane.b32.xlu2 %v2913_v12, %s3030_s18 }
 0x1c7   : > { %2924 = vrot.lane.b32.xlu2 %v2913_v12, %s3028_s16 }
 0x209   : > { %v3200_v13 = vpop.permute.xlu2 %2899 }
 0x20a   : > { %v2902_v33 = vunpack.i.h.bf16 %v3200_v13  ;;  %v2901_v34 = vunpack.i.l.bf16 %v3200_v13 }
 0x20c   : > { %v1046_v50 = vrot.slane %v2902_v33, 4  ;;  %v990_v51 = vrot.slane %v2901_v34, 4 }
 0x211   : > { %v2905_v14 = vpop.permute.xlu2 %2904 }
 0x212   : > { %v2907_v15 = vunpack.i.h.bf16 %v2905_v14  ;;  %v2906_v16 = vunpack.i.l.bf16 %v2905_v14 }
 0x214   : > { %v1032_v20 = vrot.slane %v2907_v15, 4  ;;  %v976_v21 = vrot.slane %v2906_v16, 4  ;;  %v1035_v24 = vsel %vm728_vm8, %v2907_v15, %v1034_v19  ;;  %v979_v25 = vsel %vm728_vm8, %v2906_v16, %v978_v23 }
 0x215   : > { %v3211_v35 = vperm.slane %v1035_v24, %v3202_v22  ;;  %v987_v44 = vperm.slane %v979_v25, %v3202_v22 }
 0x216   : > { %v1033_v29 = vsel %vm728_vm8, %v1032_v20, %v655_v9  ;;  %v977_v30 = vsel %vm728_vm8, %v976_v21, %v653_v7 }
 0x217   : > { %v1039_v42 = vperm.slane %v1033_v29, %v3202_v22  ;;  %v983_v43 = vperm.slane %v977_v30, %v3202_v22  ;;  %v1070_v52 = vrot.slane %v3211_v35, 4  ;;  %v1014_v56 = vrot.slane %v987_v44, 4 }
 0x219   : > { %v2920_v27 = vpop.permute.xlu2 %2919  ;;  %v1058_v54 = vrot.slane %v1039_v42, 4  ;;  %v1002_v55 = vrot.slane %v983_v43, 4 }
 0x21a   : > { %v2922_v31 = vunpack.i.h.bf16 %v2920_v27  ;;  %v2921_v32 = vunpack.i.l.bf16 %v2920_v27 }
 0x21c   : > { %v784_v38 = vrot.slane %v2922_v31, 4  ;;  %v787_v39 = vsel %vm728_vm8, %v2922_v31, %v786_v26  ;;  %v727_v40 = vrot.slane %v2921_v32, 4  ;;  %v731_v41 = vsel %vm728_vm8, %v2921_v32, %v730_v28 }
 0x21d   : > { %v3224_v48 = vperm.slane %v787_v39, %v3202_v22  ;;  %v3227_v49 = vperm.slane %v731_v41, %v3202_v22 }
 0x21e   : > { %v785_v45 = vsel %vm728_vm8, %v784_v38, %v605_v8  ;;  %v729_v46 = vsel %vm728_vm8, %v727_v40, %v603_v6 }
 0x21f   : > { %v3221_v47 = vperm.slane %v785_v45, %v3202_v22  ;;  %v3233_v57 = vperm.slane %v729_v46, %v3202_v22  ;;  %v822_v2 = vrot.slane %v3224_v48, 4  ;;  %v766_v3 = vrot.slane %v3227_v49, 4 }
 0x221   : > { %v2910_v58 = vpop.permute.xlu0 %2909  ;;  %v3235_v59 = vpop.permute.xlu2 %2924  ;;  %v810_v1 = vrot.slane %v3221_v47, 4  ;;  %v754_v9 = vrot.slane %v3233_v57, 4 }
 0x222   : > { %v2912_v60 = vunpack.i.h.bf16 %v2910_v58  ;;  %v2911_v61 = vunpack.i.l.bf16 %v2910_v58  ;;  %v2927_v62 = vunpack.i.h.bf16 %v3235_v59  ;;  %v2926_v63 = vunpack.i.l.bf16 %v3235_v59  ;;  %v3239_v0 = vpop.permute.xlu1 %2914 }
 0x223   : > { %v2917_v4 = vunpack.i.h.bf16 %v3239_v0  ;;  %v2916_v13 = vunpack.i.l.bf16 %v3239_v0 }
 0x224   : > { %v1044_v5 = vrot.slane %v2912_v60, 4  ;;  %v988_v6 = vrot.slane %v2911_v61, 4  ;;  %v991_v7 = vsel %vm728_vm8, %v2911_v61, %v990_v51  ;;  %v1047_v8 = vsel %vm728_vm8, %v2912_v60, %v1046_v50 }
 0x225   : > { %v999_v11 = vperm.slane %v991_v7, %v3202_v22  ;;  %v1055_v12 = vperm.slane %v1047_v8, %v3202_v22  ;;  %v796_v16 = vrot.slane %v2927_v62, 4  ;;  %v740_v17 = vrot.slane %v2926_v63, 4 }
 0x226   : > { %v989_v14 = vsel %vm728_vm8, %v988_v6, %v2901_v34  ;;  %v1045_v15 = vsel %vm728_vm8, %v1044_v5, %v2902_v33  ;;  %v798_v26 = vrot.slane %v2917_v4, 4  ;;  %v742_v45 = vrot.slane %v2916_v13, 4 }
 0x227   : > { %v995_v18 = vperm.slane %v989_v14, %v3202_v22  ;;  %v1012_v19 = vrot.slane %v999_v11, 4  ;;  %v1015_v20 = vsel %vm728_vm8, %v999_v11, %v1014_v56  ;;  %v1051_v21 = vperm.slane %v1045_v15, %v3202_v22 }
 0x228   : > { %v1023_v23 = vperm.slane %v1015_v20, %v3230_v53  ;;  %v1068_v24 = vrot.slane %v1055_v12, 4  ;;  %v1071_v25 = vsel %vm728_vm8, %v1055_v12, %v1070_v52  ;;  %v799_v11 = vsel %vm728_vm8, %v2927_v62, %v798_v26 }
 0x229   : > { %v1000_v27 = vrot.slane %v995_v18, 4  ;;  %v1003_v28 = vsel %vm728_vm8, %v995_v18, %v1002_v55  ;;  %v1013_v29 = vsel %vm728_vm8, %v1012_v19, %v987_v44  ;;  %v1056_v30 = vrot.slane %v1051_v21, 4 }
 0x22a   : > { %v1011_v31 = vperm.slane %v1003_v28, %v3230_v53  ;;  %v1019_v32 = vperm.slane %v1013_v29, %v3230_v53  ;;  %v1030_v33 = vrot.slane %v1023_v23, 4  ;;  %v1059_v34 = vsel %vm728_vm8, %v1051_v21, %v1058_v54 }
 0x22b   : > { %v1001_v36 = vsel %vm728_vm8, %v1000_v27, %v983_v43  ;;  %v1057_v37 = vsel %vm728_vm8, %v1056_v30, %v1039_v42  ;;  %v1067_v38 = vperm.slane %v1059_v34, %v3230_v53  ;;  %v1069_v39 = vsel %vm728_vm8, %v1068_v24, %v3211_v35 }
 0x22c   : > { %v1007_v40 = vperm.slane %v1001_v36, %v3230_v53  ;;  %v1026_v41 = vrot.slane %v1011_v31, 4  ;;  %v1028_v44 = vrot.slane %v1019_v32, 4  ;;  %v3274_v46 = vperm.slane %v1057_v37, %v3230_v53 }
 0x22d   : > { %v1075_v50 = vperm.slane %v1069_v39, %v3230_v53  ;;  %v1079_v51 = vperm.slane %v1071_v25, %v3230_v53  ;;  %v3278_v43 = vrot.slane %v1067_v38, 4  ;;  %v3282_v52 = vsel %vm728_vm8, 0.0, %v1030_v33 }
 0x22e   : > { %v1027_v42 = vsel %vm728_vm8, 0.0, %v1026_v41  ;;  %v1099_v35 = vsel %vm728_vm8, %v1030_v33, %v1019_v32  ;;  %v797_v54 = vsel %vm728_vm8, %v796_v16, %v2917_v4  ;;  %v1024_v55 = vrot.slane %v1007_v40, 4 }
 0x22f   : > { %v3288_v56 = vsel %vm728_vm8, 0.0, %v3278_v43  ;;  %v1084_v58 = vrot.slane %v1075_v50, 4  ;;  %v1086_v60 = vrot.slane %v1079_v51, 4  ;;  %v1029_v61 = vsel %vm728_vm8, 0.0, %v1028_v44 }
 0x230   : > { %v1080_v0 = vrot.slane %v3274_v46, 4  ;;  %v1093_v5 = vrot.slane %v1027_v42, 4  ;;  %v3293_v6 = vperm.slane %v1099_v35, %v3202_v22  ;;  %v1104_v4 = vrot.slane %v3282_v52, 4 }
 0x231   : > { %v3296_v7 = vsel %vm728_vm8, 0.0, %v1086_v60  ;;  %v1153_v8 = vsel %vm728_vm8, %v1086_v60, %v1075_v50  ;;  %v3304_v12 = vsel %vm728_vm8, 0.0, %v1084_v58  ;;  %v1147_v14 = vrot.slane %v3288_v56, 4 }
 0x232   : > { %v803_v15 = vperm.slane %v797_v54, %v3202_v22  ;;  %v807_v16 = vperm.slane %v799_v11, %v3202_v22  ;;  %v3310_v18 = vperm.slane %v1153_v8, %v3202_v22  ;;  %v1158_v19 = vrot.slane %v3296_v7, 4 }
 0x233   : > { %v741_v20 = vsel %vm728_vm8, %v740_v17, %v2916_v13  ;;  %v743_v62 = vsel %vm728_vm8, %v2926_v63, %v742_v45  ;;  %v1081_v28 = vsel %vm728_vm8, 0.0, %v1080_v0  ;;  %v1105_v11 = vsel %vm728_vm8, %v1104_v4, %v1029_v61 }
 0x234   : > { %v808_v21 = vrot.slane %v803_v15, 4  ;;  %v811_v23 = vsel %vm728_vm8, %v803_v15, %v810_v1  ;;  %v820_v24 = vrot.slane %v807_v16, 4  ;;  %v823_v25 = vsel %vm728_vm8, %v807_v16, %v822_v2 }
 0x235   : > { %v819_v26 = vperm.slane %v811_v23, %v3230_v53  ;;  %v831_v27 = vperm.slane %v823_v25, %v3230_v53  ;;  %v747_v13 = vperm.slane %v741_v20, %v3202_v22  ;;  %v751_v59 = vperm.slane %v743_v62, %v3202_v22 }
 0x236   : > { %v809_v63 = vsel %vm728_vm8, %v808_v21, %v3221_v47  ;;  %v821_v17 = vsel %vm728_vm8, %v820_v24, %v3224_v48  ;;  %v1025_v1 = vsel %vm728_vm8, 0.0, %v1024_v55  ;;  %v1088_v47 = vsel %vm728_vm8, %v1026_v41, %v1007_v40 }
 0x237   : > { %v815_v2 = vperm.slane %v809_v63, %v3230_v53  ;;  %v827_v29 = vperm.slane %v821_v17, %v3230_v53  ;;  %v834_v30 = vrot.slane %v819_v26, 4  ;;  %v838_v31 = vrot.slane %v831_v27, 4 }
 0x238   : > { %v752_v32 = vrot.slane %v747_v13, 4  ;;  %v755_v33 = vsel %vm728_vm8, %v747_v13, %v754_v9  ;;  %v764_v34 = vrot.slane %v751_v59, 4  ;;  %v767_v45 = vsel %vm728_vm8, %v751_v59, %v766_v3 }
 0x239   : > { %v832_v36 = vrot.slane %v815_v2, 4  ;;  %v835_v48 = vsel %vm728_vm8, 0.0, %v834_v30  ;;  %v836_v37 = vrot.slane %v827_v29, 4  ;;  %v839_v38 = vsel %vm728_vm8, 0.0, %v838_v31 }
 0x23a   : > { %v894_v39 = vsel %vm728_vm8, %v834_v30, %v815_v2  ;;  %v905_v44 = vsel %vm728_vm8, %v838_v31, %v827_v29  ;;  %v1094_v50 = vsel %vm728_vm8, %v1093_v5, %v1025_v1  ;;  %v899_v41 = vrot.slane %v835_v48, 4 }
 0x23b   : > { %v833_v9 = vsel %vm728_vm8, 0.0, %v832_v36  ;;  %v837_v40 = vsel %vm728_vm8, 0.0, %v836_v37  ;;  %v910_v51 = vrot.slane %v839_v38, 4  ;;  %v3350_v42 = vperm.slane %v894_v39, %v3202_v22 }
 0x23c   : > { %v3353_v52 = vperm.slane %v905_v44, %v3202_v22  ;;  %v753_v35 = vsel %vm728_vm8, %v752_v32, %v3233_v57  ;;  %v763_v54 = vperm.slane %v755_v33, %v3230_v53  ;;  %v765_v55 = vsel %vm728_vm8, %v764_v34, %v3227_v49 }
 0x23d   : > { %v759_v3 = vperm.slane %v753_v35, %v3230_v53  ;;  %v775_v58 = vperm.slane %v767_v45, %v3230_v53  ;;  %v1092_v60 = vperm.slane %v1088_v47, %v3202_v22  ;;  %v771_v0 = vperm.slane %v765_v55, %v3230_v53 }
 0x23e   : > { %v778_v5 = vrot.slane %v763_v54, 4  ;;  %v1098_v8 = vperm.slane %v1094_v50, %v3202_v22  ;;  %v1109_v16 = vperm.slane %v1105_v11, %v3202_v22  ;;  %v1124_v23 = vrot.slane %v3293_v6, 4 }
 0x23f   : > { %v776_v15 = vrot.slane %v759_v3, 4  ;;  %v782_v57 = vrot.slane %v775_v58, 4  ;;  %v1112_v20 = vrot.slane %v1092_v60, 4  ;;  %v780_v21 = vrot.slane %v771_v0, 4 }
 0x240   : > { %v779_v62 = vsel %vm728_vm8, 0.0, %v778_v5  ;;  %v840_v49 = vsel %vm728_vm8, %v778_v5, %v759_v3  ;;  %v3371_v24 = vsel %vm728_vm8, %v899_v41, %v833_v9  ;;  %v3376_v4 = vsel %vm728_vm8, %v910_v51, %v837_v40 }
 0x241   : > { %v777_v25 = vsel %vm728_vm8, 0.0, %v776_v15  ;;  %v783_v26 = vsel %vm728_vm8, 0.0, %v782_v57  ;;  %v845_v61 = vrot.slane %v779_v62, 4  ;;  %v851_v27 = vsel %vm728_vm8, %v782_v57, %v771_v0 }
 0x242   : > { %v856_v13 = vrot.slane %v783_v26, 4  ;;  %v1113_v59 = vsel %vm728_vm8, %v1098_v8, %v1112_v20  ;;  %v781_v63 = vsel %vm728_vm8, 0.0, %v780_v21  ;;  %v3382_v17 = vperm.slane %v840_v49, %v3202_v22 }
 0x243   : > { %v846_v1 = vsel %vm728_vm8, %v845_v61, %v777_v25  ;;  %v1125_v2 = vsel %vm728_vm8, %v1109_v16, %v1124_v23  ;;  %v3387_v29 = vperm.slane %v1113_v59, %v3230_v53  ;;  %v1142_v31 = vsel %vm728_vm8, %v3278_v43, %v3274_v46 }
 0x244   : > { %v3390_v30 = vperm.slane %v1125_v2, %v3230_v53  ;;  %v1148_v32 = vsel %vm728_vm8, %v1147_v14, %v1081_v28  ;;  %v3399_v33 = vperm.slane %v851_v27, %v3202_v22  ;;  %v1146_v34 = vperm.slane %v1142_v31, %v3202_v22 }
 0x245   : > { %v1152_v47 = vperm.slane %v1148_v32, %v3202_v22  ;;  %v1159_v36 = vsel %vm728_vm8, %v1158_v19, %v3304_v12  ;;  %v857_v48 = vsel %vm728_vm8, %v856_v13, %v781_v63  ;;  %v1178_v56 = vrot.slane %v3310_v18, 4 }
 0x246   : > { %v1138_v46 = vrot.slane %v3390_v30, 4  ;;  %v1163_v43 = vperm.slane %v1159_v36, %v3202_v22  ;;  %v1166_v14 = vrot.slane %v1146_v34, 4  ;;  %v1110_v28 = vrot.slane %v1098_v8, 4 }
 0x247   : > { %v1122_v37 = vrot.slane %v1109_v16, 4  ;;  %v1164_v38 = vrot.slane %v1152_v47, 4  ;;  %v1140_v44 = vrot.slane %v3387_v29, 4  ;;  %v850_v58 = vperm.slane %v846_v1, %v3202_v22 }
 0x248   : > { %v1139_v39 = vsel %vm728_vm8, %v1138_v46, %v3387_v29  ;;  %v1179_v7 = vsel %vm728_vm8, %v1163_v43, %v1178_v56  ;;  %v1176_v12 = vrot.slane %v1163_v43, 4  ;;  %v1167_v19 = vsel %vm728_vm8, %v1152_v47, %v1166_v14 }
 0x249   : > { %v3417_v45 = vperm.slane %v1179_v7, %v3230_v53  ;;  %v1200_v50 = vpack.c.bf16 %v1139_v39, %v1139_v39  ;;  %v1111_v9 = vsel %vm728_vm8, %v1110_v28, %v1092_v60  ;;  %v3421_v40 = vperm.slane %v1167_v19, %v3230_v53 }
 0x24a   : > { %v1117_v41 = vperm.slane %v1111_v9, %v3230_v53  ;;  %v1123_v51 = vsel %vm728_vm8, %v1122_v37, %v3293_v6  ;;  %v1165_v35 = vsel %vm728_vm8, %v1164_v38, %v1146_v34  ;;  %v1177_v60 = vsel %vm728_vm8, %v1176_v12, %v3310_v18 }
 0x24b   : > { %v1192_v54 = vrot.slane %v3417_v45, 4  ;;  %v1129_v3 = vperm.slane %v1123_v51, %v3230_v53  ;;  %v1171_v55 = vperm.slane %v1165_v35, %v3230_v53  ;;  %v1520_v0 = vunpack.c.l.b16 %v1200_v50 }
 0x24c   : > { %v1136_v5 = vrot.slane %v1117_v41, 4  ;;  %v861_v8 = vperm.slane %v857_v48, %v3202_v22  ;;  %v1183_v15 = vperm.slane %v1177_v60, %v3230_v53  ;;  %v864_v62 = vrot.slane %v3382_v17, 4 }
 0x24d   : > { %v1193_v6 = vsel %vm728_vm8, %v1192_v54, %v3421_v40  ;;  %v1134_v11 = vrot.slane %v1129_v3, 4  ;;  %v1190_v57 = vrot.slane %v1171_v55, 4  ;;  %v876_v21 = vrot.slane %v3399_v33, 4 }
 0x24e   : > { %v1201_v16 = vpack.c.bf16 %v1193_v6, %v1193_v6  ;;  %v1137_v20 = vsel %vm728_vm8, %v1129_v3, %v1136_v5  ;;  %v1188_v18 = vrot.slane %v1183_v15, 4  ;;  %v865_v13 = vsel %vm728_vm8, %v850_v58, %v864_v62 }
 0x24f   : > { %v1135_v49 = vsel %vm728_vm8, %v1134_v11, %v1117_v41  ;;  %v1191_v23 = vsel %vm728_vm8, %v1183_v15, %v1190_v57  ;;  %v1198_v25 = vpack.c.bf16 %v1137_v20, %v1137_v20  ;;  %v877_v1 = vsel %vm728_vm8, %v861_v8, %v876_v21 }
 0x250   : > { %v1521_v26 = vunpack.c.l.b16 %v1201_v16  ;;  %v1196_v61 = vpack.c.bf16 %v1135_v49, %v1135_v49  ;;  %v1199_v27 = vpack.c.bf16 %v1191_v23, %v1191_v23  ;;  %v1189_v59 = vsel %vm728_vm8, %v1188_v18, %v1171_v55 }
 0x251   : > { %v1490_v63 = vunpack.c.l.b16 %v1198_v25  ;;  %v1197_v31 = vpack.c.bf16 %v1189_v59, %v1189_v59  ;;  %v3446_v47 = vperm.slane %v865_v13, %v3230_v53  ;;  %v3449_v36 = vperm.slane %v877_v1, %v3230_v53 }
 0x252   : > { %v1522_v2 = vpack.c.b16 %v1521_v26, %v1520_v0  ;;  %v1459_v32 = vunpack.c.l.b16 %v1196_v61  ;;  %v1491_v34 = vunpack.c.l.b16 %v1199_v27  ;;  %v904_v48 = vperm.slane %v3371_v24, %v3202_v22 }
 0x253   : > { %v915_v46 = vperm.slane %v3376_v4, %v3202_v22  ;;  %v1460_v56 = vunpack.c.l.b16 %v1197_v31  ;;  %v918_v28 = vrot.slane %v3350_v42, 4  ;;  %v890_v37 = vrot.slane %v3449_v36, 4 }
 0x254   : > { %v1527_v43 = vsel %vm1462_vm9, %v1522_v2, 0  ;;  %v1492_v14 = vpack.c.b16 %v1491_v34, %v1490_v63  ;;  %v930_v38 = vrot.slane %v3353_v52, 4  ;;  %v862_v39 = vrot.slane %v850_v58, 4 }
 0x255   : > { %1536 = vmatpush.bf16.xpose.msrb.mxu0 %v1527_v43  ;;  %v874_v7 = vrot.slane %v861_v8, 4  ;;  %v1194_v12 = vrot.slane %v3421_v40, 4  ;;  %v1461_v19 = vpack.c.b16 %v1460_v56, %v1459_v32  ;;  %v919_v4 = vsel %vm728_vm8, %v904_v48, %v918_v28 }
 0x256   : > { %v1497_v24 = vsel %vm1462_vm9, %v1492_v14, 0  ;;  %v891_v50 = vsel %vm728_vm8, %v890_v37, %v3446_v47  ;;  %v931_v9 = vsel %vm728_vm8, %v915_v46, %v930_v38  ;;  %v863_v41 = vsel %vm728_vm8, %v862_v39, %v3382_v17 }
 0x257   : > { %v916_v51 = vrot.slane %v904_v48, 4  ;;  %v1467_v35 = vsel %vm1462_vm9, %v1461_v19, 0  ;;  %v939_v54 = vperm.slane %v931_v9, %v3230_v53  ;;  %v952_v40 = vpack.c.bf16 %v891_v50, %v891_v50 }
 0x258   : > { %1476 = vmatpush.bf16.xpose.msra.mxu3 %v1467_v35  ;;  %v875_v3 = vsel %vm728_vm8, %v874_v7, %v3399_v33  ;;  %v928_v55 = vrot.slane %v915_v46, 4  ;;  %v927_v58 = vperm.slane %v919_v4, %v3230_v53  ;;  %v869_v60 = vperm.slane %v863_v41, %v3230_v53 }
 0x259   : > { %v944_v0 = vrot.slane %v939_v54, 4  ;;  %v881_v5 = vperm.slane %v875_v3, %v3230_v53  ;;  %v917_v17 = vsel %vm728_vm8, %v916_v51, %v3350_v42  ;;  %v1141_v33 = vsel %vm728_vm8, %v3390_v30, %v1140_v44 }
 0x25a   : > { %v929_v8 = vsel %vm728_vm8, %v928_v55, %v3353_v52  ;;  %v1195_v6 = vsel %vm728_vm8, %v3417_v45, %v1194_v12  ;;  %v1202_v16 = vpack.c.bf16 %v1141_v33, %v1141_v33  ;;  %v1515_v62 = vunpack.c.l.b16 %v952_v40  ;;  %v702_v33 = vpop.f32.mrf.mxu2 }
 0x25b   : > { %v945_v11 = vsel %vm728_vm8, %v944_v0, %v927_v58  ;;  %v886_v15 = vrot.slane %v881_v5, 4  ;;  %v935_v57 = vperm.slane %v929_v8, %v3230_v53  ;;  %v1203_v42 = vpack.c.bf16 %v1195_v6, %v1195_v6 }
 0x25c   : > { %v953_v20 = vpack.c.bf16 %v945_v11, %v945_v11  ;;  %v923_v52 = vperm.slane %v917_v17, %v3230_v53  ;;  %v1550_v30 = vunpack.c.l.b16 %v1202_v16  ;;  %v888_v59 = vrot.slane %v869_v60, 4 }
 0x25d   : > { %v887_v21 = vsel %vm728_vm8, %v886_v15, %v869_v60  ;;  %v940_v29 = vrot.slane %v935_v57, 4  ;;  %v1551_v44 = vunpack.c.l.b16 %v1203_v42  ;;  %v892_v56 = vrot.slane %v3446_v47, 4 }
 0x25e   : > { %v1516_v49 = vunpack.c.l.b16 %v953_v20  ;;  %v948_v18 = vpack.c.bf16 %v887_v21, %v887_v21  ;;  %v942_v63 = vrot.slane %v923_v52, 4  ;;  %v889_v2 = vsel %vm728_vm8, %v881_v5, %v888_v59 }
 0x25f   : > { %v941_v45 = vsel %vm728_vm8, %v940_v29, %v923_v52  ;;  %v1552_v27 = vpack.c.b16 %v1551_v44, %v1550_v30  ;;  %v950_v32 = vpack.c.bf16 %v889_v2, %v889_v2  ;;  %v946_v14 = vrot.slane %v927_v58, 4 }
 0x260   : > { %1506 = vmatpush.bf16.xpose.msrb.mxu3 %v1497_v24  ;;  %v1517_v23 = vpack.c.b16 %v1516_v49, %v1515_v62  ;;  %v949_v25 = vpack.c.bf16 %v941_v45, %v941_v45  ;;  %v1454_v26 = vunpack.c.l.b16 %v948_v18  ;;  %v943_v31 = vsel %vm728_vm8, %v935_v57, %v942_v63  ;;  %v2961_v62 = vld [vmem:[%s4021_s7] ss:$0 sm:$0xff] }
 0x261   : > { %v1557_v1 = vsel %vm1462_vm9, %v1552_v27, 0  ;;  %v951_v34 = vpack.c.bf16 %v943_v31, %v943_v31  ;;  %v1485_v48 = vunpack.c.l.b16 %v950_v32  ;;  %v893_v28 = vsel %vm728_vm8, %v3449_v36, %v892_v56 }
 0x262   : > { %2712 = vmatmul.msk.bf16.vlgmr.msrb.gmra.mxu0 %vm1462_vm9, %v1517_v23  ;;  %v1455_v61 = vunpack.c.l.b16 %v949_v25  ;;  %v947_v37 = vsel %vm728_vm8, %v939_v54, %v946_v14  ;;  %v954_v38 = vpack.c.bf16 %v893_v28, %v893_v28  ;;  %v704_v16 = vpop.f32.mrf.mxu2  ;;  %v3513_v21 = vadd.f32 %v2961_v62, %v702_v33 }
 0x263   : > { %v1486_v46 = vunpack.c.l.b16 %v951_v34  ;;  %v955_v39 = vpack.c.bf16 %v947_v37, %v947_v37  ;;  %v3511_v42 = vadd.f32 %v2961_v62, %v704_v16 }
 0x264   : > { %v1456_v13 = vpack.c.b16 %v1455_v61, %v1454_v26  ;;  %v1545_v7 = vunpack.c.l.b16 %v954_v38 }
 0x265   : > { %v1487_v43 = vpack.c.b16 %v1486_v46, %v1485_v48  ;;  %v1546_v12 = vunpack.c.l.b16 %v955_v39  ;;  %v2928_v52 = vpack.i.bf16 %v3511_v42, %v3513_v21 }
 0x266   : > { %2710 = vmatmul.msk.bf16.vlgmr.msra.gmra.mxu3 %vm1462_vm9, %v1456_v13 }
 0x267   : > { %v1547_v19 = vpack.c.b16 %v1546_v12, %v1545_v7 }
 0x268   : > { %1566 = vmatpush.bf16.xpose.msra.mxu3 %v1557_v1 }
 0x276   : > { %2711 = vmatmul.msk.bf16.vlgmr.msrb.gmra.mxu3 %vm1462_vm9, %v1487_v43 }
 0x286   : > { %2713 = vmatmul.msk.bf16.vlgmr.msra.gmra.mxu3 %vm1462_vm9, %v1547_v19 }
 0x2df   : > { %v1538_v24 = vpop.f32.mrf.mxu0 }
 0x2e0   : > { %v1577_v4 = vmul.f32 0.25, %v1538_v24 }
 0x2e2   : > { %v1593_v50 = vsel %vm1462_vm9, %v1577_v4, -inf }
 0x2e3   : > { %1594 = vmax.xlane.f32.xlu0 %v1593_v50 }
 0x2e7   : > { %v1540_v51 = vpop.f32.mrf.mxu0 }
 0x2e8   : > { %v1578_v36 = vmul.f32 0.25, %v1540_v51 }
 0x2e9   : > { %v1478_v47 = vpop.f32.mrf.mxu3 }
 0x2ea   : > { %v1573_v9 = vmul.f32 0.25, %v1478_v47  ;;  %v1596_v40 = vsel %vm1462_vm9, %v1578_v36, -inf }
 0x2ec   : > { %v1581_v41 = vsel %vm1462_vm9, %v1573_v9, -inf }
 0x2ed   : > { %1582 = vmax.xlane.f32.xlu2 %v1581_v41 }
 0x2f1   : > { %v1480_v35 = vpop.f32.mrf.mxu3 }
 0x2f2   : > { %v1574_v54 = vmul.f32 0.25, %v1480_v35 }
 0x2f4   : > { %v1584_v3 = vsel %vm1462_vm9, %v1574_v54, -inf }
 0x2f5   : > { %1597 = vmax.xlane.f32.xlu2 %v1596_v40  ;;  %1585 = vmax.xlane.f32.xlu0 %v1584_v3  ;;  %v1226_v40 = vrot.slane %v3513_v21, 4  ;;  %v1282_v3 = vrot.slane %v3511_v42, 4 }
 0x2f9   : > { %v1508_v55 = vpop.f32.mrf.mxu3 }
 0x2fa   : > { %v1575_v58 = vmul.f32 0.25, %v1508_v55 }
 0x2fc   : > { %v1587_v0 = vsel %vm1462_vm9, %v1575_v58, -inf }
 0x2fd   : > { %1588 = vmax.xlane.f32.xlu1 %v1587_v0 }
 0x301   : > { %v1510_v60 = vpop.f32.mrf.mxu3 }
 0x302   : > { %v1576_v5 = vmul.f32 0.25, %v1510_v60 }
 0x304   : > { %v1590_v17 = vsel %vm1462_vm9, %v1576_v5, -inf }
 0x305   : > { %1591 = vmax.xlane.f32.xlu2 %v1590_v17 }
 0x309   : > { %v1568_v8 = vpop.f32.mrf.mxu3 }
 0x30a   : > { %v1579_v6 = vmul.f32 0.25, %v1568_v8 }
 0x30c   : > { %v1599_v11 = vsel %vm1462_vm9, %v1579_v6, -inf }
 0x30d   : > { %1600 = vmax.xlane.f32.xlu1 %v1599_v11 }
 0x311   : > { %v1570_v15 = vpop.f32.mrf.mxu3 }
 0x312   : > { %v1580_v57 = vmul.f32 0.25, %v1570_v15 }
 0x314   : > { %v1602_v20 = vsel %vm1462_vm9, %v1580_v57, -inf }
 0x315   : > { %1603 = vmax.xlane.f32.xlu0 %v1602_v20 }
 0x31d   : > { %2929 = vrot.lane.b32.xlu2 %v2928_v52, %s3029_s17 }
 0x326   : > { %2934 = vrot.lane.b32.xlu1 %v2928_v52, %s3030_s18 }
 0x329   : > { %2939 = vrot.lane.b32.xlu0 %v2928_v52, %s3028_s16 }
 0x356   : > { %v1595_v29 = vpop.xlane.xlu0 %1594 }
 0x357   : > { %v1609_v49 = vsub.f32 %v1577_v4, %v1595_v29 }
 0x359   : > { %v1621_v18 = vmul.f32 1.442695, %v1609_v49 }
 0x35b   : > { %2973 = vpow2.f32 %v1621_v18 }
 0x360   : > { %v1583_v30 = vpop.xlane.xlu2 %1582 }
 0x361   : > { %v3520_v44 = vpop.eup %2973  ;;  %v1605_v45 = vsub.f32 %v1573_v9, %v1583_v30 }
 0x362   : > { %v1641_v23 = vsel %vm1462_vm9, %v3520_v44, 0.0 }
 0x363   : > { %v1613_v25 = vmul.f32 1.442695, %v1605_v45  ;;  %1642 = vadd.xlane.f32.xlu0 %v1641_v23 }
 0x365   : > { %2975 = vpow2.f32 %v1613_v25 }
 0x368   : > { %v1586_v26 = vpop.xlane.xlu0 %1585  ;;  %v1598_v63 = vpop.xlane.xlu2 %1597 }
 0x369   : > { %v1606_v61 = vsub.f32 %v1574_v54, %v1586_v26  ;;  %v1610_v31 = vsub.f32 %v1578_v36, %v1598_v63 }
 0x36b   : > { %v3524_v27 = vpop.eup %2975  ;;  %v1615_v13 = vmul.f32 1.442695, %v1606_v61  ;;  %v1623_v46 = vmul.f32 1.442695, %v1610_v31 }
 0x36c   : > { %v1629_v59 = vsel %vm1462_vm9, %v3524_v27, 0.0 }
 0x36d   : > { %1630 = vadd.xlane.f32.xlu2 %v1629_v59  ;;  %2977 = vpow2.f32 %v1615_v13 }
 0x370   : > { %v1589_v1 = vpop.xlane.xlu1 %1588 }
 0x371   : > { %v1607_v2 = vsub.f32 %v1575_v58, %v1589_v1 }
 0x373   : > { %v1617_v32 = vmul.f32 1.442695, %v1607_v2  ;;  %v3528_v34 = vpop.eup %2977 }
 0x374   : > { %v1632_v48 = vsel %vm1462_vm9, %v3528_v34, 0.0 }
 0x375   : > { %2979 = vpow2.f32 %v1617_v32  ;;  %1633 = vadd.xlane.f32.xlu0 %v1632_v48 }
 0x376   : > { %2981 = vpow2.f32 %v1623_v46 }
 0x378   : > { %v1592_v43 = vpop.xlane.xlu2 %1591 }
 0x379   : > { %v1608_v56 = vsub.f32 %v1576_v5, %v1592_v43 }
 0x37b   : > { %v3532_v14 = vpop.eup %2979  ;;  %v1619_v28 = vmul.f32 1.442695, %v1608_v56 }
 0x37c   : > { %v1635_v37 = vsel %vm1462_vm9, %v3532_v14, 0.0  ;;  %v3536_v39 = vpop.eup %2981 }
 0x37d   : > { %2983 = vpow2.f32 %v1619_v28  ;;  %1636 = vadd.xlane.f32.xlu1 %v1635_v37  ;;  %v1644_v4 = vsel %vm1462_vm9, %v3536_v39, 0.0 }
 0x380   : > { %v1601_v38 = vpop.xlane.xlu1 %1600  ;;  %v2930_v54 = vpop.permute.xlu2 %2929 }
 0x381   : > { %v1611_v7 = vsub.f32 %v1579_v6, %v1601_v38  ;;  %v2932_v58 = vunpack.i.h.bf16 %v2930_v54  ;;  %v2931_v0 = vunpack.i.l.bf16 %v2930_v54 }
 0x383   : > { %v3538_v12 = vpop.eup %2983  ;;  %v1625_v19 = vmul.f32 1.442695, %v1611_v7  ;;  %v1294_v62 = vrot.slane %v2932_v58, 4  ;;  %v1238_v52 = vrot.slane %v2931_v0, 4 }
 0x384   : > { %v1638_v24 = vsel %vm1462_vm9, %v3538_v12, 0.0 }
 0x385   : > { %2985 = vpow2.f32 %v1625_v19  ;;  %1639 = vadd.xlane.f32.xlu2 %v1638_v24  ;;  %1645 = vadd.xlane.f32.xlu1 %v1644_v4 }
 0x388   : > { %v1604_v50 = vpop.xlane.xlu0 %1603 }
 0x389   : > { %v1612_v47 = vsub.f32 %v1580_v57, %v1604_v50 }
 0x38b   : > { %v3544_v9 = vpop.eup %2985  ;;  %v1627_v41 = vmul.f32 1.442695, %v1612_v47 }
 0x38c   : > { %v1647_v51 = vsel %vm1462_vm9, %v3544_v9, 0.0 }
 0x38d   : > { %2987 = vpow2.f32 %v1627_v41  ;;  %1648 = vadd.xlane.f32.xlu2 %v1647_v51 }
 0x393   : > { %v3548_v36 = vpop.eup %2987 }
 0x394   : > { %v1650_v35 = vsel %vm1462_vm9, %v3548_v36, 0.0 }
 0x395   : > { %1651 = vadd.xlane.f32.xlu0 %v1650_v35 }
 0x398   : > { %v2935_v55 = vpop.permute.xlu1 %2934 }
 0x399   : > { %v2937_v60 = vunpack.i.h.bf16 %v2935_v55  ;;  %v2936_v5 = vunpack.i.l.bf16 %v2935_v55 }
 0x39b   : > { %v1280_v17 = vrot.slane %v2937_v60, 4  ;;  %v1283_v8 = vsel %vm728_vm8, %v2937_v60, %v1282_v3  ;;  %v1224_v33 = vrot.slane %v2936_v5, 4  ;;  %v1227_v6 = vsel %vm728_vm8, %v2936_v5, %v1226_v40  ;;  %v2940_v11 = vpop.permute.xlu0 %2939 }
 0x39c   : > { %v1291_v15 = vperm.slane %v1283_v8, %v3202_v22  ;;  %v1235_v57 = vperm.slane %v1227_v6, %v3202_v22  ;;  %v2942_v16 = vunpack.i.h.bf16 %v2940_v11  ;;  %v2941_v20 = vunpack.i.l.bf16 %v2940_v11 }
 0x39d   : > { %v1281_v29 = vsel %vm728_vm8, %v1280_v17, %v3511_v42  ;;  %v1225_v49 = vsel %vm728_vm8, %v1224_v33, %v3513_v21 }
 0x39e   : > { %v1287_v18 = vperm.slane %v1281_v29, %v3202_v22  ;;  %v1318_v30 = vrot.slane %v1291_v15, 4  ;;  %v1231_v45 = vperm.slane %v1225_v49, %v3202_v22  ;;  %v1262_v23 = vrot.slane %v1235_v57, 4 }
 0x39f   : > { %v1292_v25 = vrot.slane %v2942_v16, 4  ;;  %v1295_v26 = vsel %vm728_vm8, %v2942_v16, %v1294_v62  ;;  %v1236_v61 = vrot.slane %v2941_v20, 4  ;;  %v1239_v13 = vsel %vm728_vm8, %v2941_v20, %v1238_v52 }
 0x3a0   : > { %v1306_v59 = vrot.slane %v1287_v18, 4  ;;  %v1303_v63 = vperm.slane %v1295_v26, %v3202_v22  ;;  %v1247_v42 = vperm.slane %v1239_v13, %v3202_v22  ;;  %v1250_v1 = vrot.slane %v1231_v45, 4 }
 0x3a1   : > { %v1293_v21 = vsel %vm728_vm8, %v1292_v25, %v2932_v58  ;;  %v1237_v2 = vsel %vm728_vm8, %v1236_v61, %v2931_v0 }
 0x3a2   : > { %v1299_v31 = vperm.slane %v1293_v21, %v3202_v22  ;;  %v1316_v32 = vrot.slane %v1303_v63, 4  ;;  %v1319_v48 = vsel %vm728_vm8, %v1303_v63, %v1318_v30  ;;  %v1243_v46 = vperm.slane %v1237_v2, %v3202_v22 }
 0x3a3   : > { %v1327_v43 = vperm.slane %v1319_v48, %v3230_v53  ;;  %v1260_v56 = vrot.slane %v1247_v42, 4  ;;  %v1263_v28 = vsel %vm728_vm8, %v1247_v42, %v1262_v23 }
 0x3a4   : > { %v1304_v37 = vrot.slane %v1299_v31, 4  ;;  %v1307_v38 = vsel %vm728_vm8, %v1299_v31, %v1306_v59  ;;  %v1317_v7 = vsel %vm728_vm8, %v1316_v32, %v1291_v15  ;;  %v1248_v19 = vrot.slane %v1243_v46, 4 }
 0x3a5   : > { %v1315_v24 = vperm.slane %v1307_v38, %v3230_v53  ;;  %v1323_v4 = vperm.slane %v1317_v7, %v3230_v53  ;;  %v1334_v50 = vrot.slane %v1327_v43, 4  ;;  %v1251_v47 = vsel %vm728_vm8, %v1243_v46, %v1250_v1 }
 0x3a6   : > { %v1305_v41 = vsel %vm728_vm8, %v1304_v37, %v1287_v18  ;;  %v1249_v51 = vsel %vm728_vm8, %v1248_v19, %v1231_v45  ;;  %v1259_v35 = vperm.slane %v1251_v47, %v3230_v53  ;;  %v1261_v54 = vsel %vm728_vm8, %v1260_v56, %v1235_v57 }
 0x3a7   : > { %v1311_v40 = vperm.slane %v1305_v41, %v3230_v53  ;;  %v1330_v3 = vrot.slane %v1315_v24, 4  ;;  %v1332_v55 = vrot.slane %v1323_v4, 4  ;;  %v1335_v58 = vsel %vm728_vm8, 0.0, %v1334_v50 }
 0x3a8   : > { %v1401_v0 = vsel %vm728_vm8, %v1334_v50, %v1323_v4  ;;  %v1406_v60 = vrot.slane %v1335_v58, 4  ;;  %v1255_v5 = vperm.slane %v1249_v51, %v3230_v53  ;;  %v1267_v17 = vperm.slane %v1261_v54, %v3230_v53 }
 0x3a9   : > { %v1328_v8 = vrot.slane %v1311_v40, 4  ;;  %v1331_v33 = vsel %vm728_vm8, 0.0, %v1330_v3  ;;  %v1333_v6 = vsel %vm728_vm8, 0.0, %v1332_v55  ;;  %v1390_v11 = vsel %vm728_vm8, %v1330_v3, %v1311_v40 }
 0x3aa   : > { %v1394_v15 = vperm.slane %v1390_v11, %v3202_v22  ;;  %v1395_v57 = vrot.slane %v1331_v33, 4  ;;  %v1405_v16 = vperm.slane %v1401_v0, %v3202_v22  ;;  %v1407_v20 = vsel %vm728_vm8, %v1406_v60, %v1333_v6 }
 0x3ab   : > { %v1329_v62 = vsel %vm728_vm8, 0.0, %v1328_v8  ;;  %v1411_v52 = vperm.slane %v1407_v20, %v3202_v22  ;;  %v1271_v29 = vperm.slane %v1263_v28, %v3230_v53  ;;  %v1272_v49 = vrot.slane %v1255_v5, 4 }
 0x3ac   : > { %v1426_v18 = vrot.slane %v1405_v16, 4  ;;  %v1274_v30 = vrot.slane %v1259_v35, 4  ;;  %v1276_v45 = vrot.slane %v1267_v17, 4  ;;  %v1396_v23 = vsel %vm728_vm8, %v1395_v57, %v1329_v62 }
 0x3ad   : > { %v1273_v25 = vsel %vm728_vm8, 0.0, %v1272_v49  ;;  %v1278_v26 = vrot.slane %v1271_v29, 4  ;;  %v1400_v61 = vperm.slane %v1396_v23, %v3202_v22  ;;  %v1414_v13 = vrot.slane %v1394_v15, 4 }
 0x3ae   : > { %v1275_v59 = vsel %vm728_vm8, 0.0, %v1274_v30  ;;  %v1277_v63 = vsel %vm728_vm8, 0.0, %v1276_v45  ;;  %v1336_v42 = vsel %vm728_vm8, %v1274_v30, %v1255_v5  ;;  %v1427_v1 = vsel %vm728_vm8, %v1411_v52, %v1426_v18 }
 0x3af   : > { %v1279_v21 = vsel %vm728_vm8, 0.0, %v1278_v26  ;;  %v1340_v2 = vperm.slane %v1336_v42, %v3202_v22  ;;  %v1341_v31 = vrot.slane %v1275_v59, 4  ;;  %v1347_v32 = vsel %vm728_vm8, %v1278_v26, %v1267_v17 }
 0x3b0   : > { %v1351_v48 = vperm.slane %v1347_v32, %v3202_v22  ;;  %v1352_v46 = vrot.slane %v1279_v21, 4  ;;  %v1415_v43 = vsel %vm728_vm8, %v1400_v61, %v1414_v13  ;;  %v1435_v56 = vperm.slane %v1427_v1, %v3230_v53 }
 0x3b1   : > { %v1342_v28 = vsel %vm728_vm8, %v1341_v31, %v1273_v25  ;;  %v1360_v37 = vrot.slane %v1340_v2, 4  ;;  %v1423_v38 = vperm.slane %v1415_v43, %v3230_v53  ;;  %v1412_v7 = vrot.slane %v1400_v61, 4 }
 0x3b2   : > { %v1353_v19 = vsel %vm728_vm8, %v1352_v46, %v1277_v63  ;;  %v1372_v24 = vrot.slane %v1351_v48, 4  ;;  %v1346_v4 = vperm.slane %v1342_v28, %v3202_v22  ;;  %v1440_v50 = vrot.slane %v1435_v56, 4 }
 0x3b3   : > { %v1357_v47 = vperm.slane %v1353_v19, %v3202_v22  ;;  %v1413_v41 = vsel %vm728_vm8, %v1412_v7, %v1394_v15  ;;  %v1424_v51 = vrot.slane %v1411_v52, 4  ;;  %v1442_v35 = vrot.slane %v1423_v38, 4 }
 0x3b4   : > { %v1361_v54 = vsel %vm728_vm8, %v1346_v4, %v1360_v37  ;;  %v1441_v40 = vsel %vm728_vm8, %v1440_v50, %v1423_v38  ;;  %v1358_v3 = vrot.slane %v1346_v4, 4  ;;  %v1419_v55 = vperm.slane %v1413_v41, %v3230_v53 }
 0x3b5   : > { %v1369_v58 = vperm.slane %v1361_v54, %v3230_v53  ;;  %v1373_v0 = vsel %vm728_vm8, %v1357_v47, %v1372_v24  ;;  %v1449_v60 = vpack.c.bf16 %v1441_v40, %v1441_v40  ;;  %v1370_v5 = vrot.slane %v1357_v47, 4 }
 0x3b6   : > { %v1381_v17 = vperm.slane %v1373_v0, %v3230_v53  ;;  %v1359_v8 = vsel %vm728_vm8, %v1358_v3, %v1340_v2  ;;  %v1425_v33 = vsel %vm728_vm8, %v1424_v51, %v1405_v16  ;;  %v1438_v6 = vrot.slane %v1419_v55, 4 }
 0x3b7   : > { %v1741_v11 = vunpack.c.l.b16 %v1449_v60  ;;  %v1365_v15 = vperm.slane %v1359_v8, %v3230_v53  ;;  %v1371_v57 = vsel %vm728_vm8, %v1370_v5, %v1351_v48  ;;  %v1431_v20 = vperm.slane %v1425_v33, %v3230_v53 }
 0x3b8   : > { %v1386_v62 = vrot.slane %v1381_v17, 4  ;;  %v1377_v52 = vperm.slane %v1371_v57, %v3230_v53  ;;  %v1388_v29 = vrot.slane %v1369_v58, 4  ;;  %v1443_v49 = vsel %vm728_vm8, %v1435_v56, %v1442_v35 }
 0x3b9   : > { %v1384_v18 = vrot.slane %v1365_v15, 4  ;;  %v1436_v30 = vrot.slane %v1431_v20, 4  ;;  %v1451_v45 = vpack.c.bf16 %v1443_v49, %v1443_v49  ;;  %v1439_v23 = vsel %vm728_vm8, %v1431_v20, %v1438_v6 }
 0x3ba   : > { %v1387_v16 = vsel %vm728_vm8, %v1386_v62, %v1369_v58  ;;  %v1382_v25 = vrot.slane %v1377_v52, 4  ;;  %v1389_v26 = vsel %vm728_vm8, %v1381_v17, %v1388_v29  ;;  %v1447_v61 = vpack.c.bf16 %v1439_v23, %v1439_v23 }
 0x3bb   : > { %v1448_v13 = vpack.c.bf16 %v1387_v16, %v1387_v16  ;;  %v1437_v59 = vsel %vm728_vm8, %v1436_v30, %v1419_v55  ;;  %v1450_v63 = vpack.c.bf16 %v1389_v26, %v1389_v26  ;;  %v1769_v42 = vunpack.c.l.b16 %v1451_v45 }
 0x3bc   : > { %v1383_v1 = vsel %vm728_vm8, %v1382_v25, %v1365_v15  ;;  %v1445_v21 = vpack.c.bf16 %v1437_v59, %v1437_v59  ;;  %v1385_v2 = vsel %vm728_vm8, %v1377_v52, %v1384_v18  ;;  %v1713_v31 = vunpack.c.l.b16 %v1447_v61 }
 0x3bd   : > { %v1740_v32 = vunpack.c.l.b16 %v1448_v13  ;;  %v1444_v48 = vpack.c.bf16 %v1383_v1, %v1383_v1  ;;  %v1768_v46 = vunpack.c.l.b16 %v1450_v63  ;;  %v1446_v43 = vpack.c.bf16 %v1385_v2, %v1385_v2 }
 0x3be   : > { %v1685_v56 = vunpack.c.l.b16 %v1445_v21 }
 0x3bf   : > { %v1742_v28 = vpack.c.b16 %v1741_v11, %v1740_v32  ;;  %v1684_v37 = vunpack.c.l.b16 %v1444_v48  ;;  %v1770_v38 = vpack.c.b16 %v1769_v42, %v1768_v46  ;;  %v1712_v7 = vunpack.c.l.b16 %v1446_v43 }
 0x3c1   : > { %1754 = vmatpush.bf16.msra.mxu0 %v1742_v28  ;;  %v1686_v19 = vpack.c.b16 %v1685_v56, %v1684_v37  ;;  %1782 = vmatpush.bf16.msrb.mxu1 %v1770_v38  ;;  %v1714_v24 = vpack.c.b16 %v1713_v31, %v1712_v7 }
 0x3c3   : > { %1698 = vmatpush.bf16.msrb.mxu2 %v1686_v19  ;;  %1726 = vmatpush.bf16.msrb.mxu3 %v1714_v24 }
 0x3d6   : > { %v1643_v4 = vpop.xlane.xlu0 %1642 }
 0x3e0   : > { %v1631_v50 = vpop.xlane.xlu2 %1630 }
 0x3e1   : > { %2989 = vrcp.f32 %v1631_v50 }
 0x3e7   : > { %v2990_v41 = vpop.eup %2989 }
 0x3e8   : > { %v1634_v47 = vpop.xlane.xlu0 %1633  ;;  %v1661_v51 = vmul.f32 %v2990_v41, %v3524_v27 }
 0x3e9   : > { %2991 = vrcp.f32 %v1634_v47 }
 0x3ea   : > { %v1669_v40 = vpack.c.bf16 %v1661_v51, %v1661_v51 }
 0x3ec   : > { %v1679_v58 = vunpack.c.l.b16 %v1669_v40 }
 0x3ef   : > { %v2992_v35 = vpop.eup %2991 }
 0x3f0   : > { %v1637_v54 = vpop.xlane.xlu1 %1636  ;;  %v1662_v3 = vmul.f32 %v2992_v35, %v3528_v34 }
 0x3f1   : > { %2993 = vrcp.f32 %v1637_v54 }
 0x3f2   : > { %v1670_v55 = vpack.c.bf16 %v1662_v3, %v1662_v3  ;;  %2995 = vrcp.f32 %v1643_v4 }
 0x3f4   : > { %v1680_v0 = vunpack.c.l.b16 %v1670_v55 }
 0x3f6   : > { %v1681_v60 = vpack.c.b16 %v1680_v0, %v1679_v58 }
 0x3f7   : > { %v2994_v8 = vpop.eup %2993 }
 0x3f8   : > { %v1640_v5 = vpop.xlane.xlu2 %1639  ;;  %v1646_v17 = vpop.xlane.xlu1 %1645  ;;  %2714 = vmatmul.msk.bf16.vlgmr.msrb.gmra.mxu2 %vm1462_vm9, %v1681_v60  ;;  %v1663_v27 = vmul.f32 %v2994_v8, %v3532_v14 }
 0x3f9   : > { %2997 = vrcp.f32 %v1640_v5  ;;  %v2996_v33 = vpop.eup %2995 }
 0x3fa   : > { %2999 = vrcp.f32 %v1646_v17  ;;  %v1665_v6 = vmul.f32 %v2996_v33, %v3520_v44  ;;  %v1671_v15 = vpack.c.bf16 %v1663_v27, %v1663_v27 }
 0x3fc   : > { %v1673_v62 = vpack.c.bf16 %v1665_v6, %v1665_v6  ;;  %v1707_v18 = vunpack.c.l.b16 %v1671_v15 }
 0x3fe   : > { %v1735_v45 = vunpack.c.l.b16 %v1673_v62 }
 0x3ff   : > { %v2998_v11 = vpop.eup %2997 }
 0x400   : > { %v3000_v34 = vpop.eup %2999  ;;  %v1664_v57 = vmul.f32 %v2998_v11, %v3538_v12  ;;  %v1649_v20 = vpop.xlane.xlu2 %1648 }
 0x401   : > { %v1666_v52 = vmul.f32 %v3000_v34, %v3536_v39  ;;  %3001 = vrcp.f32 %v1649_v20 }
 0x402   : > { %v1672_v29 = vpack.c.bf16 %v1664_v57, %v1664_v57 }
 0x403   : > { %v1674_v49 = vpack.c.bf16 %v1666_v52, %v1666_v52 }
 0x404   : > { %v1708_v30 = vunpack.c.l.b16 %v1672_v29 }
 0x405   : > { %v1736_v23 = vunpack.c.l.b16 %v1674_v49 }
 0x406   : > { %v1709_v16 = vpack.c.b16 %v1708_v30, %v1707_v18 }
 0x407   : > { %v1737_v14 = vpack.c.b16 %v1736_v23, %v1735_v45  ;;  %v3002_v44 = vpop.eup %3001 }
 0x408   : > { %v1652_v25 = vpop.xlane.xlu0 %1651  ;;  %2715 = vmatmul.msk.bf16.vlgmr.msrb.gmra.mxu3 %vm1462_vm9, %v1709_v16  ;;  %v1667_v12 = vmul.f32 %v3002_v44, %v3544_v9 }
 0x409   : > { %3003 = vrcp.f32 %v1652_v25  ;;  %2716 = vmatmul.msk.bf16.vlgmr.msra.gmra.mxu0 %vm1462_vm9, %v1737_v14 }
 0x40a   : > { %v1675_v39 = vpack.c.bf16 %v1667_v12, %v1667_v12 }
 0x40c   : > { %v1763_v59 = vunpack.c.l.b16 %v1675_v39 }
 0x40f   : > { %v3004_v26 = vpop.eup %3003 }
 0x410   : > { %v1668_v61 = vmul.f32 %v3004_v26, %v3548_v36 }
 0x412   : > { %v1676_v13 = vpack.c.bf16 %v1668_v61, %v1668_v61 }
 0x414   : > { %v1764_v63 = vunpack.c.l.b16 %v1676_v13 }
 0x416   : > { %v1765_v42 = vpack.c.b16 %v1764_v63, %v1763_v59 }
 0x418   : > { %2717 = vmatmul.msk.bf16.vlgmr.msrb.gmra.mxu1 %vm1462_vm9, %v1765_v42 }
 0x47b   : > { %v1700_v1 = vpop.f32.mrf.mxu2 }
 0x47c   : > { %v1791_v31 = vrot.slane %v1700_v1, 4 }
 0x483   : > { %v1702_v48 = vpop.f32.mrf.mxu2 }
 0x484   : > { %v1847_v28 = vrot.slane %v1702_v48, 4 }
 0x486   : > { %v1756_v21 = vpop.f32.mrf.mxu0 }
 0x487   : > { %v1789_v2 = vrot.slane %v1756_v21, 4  ;;  %v1792_v46 = vsel %vm728_vm8, %v1756_v21, %v1791_v31 }
 0x488   : > { %v1800_v36 = vperm.slane %v1792_v46, %v3202_v22 }
 0x489   : > { %v1790_v9 = vsel %vm728_vm8, %v1789_v2, %v1700_v1 }
 0x48a   : > { %v1796_v37 = vperm.slane %v1790_v9, %v3202_v22  ;;  %v1827_v47 = vrot.slane %v1800_v36, 4 }
 0x48b   : > { %v1728_v43 = vpop.f32.mrf.mxu3 }
 0x48c   : > { %v1803_v38 = vrot.slane %v1728_v43, 4  ;;  %v1815_v51 = vrot.slane %v1796_v37, 4 }
 0x48e   : > { %v1758_v32 = vpop.f32.mrf.mxu0 }
 0x48f   : > { %v1845_v56 = vrot.slane %v1758_v32, 4  ;;  %v1848_v7 = vsel %vm728_vm8, %v1758_v32, %v1847_v28 }
 0x490   : > { %v1856_v35 = vperm.slane %v1848_v7, %v3202_v22 }
 0x491   : > { %v1846_v24 = vsel %vm728_vm8, %v1845_v56, %v1702_v48 }
 0x492   : > { %v1852_v40 = vperm.slane %v1846_v24, %v3202_v22  ;;  %v1883_v34 = vrot.slane %v1856_v35, 4 }
 0x493   : > { %v1730_v0 = vpop.f32.mrf.mxu3 }
 0x494   : > { %v1871_v11 = vrot.slane %v1852_v40, 4  ;;  %v1859_v15 = vrot.slane %v1730_v0, 4 }
 0x495   : > { %v1784_v19 = vpop.f32.mrf.mxu1 }
 0x496   : > { %v1801_v4 = vrot.slane %v1784_v19, 4  ;;  %v1804_v50 = vsel %vm728_vm8, %v1784_v19, %v1803_v38 }
 0x497   : > { %v1812_v41 = vperm.slane %v1804_v50, %v3202_v22 }
 0x498   : > { %v1802_v54 = vsel %vm728_vm8, %v1801_v4, %v1728_v43 }
 0x499   : > { %v1808_v3 = vperm.slane %v1802_v54, %v3202_v22  ;;  %v1825_v55 = vrot.slane %v1812_v41, 4  ;;  %v1828_v58 = vsel %vm728_vm8, %v1812_v41, %v1827_v47 }
 0x49a   : > { %v1836_v60 = vperm.slane %v1828_v58, %v3230_v53 }
 0x49b   : > { %v1813_v5 = vrot.slane %v1808_v3, 4  ;;  %v1816_v17 = vsel %vm728_vm8, %v1808_v3, %v1815_v51  ;;  %v1826_v8 = vsel %vm728_vm8, %v1825_v55, %v1800_v36 }
 0x49c   : > { %v1824_v33 = vperm.slane %v1816_v17, %v3230_v53  ;;  %v1832_v27 = vperm.slane %v1826_v8, %v3230_v53  ;;  %v1843_v6 = vrot.slane %v1836_v60, 4 }
 0x49d   : > { %v1814_v57 = vsel %vm728_vm8, %v1813_v5, %v1796_v37  ;;  %v1786_v20 = vpop.f32.mrf.mxu1 }
 0x49e   : > { %v1820_v62 = vperm.slane %v1814_v57, %v3230_v53  ;;  %v1839_v52 = vrot.slane %v1824_v33, 4  ;;  %v1841_v29 = vrot.slane %v1832_v27, 4  ;;  %v1844_v49 = vsel %vm728_vm8, 0.0, %v1843_v6 }
 0x49f   : > { %v1912_v18 = vsel %vm728_vm8, %v1843_v6, %v1832_v27  ;;  %v1917_v30 = vrot.slane %v1844_v49, 4  ;;  %v1857_v45 = vrot.slane %v1786_v20, 4  ;;  %v1860_v23 = vsel %vm728_vm8, %v1786_v20, %v1859_v15 }
 0x4a0   : > { %v1837_v16 = vrot.slane %v1820_v62, 4  ;;  %v1840_v14 = vsel %vm728_vm8, 0.0, %v1839_v52  ;;  %v1842_v25 = vsel %vm728_vm8, 0.0, %v1841_v29  ;;  %v1901_v44 = vsel %vm728_vm8, %v1839_v52, %v1820_v62 }
 0x4a1   : > { %v1906_v12 = vrot.slane %v1840_v14, 4  ;;  %v1916_v26 = vperm.slane %v1912_v18, %v3202_v22  ;;  %v1918_v39 = vsel %vm728_vm8, %v1917_v30, %v1842_v25  ;;  %v1858_v61 = vsel %vm728_vm8, %v1857_v45, %v1730_v0 }
 0x4a2   : > { %v1922_v13 = vperm.slane %v1918_v39, %v3202_v22  ;;  %v1864_v59 = vperm.slane %v1858_v61, %v3202_v22  ;;  %v1868_v63 = vperm.slane %v1860_v23, %v3202_v22  ;;  %v1838_v42 = vsel %vm728_vm8, 0.0, %v1837_v16 }
 0x4a3   : > { %v1937_v1 = vrot.slane %v1916_v26, 4  ;;  %v1905_v21 = vperm.slane %v1901_v44, %v3202_v22  ;;  %v1907_v2 = vsel %vm728_vm8, %v1906_v12, %v1838_v42 }
 0x4a4   : > { %v1869_v31 = vrot.slane %v1864_v59, 4  ;;  %v1872_v32 = vsel %vm728_vm8, %v1864_v59, %v1871_v11  ;;  %v1881_v48 = vrot.slane %v1868_v63, 4  ;;  %v1884_v46 = vsel %vm728_vm8, %v1868_v63, %v1883_v34 }
 0x4a5   : > { %v1880_v43 = vperm.slane %v1872_v32, %v3230_v53  ;;  %v1892_v9 = vperm.slane %v1884_v46, %v3230_v53  ;;  %v1911_v56 = vperm.slane %v1907_v2, %v3202_v22  ;;  %v1925_v28 = vrot.slane %v1905_v21, 4 }
 0x4a6   : > { %v1870_v36 = vsel %vm728_vm8, %v1869_v31, %v1852_v40  ;;  %v1882_v37 = vsel %vm728_vm8, %v1881_v48, %v1856_v35  ;;  %v1938_v38 = vsel %vm728_vm8, %v1922_v13, %v1937_v1  ;;  %v1935_v7 = vrot.slane %v1922_v13, 4 }
 0x4a7   : > { %v1876_v19 = vperm.slane %v1870_v36, %v3230_v53  ;;  %v1888_v24 = vperm.slane %v1882_v37, %v3230_v53  ;;  %v1895_v4 = vrot.slane %v1880_v43, 4  ;;  %v1899_v50 = vrot.slane %v1892_v9, 4  ;;  %v2856_v36 = vld [vmem:[%s4022_s8 + $0x18] sm:$0xff]  ;;  %v2855_v37 = vld [vmem:[%s4022_s8 + $0x10] sm:$0xff] }
 0x4a8   : > { %v1926_v47 = vsel %vm728_vm8, %v1911_v56, %v1925_v28  ;;  %v1946_v41 = vperm.slane %v1938_v38, %v3230_v53  ;;  %v1923_v51 = vrot.slane %v1911_v56, 4  ;;  %v1936_v33 = vsel %vm728_vm8, %v1935_v7, %v1916_v26  ;;  %2085 = vmatpush.bf16.msra.mxu2 %v2856_v36  ;;  %v2854_v38 = vld [vmem:[%s4022_s8 + $0x8] sm:$0xff]  ;;  %v2853_v7 = vld [vmem:[%s4022_s8] sm:$0xff] }
 0x4a9   : > { %v1893_v54 = vrot.slane %v1876_v19, 4  ;;  %v1896_v3 = vsel %vm728_vm8, 0.0, %v1895_v4  ;;  %v1897_v40 = vrot.slane %v1888_v24, 4  ;;  %v1900_v35 = vsel %vm728_vm8, 0.0, %v1899_v50 }
 0x4aa   : > { %v1955_v55 = vsel %vm728_vm8, %v1895_v4, %v1876_v19  ;;  %v1960_v58 = vrot.slane %v1896_v3, 4  ;;  %v1966_v0 = vsel %vm728_vm8, %v1899_v50, %v1888_v24  ;;  %v1971_v60 = vrot.slane %v1900_v35, 4 }
 0x4ab   : > { %v1898_v5 = vsel %vm728_vm8, 0.0, %v1897_v40  ;;  %v1970_v17 = vperm.slane %v1966_v0, %v3202_v22  ;;  %v1894_v8 = vsel %vm728_vm8, 0.0, %v1893_v54  ;;  %v1959_v6 = vperm.slane %v1955_v55, %v3202_v22 }
 0x4ac   : > { %v1972_v27 = vsel %vm728_vm8, %v1971_v60, %v1898_v5  ;;  %v1961_v11 = vsel %vm728_vm8, %v1960_v58, %v1894_v8  ;;  %v1934_v57 = vperm.slane %v1926_v47, %v3230_v53  ;;  %v1924_v52 = vsel %vm728_vm8, %v1923_v51, %v1905_v21  ;;  %2086 = vmatpush.bf16.msra.mxu2 %v2855_v37  ;;  %v2963_v8 = vld [vmem:[%s3133_s22 + $0x2] ss:$0 sm:$0xff] }
 0x4ad   : > { %v1976_v34 = vperm.slane %v1972_v27, %v3202_v22  ;;  %v1991_v15 = vrot.slane %v1970_v17, 4  ;;  %v1965_v20 = vperm.slane %v1961_v11, %v3202_v22  ;;  %v1979_v62 = vrot.slane %v1959_v6, 4  ;;  %v3017_v11 = vld [vmem:[%s3128_s19] sm:$0xff] }
 0x4ae   : > { %v1942_v29 = vperm.slane %v1936_v33, %v3230_v53  ;;  %v1951_v49 = vrot.slane %v1946_v41, 4  ;;  %v1930_v30 = vperm.slane %v1924_v52, %v3230_v53  ;;  %v1953_v22 = vrot.slane %v1934_v57, 4  ;;  %v3018_v52 = vld [vmem:[%s3128_s19 + $0x8] sm:$0xff] }
 0x4af   : > { %v1992_v18 = vsel %vm728_vm8, %v1976_v34, %v1991_v15  ;;  %v1977_v45 = vrot.slane %v1965_v20, 4  ;;  %v1980_v23 = vsel %vm728_vm8, %v1965_v20, %v1979_v62  ;;  %v1989_v25 = vrot.slane %v1976_v34, 4 }
 0x4b0   : > { %v2000_v16 = vperm.slane %v1992_v18, %v3230_v53  ;;  %v1947_v14 = vrot.slane %v1942_v29, 4  ;;  %v1988_v44 = vperm.slane %v1980_v23, %v3230_v53  ;;  %v1949_v12 = vrot.slane %v1930_v30, 4  ;;  %2087 = vmatpush.bf16.msra.mxu2 %v2854_v38  ;;  %v2737_v38 = vld [vmem:[%s4024_s10] sm:$0xf] }
 0x4b1   : > { %v1978_v26 = vsel %vm728_vm8, %v1977_v45, %v1959_v6  ;;  %v1990_v13 = vsel %vm728_vm8, %v1989_v25, %v1970_v17  ;;  %v1952_v1 = vsel %vm728_vm8, %v1951_v49, %v1934_v57  ;;  %v1954_v32 = vsel %vm728_vm8, %v1946_v41, %v1953_v22  ;;  %v2962_v17 = vld [vmem:[%s4023_s9] ss:$0 sm:$0xff] }
 0x4b2   : > { %v2005_v39 = vrot.slane %v2000_v16, 4  ;;  %v1984_v61 = vperm.slane %v1978_v26, %v3230_v53  ;;  %v1948_v59 = vsel %vm728_vm8, %v1947_v14, %v1930_v30  ;;  %v2007_v63 = vrot.slane %v1988_v44, 4  ;;  %v2761_v26 = vld [vmem:[%s4024_s10 + $0x30] sm:$0xf] }
 0x4b3   : > { %v1996_v42 = vperm.slane %v1990_v13, %v3230_v53  ;;  %v1950_v9 = vsel %vm728_vm8, %v1942_v29, %v1949_v12 }
 0x4b4   : > { %v2006_v21 = vsel %vm728_vm8, %v2005_v39, %v1988_v44  ;;  %v2003_v2 = vrot.slane %v1984_v61, 4  ;;  %v2008_v48 = vsel %vm728_vm8, %v2000_v16, %v2007_v63  ;;  %2088 = vmatpush.bf16.msra.mxu2 %v2853_v7  ;;  %v2864_v39 = vld [vmem:[%s4024_s10 + $0x34] sm:$0xf0]  ;;  %v2858_v7 = vld [vmem:[%s4024_s10 + $0x4] sm:$0xf0] }
 0x4b5   : > { %v2948_v31 = vpack.i.bf16 %v2006_v21, %v1952_v1  ;;  %v2001_v46 = vrot.slane %v1996_v42, 4  ;;  %v2953_v43 = vpack.i.bf16 %v2008_v48, %v1954_v32  ;;  %v2762_v13 = vor.u32 %v2864_v39, %v2761_v26  ;;  %v2753_v21 = vld [vmem:[%s4024_s10 + $0x20] sm:$0xf] }
 0x4b6   : > { %v2004_v56 = vsel %vm728_vm8, %v1996_v42, %v2003_v2  ;;  %v2862_v2 = vld [vmem:[%s4024_s10 + $0x24] sm:$0xf0] }
 0x4b7   : > { %2949 = vrot.lane.b32.xlu2 %v2948_v31, %s3033_s23  ;;  %v2943_v28 = vpack.i.bf16 %v2004_v56, %v1950_v9  ;;  %v2002_v53 = vsel %vm728_vm8, %v2001_v46, %v1984_v61  ;;  %2954 = vrot.lane.b32.xlu0 %v2953_v43, %s3034_s24  ;;  %v2863_v61 = vld [vmem:[%s4024_s10 + $0x34] sm:$0xf]  ;;  %v2861_v31 = vld [vmem:[%s4024_s10 + $0x24] sm:$0xf]  ;;  %v2754_v48 = vor.u32 %v2862_v2, %v2753_v21  ;;  %s484_s23 = scalar_lea.vmem %s4028_s14, %s2839_s15 }
 0x4b8   : > { %2213 = vmatpush.bf16.msra.mxu3 %v2762_v13  ;;  %v2755_v46 = vld [vmem:[%s4024_s10 + $0x28] sm:$0xf0]  ;;  %v2745_v43 = vld [vmem:[%s4024_s10 + $0x10] sm:$0xf]  ;;  %v2860_v56 = vld [vmem:[%s4024_s10 + $0x14] sm:$0xf0] }
 0x4b9   : > { %2944 = vrot.lane.b32.xlu1 %v2943_v28, %s3035_s25  ;;  %v2758_v9 = vor.u32 %v2861_v31, %v2755_v46  ;;  %v2859_v28 = vld [vmem:[%s4024_s10 + $0x14] sm:$0xf]  ;;  %v2746_v36 = vor.u32 %v2860_v56, %v2745_v43 }
 0x4ba   : > { %v2879_v46 = vld [vmem:[%s4026_s12 + $0x70] sm:$0xff] }
 0x4bc   : > { %2214 = vmatpush.bf16.msra.mxu3 %v2754_v48 }
 0x4c0   : > { %2215 = vmatpush.bf16.msra.mxu3 %v2746_v36 }
 0x511   : > { %v2950_v19 = vpop.permute.xlu2 %2949 }
 0x512   : > { %v2952_v41 = vunpack.i.h.bf16 %v2950_v19  ;;  %v2951_v51 = vunpack.i.l.bf16 %v2950_v19  ;;  %v2857_v19 = vld [vmem:[%s4024_s10 + $0x4] sm:$0xf] }
 0x529   : > { %v2955_v24 = vpop.permute.xlu0 %2954 }
 0x52a   : > { %v2957_v54 = vunpack.i.h.bf16 %v2955_v24  ;;  %v2956_v3 = vunpack.i.l.bf16 %v2955_v24  ;;  %v2739_v24 = vld [vmem:[%s4024_s10 + $0x8] sm:$0xf0] }
 0x52b   : > { %v2945_v4 = vpop.permute.xlu1 %2944 }
 0x52c   : > { %v2947_v50 = vunpack.i.h.bf16 %v2945_v4  ;;  %v2946_v47 = vunpack.i.l.bf16 %v2945_v4 }
 0x52e   : > { %v2033_v40 = vsel %vm1462_vm9, %v1948_v59, %v2946_v47  ;;  %v2034_v35 = vsel %vm1462_vm9, %v2002_v53, %v2947_v50  ;;  %v2763_v59 = vld [vmem:[%s4024_s10 + $0x38] sm:$0xf0]  ;;  %v2738_v47 = vor.u32 %v2858_v7, %v2737_v38 }
 0x52f   : > { %v2036_v55 = vsel %vm2035_vm10, %v2033_v40, %v2951_v51  ;;  %v2037_v58 = vsel %vm2035_vm10, %v2034_v35, %v2952_v41  ;;  %v2766_v42 = vor.u32 %v2863_v61, %v2763_v59  ;;  %v2747_v53 = vld [vmem:[%s4024_s10 + $0x18] sm:$0xf0]  ;;  %v2742_v41 = vor.u32 %v2857_v19, %v2739_v24  ;;  %v2878_v24 = vld [vmem:[%s4026_s12 + $0x68] sm:$0xff] }
 0x530   : > { %v2039_v0 = vsel %vm2038_vm11, %v2036_v55, %v2956_v3  ;;  %v2040_v60 = vsel %vm2038_vm11, %v2037_v58, %v2957_v54  ;;  %v2750_v37 = vor.u32 %v2859_v28, %v2747_v53  ;;  %2216 = vmatpush.bf16.msra.mxu3 %v2738_v47  ;;  %v2880_v59 = vld [vmem:[%s4026_s12 + $0x78] sm:$0xff] }
 0x531   : > { %v2041_v5 = vpack.c.bf16 %v2040_v60, %v2039_v0  ;;  %2227 = vmatpush.bf16.msrb.mxu0 %v2766_v42  ;;  %v492_v0 = vld [vmem:[%s3133_s22 + $0x4] sm:$0x1]  ;;  %2561 = vmatpush.bf16.msrb.mxu2 %v2880_v59  ;;  %v2872_v53 = vld [vmem:[%s4026_s12 + $0x38] sm:$0xff]  ;;  %v2875_v59 = vld [vmem:[%s4026_s12 + $0x50] sm:$0xff] }
 0x532   : > { %2547 = vmatpush.bf16.msra.mxu1 %v2872_v53  ;;  %v2874_v53 = vld [vmem:[%s4026_s12 + $0x48] sm:$0xff] }
 0x533   : > { %2734 = vmatmul.msk.bf16.vlgmr.msra.gmra.mxu2 %vm494_vm0, %v2041_v5 }
 0x535   : > { %2228 = vmatpush.bf16.msrb.mxu0 %v2758_v9  ;;  %2562 = vmatpush.bf16.msrb.mxu2 %v2879_v46  ;;  %v2868_v46 = vld [vmem:[%s4026_s12 + $0x18] sm:$0xff] }
 0x539   : > { %2229 = vmatpush.bf16.msrb.mxu0 %v2750_v37  ;;  %2563 = vmatpush.bf16.msrb.mxu2 %v2878_v24 }
 0x53d   : > { %2230 = vmatpush.bf16.msrb.mxu0 %v2742_v41 }
 0x5b6   : > { %v2090_v33 = vpop.f32.mrf.mxu2 }
 0x5b7   : > { %v2091_v27 = vadd.f32 %v2962_v17, %v2090_v33 }
 0x5b9   : > { %v2096_v6 = vmul.f32 %v2963_v8, %v2091_v27 }
 0x5bb   : > { %v3748_v34 = vadd.f32 %v3017_v11, %v2096_v6 }
 0x5bd   : > { %v2100_v15 = vsel %vm494_vm0, %v3748_v34, 0.0 }
 0x5be   : > { %v2092_v57 = vpop.f32.mrf.mxu2  ;;  %2101 = vadd.xlane.f32.xlu1 %v2100_v15 }
 0x5bf   : > { %v2093_v20 = vadd.f32 %v2962_v17, %v2092_v57  ;;  %v2144_v17 = vadd.f32 1.0, %v492_v0  ;;  %v2877_v0 = vld [vmem:[%s4026_s12 + $0x60] sm:$0xff] }
 0x5c0   : > { %2564 = vmatpush.bf16.msrb.mxu2 %v2877_v0 }
 0x5c1   : > { %v2097_v62 = vmul.f32 %v2963_v8, %v2093_v20  ;;  %v2145_v6 = vperm.slane %v2144_v17, 0  ;;  %v2964_v20 = vld [vmem:[%s3133_s22 + $0x3] ss:$0 sm:$0xff] }
 0x5c3   : > { %v3753_v29 = vadd.f32 %v3018_v52, %v2097_v62 }
 0x5c5   : > { %v2103_v49 = vsel %vm494_vm0, %v3753_v29, 0.0 }
 0x5c6   : > { %2104 = vadd.xlane.f32.xlu0 %v2103_v49 }
 0x631   : > { %v2102_v18 = vpop.xlane.xlu1 %2101 }
 0x632   : > { %v2106_v30 = vmul.f32 %v2102_v18, %v3139_v10 }
 0x634   : > { %v3759_v45 = vsub.f32 %v3748_v34, %v2106_v30 }
 0x636   : > { %v2110_v23 = vmul.f32 %v3759_v45, %v3759_v45 }
 0x638   : > { %v2112_v16 = vsel %vm494_vm0, %v2110_v23, 0.0 }
 0x639   : > { %v2105_v14 = vpop.xlane.xlu0 %2104  ;;  %2113 = vadd.xlane.f32.xlu2 %v2112_v16 }
 0x63a   : > { %v2107_v25 = vmul.f32 %v2105_v14, %v3139_v10 }
 0x63c   : > { %v3766_v44 = vsub.f32 %v3753_v29, %v2107_v25 }
 0x63e   : > { %v2111_v22 = vmul.f32 %v3766_v44, %v3766_v44 }
 0x640   : > { %v2115_v12 = vsel %vm494_vm0, %v2111_v22, 0.0 }
 0x641   : > { %2116 = vadd.xlane.f32.xlu1 %v2115_v12 }
 0x6ac   : > { %v2114_v63 = vpop.xlane.xlu2 %2113 }
 0x6ad   : > { %v2118_v1 = vmul.f32 %v2114_v63, %v3139_v10 }
 0x6af   : > { %v2120_v32 = vadd.f32 1e-06, %v2118_v1 }
 0x6b1   : > { %3005 = vrsqrt.f32 %v2120_v32  ;;  %vm2128_vm13 = vweird.f32 %v2120_v32 }
 0x6b4   : > { %v2117_v4 = vpop.xlane.xlu1 %2116 }
 0x6b5   : > { %v2119_v50 = vmul.f32 %v2117_v4, %v3139_v10 }
 0x6b7   : > { %v3006_v51 = vpop.eup %3005  ;;  %v2121_v54 = vadd.f32 1e-06, %v2119_v50 }
 0x6b8   : > { %v2123_v3 = vmul.f32 %v3006_v51, %v2120_v32  ;;  %vm2129_vm12 = vweird.f32 %v3006_v51 }
 0x6b9   : > { %3007 = vrsqrt.f32 %v2121_v54  ;;  %vm2130_vm14 = vmor %vm2128_vm13, %vm2129_vm12  ;;  %vm2138_vm1 = vweird.f32 %v2121_v54 }
 0x6ba   : > { %v2124_v40 = vmul.f32 %v3006_v51, %v2123_v3 }
 0x6bc   : > { %v2125_v35 = vmul.f32 0.5, %v2124_v40 }
 0x6be   : > { %v2126_v55 = vsub.f32 1.5, %v2125_v35 }
 0x6bf   : > { %v3008_v58 = vpop.eup %3007 }
 0x6c0   : > { %v2127_v60 = vmul.f32 %v3006_v51, %v2126_v55  ;;  %v2133_v5 = vmul.f32 %v3008_v58, %v2121_v54  ;;  %vm2139_vm15 = vweird.f32 %v3008_v58 }
 0x6c1   : > { %vm2140_vm2 = vmor %vm2138_vm1, %vm2139_vm15 }
 0x6c2   : > { %v2134_v10 = vmul.f32 %v3008_v58, %v2133_v5  ;;  %v2131_v8 = vsel %vm2130_vm14, %v3006_v51, %v2127_v60 }
 0x6c3   : > { %v2142_v11 = vmul.f32 %v2131_v8, %v3759_v45  ;;  %v2160_v45 = vld [vmem:[%s4025_s11] sm:$0x3] }
 0x6c4   : > { %v2135_v33 = vmul.f32 0.5, %v2134_v10  ;;  %v2163_v16 = vperm.slane %v2160_v45, 1 }
 0x6c5   : > { %v2146_v62 = vmul.f32 %v2145_v6, %v2142_v11 }
 0x6c6   : > { %v2136_v27 = vsub.f32 1.5, %v2135_v33 }
 0x6c7   : > { %v2149_v18 = vadd.f32 %v2964_v20, %v2146_v62  ;;  %v2876_v62 = vld [vmem:[%s4026_s12 + $0x58] sm:$0xff] }
 0x6c8   : > { %v2137_v15 = vmul.f32 %v3008_v58, %v2136_v27  ;;  %v2870_v27 = vld [vmem:[%s4026_s12 + $0x28] sm:$0xff]  ;;  %2565 = vmatpush.bf16.msrb.mxu2 %v2876_v62 }
 0x6ca   : > { %v2141_v57 = vsel %vm2140_vm2, %v3008_v58, %v2137_v15  ;;  %v2871_v58 = vld [vmem:[%s4026_s12 + $0x30] sm:$0xff] }
 0x6cb   : > { %v2143_v52 = vmul.f32 %v2141_v57, %v3766_v44  ;;  %v2162_v44 = vperm.slane %v2160_v45, 0  ;;  %2548 = vmatpush.bf16.msra.mxu1 %v2871_v58 }
 0x6cc   : > { %2566 = vmatpush.bf16.msrb.mxu2 %v2875_v59 }
 0x6cd   : > { %v2147_v49 = vmul.f32 %v2145_v6, %v2143_v52 }
 0x6cf   : > { %v2150_v30 = vadd.f32 %v2964_v20, %v2147_v49  ;;  %2549 = vmatpush.bf16.msra.mxu1 %v2870_v27 }
 0x6d0   : > { %2567 = vmatpush.bf16.msrb.mxu2 %v2874_v53 }
 0x6d1   : > { %v2151_v23 = vpack.c.bf16 %v2150_v30, %v2149_v18 }
 0x6d3   : > { %2767 = vmatmul.msk.bf16.vlgmr.msra.gmra.mxu3 %vm494_vm0, %v2151_v23  ;;  %2768 = vmatmul.msk.bf16.vlgmr.msrb.gmra.mxu0 %vm494_vm0, %v2151_v23 }
 0x750   : > { %v2232_v14 = vpop.f32.mrf.mxu0 }
 0x751   : > { %v3830_v25 = vadd.f32 %v2232_v14, %v2163_v16 }
 0x753   : > { %v3833_v22 = vmul.f32 0.70710677, %v3830_v25 }
 0x755   : > { %v2285_v12 = vmul.f32 %v3833_v22, %v3833_v22 }
 0x756   : > { %v2218_v26 = vpop.f32.mrf.mxu3 }
 0x757   : > { %v3837_v39 = vmin.f32 %v2285_v12, 16.0  ;;  %v3839_v61 = vadd.f32 %v2218_v26, %v2162_v44  ;;  %v2869_v12 = vld [vmem:[%s4026_s12 + $0x20] sm:$0xff] }
 0x758   : > { %v2234_v13 = vpop.f32.mrf.mxu0  ;;  %2550 = vmatpush.bf16.msra.mxu1 %v2869_v12 }
 0x759   : > { %v2287_v63 = vmul.f32 2.1237322e-06, %v3837_v39  ;;  %v2298_v42 = vmul.f32 3.8918573e-05, %v3837_v39  ;;  %v3846_v1 = vadd.f32 %v2234_v13, %v2163_v16  ;;  %v3849_v21 = vmul.f32 0.70710677, %v3839_v61 }
 0x75b   : > { %v2299_v2 = vadd.f32 0.001143296, %v2298_v42  ;;  %v2288_v31 = vadd.f32 0.00028619796, %v2287_v63  ;;  %v2245_v32 = vmul.f32 %v3849_v21, %v3849_v21  ;;  %v3854_v48 = vmul.f32 0.70710677, %v3846_v1 }
 0x75c   : > { %2551 = vmatpush.bf16.msra.mxu1 %v2868_v46 }
 0x75d   : > { %v2300_v43 = vmul.f32 %v2299_v2, %v3837_v39  ;;  %v3860_v9 = vmin.f32 %v2245_v32, 16.0  ;;  %v2365_v56 = vmul.f32 %v3854_v48, %v3854_v48  ;;  %v2289_v38 = vmul.f32 %v2288_v31, %v3837_v39 }
 0x75e   : > { %v2220_v28 = vpop.f32.mrf.mxu3 }
 0x75f   : > { %v2301_v36 = vadd.f32 0.014752088, %v2300_v43  ;;  %v3867_v37 = vadd.f32 %v2220_v28, %v2162_v44  ;;  %v2258_v7 = vmul.f32 3.8918573e-05, %v3860_v9  ;;  %v3871_v19 = vmin.f32 %v2365_v56, 16.0 }
 0x760   : > { %v2247_v47 = vmul.f32 2.1237322e-06, %v3860_v9  ;;  %v2290_v35 = vadd.f32 0.0036580483, %v2289_v38 }
 0x761   : > { %v2302_v4 = vmul.f32 %v2301_v36, %v3837_v39  ;;  %v3878_v50 = vmul.f32 0.70710677, %v3867_v37  ;;  %v2259_v41 = vadd.f32 0.001143296, %v2258_v7  ;;  %v2367_v51 = vmul.f32 2.1237322e-06, %v3871_v19 }
 0x762   : > { %v2378_v3 = vmul.f32 3.8918573e-05, %v3871_v19  ;;  %v2248_v8 = vadd.f32 0.00028619796, %v2247_v47  ;;  %v2291_v52 = vmul.f32 %v2290_v35, %v3837_v39 }
 0x763   : > { %v2303_v54 = vadd.f32 0.112945676, %v2302_v4  ;;  %v2325_v40 = vmul.f32 %v3878_v50, %v3878_v50  ;;  %v2260_v55 = vmul.f32 %v2259_v41, %v3860_v9  ;;  %v2368_v5 = vadd.f32 0.00028619796, %v2367_v51  ;;  %v2867_v41 = vld [vmem:[%s4026_s12 + $0x10] sm:$0xff] }
 0x764   : > { %v2379_v10 = vadd.f32 0.001143296, %v2378_v3  ;;  %v2249_v23 = vmul.f32 %v2248_v8, %v3860_v9  ;;  %v2292_v63 = vadd.f32 0.05243302, %v2291_v52  ;;  %2552 = vmatpush.bf16.msra.mxu1 %v2867_v41 }
 0x765   : > { %v2304_v60 = vmul.f32 %v2303_v54, %v3837_v39  ;;  %v3893_v17 = vmin.f32 %v2325_v40, 16.0  ;;  %v2261_v33 = vadd.f32 0.014752088, %v2260_v55  ;;  %v2369_v18 = vmul.f32 %v2368_v5, %v3871_v19  ;;  %v2873_v55 = vld [vmem:[%s4026_s12 + $0x40] sm:$0xff] }
 0x766   : > { %v2380_v11 = vmul.f32 %v2379_v10, %v3871_v19  ;;  %v2250_v31 = vadd.f32 0.0036580483, %v2249_v23  ;;  %v2293_v36 = vmul.f32 %v2292_v63, %v3837_v39  ;;  %2568 = vmatpush.bf16.msrb.mxu2 %v2873_v55 }
 0x767   : > { %v2305_v6 = vadd.f32 0.4994258, %v2304_v60  ;;  %v2262_v15 = vmul.f32 %v2261_v33, %v3860_v9  ;;  %v2327_v57 = vmul.f32 2.1237322e-06, %v3893_v17  ;;  %v2338_v20 = vmul.f32 3.8918573e-05, %v3893_v17 }
 0x768   : > { %v2381_v30 = vadd.f32 0.014752088, %v2380_v11  ;;  %v2370_v42 = vadd.f32 0.0036580483, %v2369_v18  ;;  %v2251_v4 = vmul.f32 %v2250_v31, %v3860_v9  ;;  %v2294_v58 = vadd.f32 0.18741608, %v2293_v36 }
 0x769   : > { %v2306_v49 = vmul.f32 %v2305_v6, %v3837_v39  ;;  %v2263_v45 = vadd.f32 0.112945676, %v2262_v15  ;;  %v2339_v16 = vadd.f32 0.001143296, %v2338_v20  ;;  %v2328_v13 = vadd.f32 0.00028619796, %v2327_v57 }
 0x76a   : > { %v2382_v44 = vmul.f32 %v2381_v30, %v3871_v19  ;;  %v2371_v38 = vmul.f32 %v2370_v42, %v3871_v19  ;;  %v2252_v5 = vadd.f32 0.05243302, %v2251_v4  ;;  %v2866_v33 = vld [vmem:[%s4026_s12 + $0x8] sm:$0xff]  ;;  %v2295_v57 = vmul.f32 %v2294_v58, %v3837_v39  ;;  %v2865_v18 = vld [vmem:[%s4026_s12] sm:$0xff] }
 0x76b   : > { %v3909_v14 = vadd.f32 1.0, %v2306_v49  ;;  %v2264_v26 = vmul.f32 %v2263_v45, %v3860_v9  ;;  %v2340_v2 = vmul.f32 %v2339_v16, %v3893_v17  ;;  %v2329_v28 = vmul.f32 %v2328_v13, %v3893_v17  ;;  %2553 = vmatpush.bf16.msra.mxu1 %v2866_v33 }
 0x76c   : > { %v2383_v43 = vadd.f32 0.112945676, %v2382_v44  ;;  %v2372_v0 = vadd.f32 0.05243302, %v2371_v38  ;;  %v2253_v49 = vmul.f32 %v2252_v5, %v3860_v9 }
 0x76d   : > { %3009 = vrcp.f32 %v3909_v14  ;;  %v2265_v32 = vadd.f32 0.4994258, %v2264_v26  ;;  %v2341_v24 = vadd.f32 0.014752088, %v2340_v2  ;;  %v2330_v35 = vadd.f32 0.0036580483, %v2329_v28 }
 0x76e   : > { %v2384_v7 = vmul.f32 %v2383_v43, %v3871_v19  ;;  %v2373_v20 = vmul.f32 %v2372_v0, %v3871_v19  ;;  %v2319_v30 = vand.u32 2147483648, %v3909_v14  ;;  %vm2313_vm4 = vweird.f32 %v3909_v14 }
 0x76f   : > { %v2266_v56 = vmul.f32 %v2265_v32, %v3860_v9  ;;  %v2342_v3 = vmul.f32 %v2341_v24, %v3893_v17  ;;  %v2331_v11 = vmul.f32 %v2330_v35, %v3893_v17  ;;  %v2317_v23 = vand.u32 2147483647, %v3909_v14  ;;  %2554 = vmatpush.bf16.msra.mxu1 %v2865_v18 }
 0x770   : > { %v2385_v54 = vadd.f32 0.4994258, %v2384_v7  ;;  %v2374_v12 = vadd.f32 0.18741608, %v2373_v20  ;;  %v2296_v26 = vadd.f32 1.1283791, %v2295_v57 }
 0x771   : > { %v3933_v47 = vadd.f32 1.0, %v2266_v56  ;;  %v2343_v8 = vadd.f32 0.112945676, %v2342_v3  ;;  %v2332_v45 = vadd.f32 0.05243302, %v2331_v11  ;;  %v2320_v42 = vor.u32 1.1754944e-38, %v2319_v30 }
 0x772   : > { %v2386_v10 = vmul.f32 %v2385_v54, %v3871_v19  ;;  %v2254_v59 = vadd.f32 0.18741608, %v2253_v49  ;;  %vm2318_vm6 = vcmp.eq.f32.partialorder %v2317_v23, 8.507059e+37  ;;  %v2375_v43 = vmul.f32 %v2374_v12, %v3871_v19 }
 0x773   : > { %v3010_v51 = vpop.eup %3009  ;;  %3011 = vrcp.f32 %v3933_v47  ;;  %v2344_v15 = vmul.f32 %v2343_v8, %v3893_v17  ;;  %v2333_v32 = vmul.f32 %v2332_v45, %v3893_v17  ;;  %v2297_v28 = vmul.f32 %v2296_v26, %v3833_v22 }
 0x774   : > { %v2309_v40 = vmul.f32 %v3010_v51, %v3909_v14  ;;  %v3948_v6 = vadd.f32 1.0, %v2386_v10  ;;  %vm2314_vm3 = vweird.f32 %v3010_v51  ;;  %v2255_v53 = vmul.f32 %v2254_v59, %v3860_v9 }
 0x775   : > { %v2345_v16 = vadd.f32 0.4994258, %v2344_v15  ;;  %vm2315_vm5 = vmor %vm2313_vm4, %vm2314_vm3  ;;  %vm2273_vm7 = vweird.f32 %v3933_v47  ;;  %v2277_v38 = vand.u32 2147483647, %v3933_v47  ;;  %v2279_v4 = vand.u32 2147483648, %v3933_v47 }
 0x776   : > { %v2310_v60 = vsub.f32 1.0, %v2309_v40  ;;  %3013 = vrcp.f32 %v3948_v6  ;;  %v2399_v19 = vand.u32 2147483648, %v3948_v6  ;;  %v2334_v41 = vadd.f32 0.18741608, %v2333_v32 }
 0x777   : > { %v2346_v63 = vmul.f32 %v2345_v16, %v3893_v17  ;;  %v2397_v9 = vand.u32 2147483647, %v3948_v6  ;;  %v2256_v54 = vadd.f32 1.1283791, %v2255_v53  ;;  %vm2278_vm11 = vcmp.eq.f32.partialorder %v2277_v38, 8.507059e+37 }
 0x778   : > { %v2311_v27 = vmul.f32 %v3010_v51, %v2310_v60  ;;  %vm2393_vm12 = vweird.f32 %v3948_v6  ;;  %v2280_v0 = vor.u32 1.1754944e-38, %v2279_v4  ;;  %v2400_v60 = vor.u32 1.1754944e-38, %v2399_v19  ;;  %v2966_v53 = vld [vmem:[%s3133_s22 + $0x5] ss:$0 sm:$0xff] }
 0x779   : > { %v3954_v62 = vpop.eup %3011  ;;  %v2347_v46 = vadd.f32 1.0, %v2346_v63  ;;  %v2335_v5 = vmul.f32 %v2334_v41, %v3893_v17  ;;  %vm2398_vm14 = vcmp.eq.f32.partialorder %v2397_v9, 8.507059e+37  ;;  %v2257_v11 = vmul.f32 %v2256_v54, %v3849_v21 }
 0x77a   : > { %v2312_v52 = vadd.f32 %v3010_v51, %v2311_v27  ;;  %v2269_v39 = vmul.f32 %v3954_v62, %v3933_v47  ;;  %vm2274_vm8 = vweird.f32 %v3954_v62  ;;  %v2238_v17 = vmul.f32 0.5, %v3830_v25 }
 0x77b   : > { %3015 = vrcp.f32 %v2347_v46  ;;  %vm3982_vm10 = vmor %vm2273_vm7, %vm2274_vm8  ;;  %vm2353_vm1 = vweird.f32 %v2347_v46 }
 0x77c   : > { %v2270_v44 = vsub.f32 1.0, %v2269_v39  ;;  %v2316_v13 = vsel %vm2315_vm5, %v3010_v51, %v2312_v52  ;;  %v3014_v31 = vpop.eup %3013  ;;  %v2376_v51 = vadd.f32 1.1283791, %v2375_v43  ;;  %v2359_v52 = vand.u32 2147483648, %v2347_v46 }
 0x77d   : > { %v2321_v14 = vsel %vm2318_vm6, %v2320_v42, %v2316_v13  ;;  %v2389_v56 = vmul.f32 %v3014_v31, %v3948_v6  ;;  %vm2394_vm9 = vweird.f32 %v3014_v31  ;;  %v2336_v6 = vadd.f32 1.1283791, %v2335_v5 }
 0x77e   : > { %v2271_v2 = vmul.f32 %v3954_v62, %v2270_v44  ;;  %v2322_v24 = vmul.f32 %v2321_v14, %v2297_v28  ;;  %vm2395_vm13 = vmor %vm2393_vm12, %vm2394_vm9  ;;  %v2377_v47 = vmul.f32 %v2376_v51, %v3854_v48  ;;  %v2240_v48 = vmul.f32 0.5, %v3846_v1  ;;  %v2965_v14 = vld [vmem:[%s4027_s13] ss:$0 sm:$0xff] }
 0x77f   : > { %v2390_v7 = vsub.f32 1.0, %v2389_v56  ;;  %v2337_v21 = vmul.f32 %v2336_v6, %v3878_v50  ;;  %v2360_v16 = vor.u32 1.1754944e-38, %v2359_v52  ;;  %v2237_v1 = vmul.f32 0.5, %v3839_v61 }
 0x780   : > { %v2272_v36 = vadd.f32 %v3954_v62, %v2271_v2  ;;  %v2770_v58 = vclamps-f32 %v2322_v24, 1.0  ;;  %v2239_v2 = vmul.f32 0.5, %v3867_v37 }
 0x781   : > { %v2391_v22 = vmul.f32 %v3014_v31, %v2390_v7  ;;  %v3016_v55 = vpop.eup %3015 }
 0x782   : > { %v2276_v40 = vsel %vm3982_vm10, %v3954_v62, %v2272_v36  ;;  %v2349_v8 = vmul.f32 %v3016_v55, %v2347_v46  ;;  %v2406_v20 = vadd.f32 1.0, %v2770_v58  ;;  %v2357_v62 = vand.u32 2147483647, %v2347_v46 }
 0x783   : > { %v2392_v35 = vadd.f32 %v3014_v31, %v2391_v22  ;;  %v2281_v33 = vsel %vm2278_vm11, %v2280_v0, %v2276_v40  ;;  %vm2354_vm15 = vweird.f32 %v3016_v55 }
 0x784   : > { %v2350_v57 = vsub.f32 1.0, %v2349_v8  ;;  %v2282_v49 = vmul.f32 %v2281_v33, %v2257_v11  ;;  %v2410_v45 = vmul.f32 %v2406_v20, %v2238_v17  ;;  %vm2355_vm2 = vmor %vm2353_vm1, %vm2354_vm15  ;;  %vm2358_vm3 = vcmp.eq.f32.partialorder %v2357_v62, 8.507059e+37 }
 0x785   : > { %v2396_v10 = vsel %vm2395_vm13, %v3014_v31, %v2392_v35 }
 0x786   : > { %v2401_v27 = vsel %vm2398_vm14, %v2400_v60, %v2396_v10  ;;  %v2351_v30 = vmul.f32 %v3016_v55, %v2350_v57  ;;  %v2769_v44 = vclamps-f32 %v2282_v49, 1.0 }
 0x787   : > { %v2402_v15 = vmul.f32 %v2401_v27, %v2377_v47 }
 0x788   : > { %v2352_v23 = vadd.f32 %v3016_v55, %v2351_v30  ;;  %v2405_v42 = vadd.f32 1.0, %v2769_v44 }
 0x789   : > { %v2772_v18 = vclamps-f32 %v2402_v15, 1.0 }
 0x78a   : > { %v2356_v26 = vsel %vm2355_vm2, %v3016_v55, %v2352_v23  ;;  %v2409_v50 = vmul.f32 %v2405_v42, %v2237_v1 }
 0x78b   : > { %v2408_v39 = vadd.f32 1.0, %v2772_v18  ;;  %v2361_v13 = vsel %vm2358_vm3, %v2360_v16, %v2356_v26 }
 0x78c   : > { %v2362_v63 = vmul.f32 %v2361_v13, %v2337_v21 }
 0x78d   : > { %v2412_v12 = vmul.f32 %v2408_v39, %v2240_v48 }
 0x78e   : > { %v2771_v25 = vclamps-f32 %v2362_v63, 1.0 }
 0x78f   : > { %v2414_v59 = vpack.c.bf16 %v2412_v12, %v2410_v45 }
 0x790   : > { %v2407_v31 = vadd.f32 1.0, %v2771_v25 }
 0x791   : > { %2569 = vmatmul.bf16.vlgmr.msrb.gmra.mxu2 %v2414_v59 }
 0x792   : > { %v2411_v32 = vmul.f32 %v2407_v31, %v2239_v2 }
 0x794   : > { %v2413_v46 = vpack.c.bf16 %v2411_v32, %v2409_v50 }
 0x796   : > { %2555 = vmatmul.bf16.vlgmr.msra.gmra.mxu1 %v2413_v46 }
 0x813   : > { %v2556_v43 = vpop.f32.mrf.mxu1 }
 0x814   : > { %v2570_v56 = vpop.f32.mrf.mxu2  ;;  %v2557_v28 = vadd.f32 %v2965_v14, %v2556_v43 }
 0x816   : > { %v2571_v36 = vadd.f32 %v2570_v56, %v2557_v28 }
 0x818   : > { %v2576_v38 = vmul.f32 %v2966_v53, %v2571_v36 }
 0x81a   : > { %v2578_v61 = vadd.f32 %v2576_v38, %v3748_v34 }
 0x81b   : > { %v2558_v37 = vpop.f32.mrf.mxu1 }
 0x81c   : > { %2580 = vst.msk [vmem:[%s484_s23] sm:$0xff] %vm494_vm0, %v2578_v61  ;;  %v2559_v7 = vadd.f32 %v2965_v14, %v2558_v37  ;;  %v2572_v24 = vpop.f32.mrf.mxu2 }
 0x81e   : > { %v2573_v4 = vadd.f32 %v2572_v24, %v2559_v7 }
 0x820   : > { %v2577_v19 = vmul.f32 %v2966_v53, %v2573_v4 }
 0x822   : > { %v2579_v41 = vadd.f32 %v2577_v19, %v3753_v29 }
 0x824   : > { %2581 = vst.msk [vmem:[%s484_s23 + $0x8] sm:$0xff] %vm494_vm0, %v2579_v41 }
 0x825 PF: > { %s24_s29 = sadd.s32 1, %s3025_s29  }
 0x826   : > { %p21_p4 = scmp.ge.s32.totalorder %s24_s29, 4  }
 0x828   :  { %23 = sbr.rel (!%p21_p4) target bundleno = 1 (0x1), region = 109 }

</bundles_post_ra>
